<compile_context>
chip_gen: v6e
topology: v6e:2x2x1
jax: 0.10.0
libtpu: 0.0.40
codegen_flags: <defaults>
</compile_context>

<pallas_src>
import functools
import math

import jax
import jax.numpy as jnp
from jax.experimental import pallas as pl
from jax.experimental.pallas import tpu as pltpu


def _round_up(x, m):
    return ((x + m - 1) // m) * m


# ---------------------------------------------------------------------------
# Pallas kernels
# ---------------------------------------------------------------------------

def linear_kernel(x_ref, w_ref, b_ref, o_ref, *, act):
    # y = x @ W_t + b, W_t already (in, out) and bf16; accumulate in f32.
    x = x_ref[...].astype(w_ref.dtype)
    y = jnp.dot(x, w_ref[...], preferred_element_type=jnp.float32) + b_ref[...]
    if act == 'relu':
        y = jnp.maximum(y, 0.0)
    elif act == 'gelu':
        y = jax.nn.gelu(y, approximate=True)
    o_ref[...] = y.astype(o_ref.dtype)


def pallas_linear(x, w_t, b, act=None, out_dtype=jnp.float32, tile_n=512):
    # tile_n=512 targets v5e/v6e (128 MiB VMEM); use 256 on v7x (64 MiB).
    n, din = x.shape
    dout = w_t.shape[1]
    tn = min(n, tile_n)
    return pl.pallas_call(
        functools.partial(linear_kernel, act=act),
        out_shape=jax.ShapeDtypeStruct((n, dout), out_dtype),
        grid=(pl.cdiv(n, tn),),
        in_specs=[pl.BlockSpec((tn, din), lambda i: (i, 0)),
                  pl.BlockSpec((din, dout), lambda i: (0, 0)),
                  pl.BlockSpec((1, dout), lambda i: (0, 0))],
        out_specs=pl.BlockSpec((tn, dout), lambda i: (i, 0)),
        compiler_params=pltpu.CompilerParams(dimension_semantics=("parallel",)),
    )(x, w_t, b.reshape(1, dout).astype(jnp.float32))


def linear_res_ln_kernel(x_ref, res_ref, w_ref, b_ref, g_ref, bln_ref, o_ref,
                         *, eps):
    # o = LayerNorm_bert(x @ W_t + b + res): fused projection + residual + LN.
    x = x_ref[...].astype(w_ref.dtype)
    y = jnp.dot(x, w_ref[...], preferred_element_type=jnp.float32) + b_ref[...]
    h = y + res_ref[...]
    mu = jnp.mean(h, axis=-1, keepdims=True)
    var = jnp.mean((h - mu) * (h - mu), axis=-1, keepdims=True)
    o_ref[...] = (g_ref[...] * (h - mu) * jax.lax.rsqrt(var + eps)
                  + bln_ref[...]).astype(o_ref.dtype)


def pallas_linear_res_ln(x, res, w_t, b, g, bln, eps=1e-12,
                         out_dtype=jnp.float32, tile_n=512):
    n, din = x.shape
    dout = w_t.shape[1]
    tn = min(n, tile_n)
    return pl.pallas_call(
        functools.partial(linear_res_ln_kernel, eps=eps),
        out_shape=jax.ShapeDtypeStruct((n, dout), out_dtype),
        grid=(pl.cdiv(n, tn),),
        in_specs=[pl.BlockSpec((tn, din), lambda i: (i, 0)),
                  pl.BlockSpec((tn, dout), lambda i: (i, 0)),
                  pl.BlockSpec((din, dout), lambda i: (0, 0)),
                  pl.BlockSpec((1, dout), lambda i: (0, 0)),
                  pl.BlockSpec((1, dout), lambda i: (0, 0)),
                  pl.BlockSpec((1, dout), lambda i: (0, 0))],
        out_specs=pl.BlockSpec((tn, dout), lambda i: (i, 0)),
        compiler_params=pltpu.CompilerParams(dimension_semantics=("parallel",)),
    )(x, res, w_t, b.reshape(1, dout).astype(jnp.float32),
      g.reshape(1, dout).astype(jnp.float32),
      bln.reshape(1, dout).astype(jnp.float32))


def tail_fused_kernel(x_ref, res_ref, w_ref, b_ref, g1_ref, bln1_ref,
                      g2_ref, bln2_ref, wxx_ref, bxx_ref, aqk_ref, baqk_ref,
                      gi_ref, qk_ref, *, eps_bert, eps_gcn):
    # ffo = x @ bo_w + b ; seq = LN_bert(ffo + res) ; xn = LN_custom(seq)
    # gi  = xn @ Wxx + bxx (padded to ATTP) ; qk = gi @ W_aqk + b_aqk
    bf = w_ref.dtype
    x = x_ref[...].astype(bf)
    ffo = jnp.dot(x, w_ref[...], preferred_element_type=jnp.float32) + b_ref[...]
    h = ffo + res_ref[...]
    mu = jnp.mean(h, axis=-1, keepdims=True)
    var = jnp.mean((h - mu) * (h - mu), axis=-1, keepdims=True)
    seq = g1_ref[...] * (h - mu) * jax.lax.rsqrt(var + eps_bert) + bln1_ref[...]
    # module's custom LayerNorm: unbiased std, eps added to std.
    d = seq.shape[-1]
    mu2 = jnp.mean(seq, axis=-1, keepdims=True)
    diff = seq - mu2
    std = jnp.sqrt(jnp.sum(diff * diff, axis=-1, keepdims=True) / (d - 1))
    xn = g2_ref[...] * diff / (std + eps_gcn) + bln2_ref[...]
    gi = jnp.dot(xn.astype(bf), wxx_ref[...],
                 preferred_element_type=jnp.float32) + bxx_ref[...]
    gi_ref[...] = gi.astype(gi_ref.dtype)
    qk = jnp.dot(gi.astype(bf), aqk_ref[...],
                 preferred_element_type=jnp.float32) + baqk_ref[...]
    qk_ref[...] = qk.astype(qk_ref.dtype)


def pallas_tail_fused(x, res, w_t, b, g1, bln1, g2, bln2, wxx_t, bxx, aqk_t,
                      baqk, eps_bert=1e-12, eps_gcn=1e-6, tile_n=512):
    n, din = x.shape
    h = w_t.shape[1]
    attp = wxx_t.shape[1]
    two_attp = aqk_t.shape[1]
    tn = min(n, tile_n)
    bf = jnp.bfloat16
    return pl.pallas_call(
        functools.partial(tail_fused_kernel, eps_bert=eps_bert, eps_gcn=eps_gcn),
        out_shape=(jax.ShapeDtypeStruct((n, attp), bf),
                   jax.ShapeDtypeStruct((n, two_attp), bf)),
        grid=(pl.cdiv(n, tn),),
        in_specs=[pl.BlockSpec((tn, din), lambda i: (i, 0)),
                  pl.BlockSpec((tn, h), lambda i: (i, 0)),
                  pl.BlockSpec((din, h), lambda i: (0, 0)),
                  pl.BlockSpec((1, h), lambda i: (0, 0)),
                  pl.BlockSpec((1, h), lambda i: (0, 0)),
                  pl.BlockSpec((1, h), lambda i: (0, 0)),
                  pl.BlockSpec((1, h), lambda i: (0, 0)),
                  pl.BlockSpec((1, h), lambda i: (0, 0)),
                  pl.BlockSpec((h, attp), lambda i: (0, 0)),
                  pl.BlockSpec((1, attp), lambda i: (0, 0)),
                  pl.BlockSpec((attp, two_attp), lambda i: (0, 0)),
                  pl.BlockSpec((1, two_attp), lambda i: (0, 0))],
        out_specs=[pl.BlockSpec((tn, attp), lambda i: (i, 0)),
                   pl.BlockSpec((tn, two_attp), lambda i: (i, 0))],
        compiler_params=pltpu.CompilerParams(dimension_semantics=("parallel",)),
    )(x, res, w_t, b.reshape(1, h).astype(jnp.float32),
      g1.reshape(1, h).astype(jnp.float32), bln1.reshape(1, h).astype(jnp.float32),
      g2.reshape(1, h).astype(jnp.float32), bln2.reshape(1, h).astype(jnp.float32),
      wxx_t, bxx.reshape(1, attp).astype(jnp.float32),
      aqk_t, baqk.reshape(1, two_attp).astype(jnp.float32))


def bert_attn_kernel(qkv_ref, vm_ref, o_ref, *, num_heads, head_dim, scale):
    # One batch element per grid step; all heads in-kernel; the additive
    # (1 - vms) * -10000 mask built once here (shared across heads).
    h_total = num_heads * head_dim
    add_mask = (1.0 - vm_ref[0]) * -10000.0                     # (L, L)
    ctxs = []
    for h in range(num_heads):
        q = qkv_ref[0, :, h * head_dim:(h + 1) * head_dim]
        k = qkv_ref[0, :, h_total + h * head_dim:h_total + (h + 1) * head_dim]
        v = qkv_ref[0, :, 2 * h_total + h * head_dim:2 * h_total + (h + 1) * head_dim]
        s = jnp.einsum('qd,kd->qk', q, k,
                       preferred_element_type=jnp.float32) * scale + add_mask
        s = s - jnp.max(s, axis=-1, keepdims=True)
        e = jnp.exp(s)
        p = e * pl.reciprocal(jnp.sum(e, axis=-1, keepdims=True), approx=True)
        ctxs.append(jnp.dot(p.astype(v.dtype), v,
                            preferred_element_type=jnp.float32))
    # single lane-dense store (no per-head masked partial stores)
    o_ref[0] = jnp.concatenate(ctxs, axis=-1).astype(o_ref.dtype)


def pallas_bert_attn(qkv, vms, num_heads):
    B, L, three_h = qkv.shape
    H = three_h // 3
    HD = H // num_heads
    return pl.pallas_call(
        functools.partial(bert_attn_kernel, num_heads=num_heads, head_dim=HD,
                          scale=1.0 / math.sqrt(HD)),
        out_shape=jax.ShapeDtypeStruct((B, L, H), jnp.bfloat16),
        grid=(B,),
        in_specs=[pl.BlockSpec((1, L, three_h), lambda b: (b, 0, 0)),
                  pl.BlockSpec((1, L, L), lambda b: (b, 0, 0))],
        out_specs=pl.BlockSpec((1, L, H), lambda b: (b, 0, 0)),
        compiler_params=pltpu.CompilerParams(dimension_semantics=("parallel",)),
    )(qkv, vms)


def gcn_attn_stack_kernel(qk_ref, mask_ref, syn_ref, x_ref, w_ref, wb_ref,
                          wx1_ref, wx2_ref, aggw_ref, aggb_ref, wxa_ref,
                          wxb_ref, o_ref, *, num_layers, num_heads, seq_len,
                          attp, scale):
    NH, L = num_heads, seq_len
    dkp = attp // NH
    bf = jnp.bfloat16

    # ---- fused GCN multi-head attention prologue: adjacency born in VMEM ----
    key_valid = mask_ref[0] != 0.0                       # (1, L), hoisted compare
    probs = []
    for h in range(NH):
        q = qk_ref[0, :, h * dkp:(h + 1) * dkp]
        k = qk_ref[0, :, attp + h * dkp:attp + (h + 1) * dkp]
        s = jnp.einsum('qd,kd->qk', q, k,
                       preferred_element_type=jnp.float32) * scale
        s = jnp.where(key_valid, s, -1000000000.0)       # masked_fill(mask==0)
        s = s + syn_ref[0, h]
        s = s - jnp.max(s, axis=-1, keepdims=True)
        e = jnp.exp(s)
        probs.append(e * pl.reciprocal(jnp.sum(e, axis=-1, keepdims=True),
                                       approx=True))
    adj = jnp.stack(probs, axis=0)                       # (NH, L, L) f32

    # ---- GCN stack + blockwise aggregate_W, all VMEM-resident ----
    xb = x_ref[0]                                        # (L, ATTP) bf16
    acc = jnp.dot(xb, aggw_ref[0], preferred_element_type=jnp.float32)
    for l in range(num_layers):
        # average heads BEFORE the matmul: (mean_h A_h) @ X == mean_h(A_h @ X)
        mean_adj = jnp.mean(adj, axis=0).astype(bf)      # (L, L)
        ax = jnp.dot(mean_adj, xb, preferred_element_type=jnp.float32)
        ax = jnp.dot(ax.astype(bf), w_ref[...],
                     preferred_element_type=jnp.float32) + wb_ref[...]
        x = jnp.maximum(ax, 0.0)
        xb = x.astype(bf)                                # one bf16 copy / layer
        acc = acc + jnp.dot(xb, aggw_ref[l + 1],
                            preferred_element_type=jnp.float32)

        if l < num_layers - 1:
            # Edge update (self.Wx over concat([adj, x_j, x_i])), vectorized:
            #   adj'[o,i,j] = sum_h wxa[o,h]*adj[h,i,j] + Wx1[o].x[j]
            #                 + Wx2[o].x[i] + b[o]
            # Head-mix is cheap VPU filler under the MXU matmuls; the last
            # layer's edge update is skipped (the torch forward discards it).
            t1 = jnp.einsum('od,ld->ol', wx1_ref[...], xb,
                            preferred_element_type=jnp.float32)   # (NH, L), x[j]
            t2 = jnp.einsum('od,ld->ol', wx2_ref[...], xb,
                            preferred_element_type=jnp.float32)   # (NH, L), x[i]
            mixed = jnp.sum(adj[None, :, :, :]
                            * wxa_ref[...][:, :, None, None], axis=1)
            adj = (mixed + t1[:, None, :] + t2[:, :, None]
                   + wxb_ref[...][:, :, None])

    o_ref[0] = jnp.maximum(acc + aggb_ref[...], 0.0)


def pallas_gcn_attn_stack(qk, src_mask3, syntax, x, w_t, wb, wx1, wx2,
                          aggw_stack, aggb, wxa, wxb, *, num_layers, num_heads,
                          d_k):
    B, L, two_attp = qk.shape
    attp = two_attp // 2
    return pl.pallas_call(
        functools.partial(gcn_attn_stack_kernel, num_layers=num_layers,
                          num_heads=num_heads, seq_len=L, attp=attp,
                          scale=1.0 / math.sqrt(d_k)),
        out_shape=jax.ShapeDtypeStruct((B, L, attp), jnp.float32),
        grid=(B,),
        in_specs=[pl.BlockSpec((1, L, two_attp), lambda b: (b, 0, 0)),
                  pl.BlockSpec((1, 1, L), lambda b: (b, 0, 0)),
                  pl.BlockSpec((1, num_heads, L, L), lambda b: (b, 0, 0, 0)),
                  pl.BlockSpec((1, L, attp), lambda b: (b, 0, 0)),
                  pl.BlockSpec((attp, attp), lambda b: (0, 0)),
                  pl.BlockSpec((1, attp), lambda b: (0, 0)),
                  pl.BlockSpec((num_heads, attp), lambda b: (0, 0)),
                  pl.BlockSpec((num_heads, attp), lambda b: (0, 0)),
                  pl.BlockSpec((num_layers + 1, attp, attp), lambda b: (0, 0, 0)),
                  pl.BlockSpec((1, attp), lambda b: (0, 0)),
                  pl.BlockSpec((num_heads, num_heads), lambda b: (0, 0)),
                  pl.BlockSpec((num_heads, 1), lambda b: (0, 0))],
        out_specs=pl.BlockSpec((1, L, attp), lambda b: (b, 0, 0)),
        compiler_params=pltpu.CompilerParams(
            dimension_semantics=("parallel",),
            vmem_limit_bytes=48 * 1024 * 1024),
    )(qk, src_mask3, syntax, x, w_t, wb.reshape(1, attp), wx1, wx2,
      aggw_stack, aggb.reshape(1, attp), wxa, wxb)


# ---------------------------------------------------------------------------
# Plain-JAX glue
# ---------------------------------------------------------------------------

def _ln(x, g, b, eps):
    mu = jnp.mean(x, axis=-1, keepdims=True)
    var = jnp.mean((x - mu) ** 2, axis=-1, keepdims=True)
    return g * (x - mu) / jnp.sqrt(var + eps) + b


def gcn_bert_forward(p, input_ids, label_ids, attention_mask, pos_ids, vms,
                     src_mask, syntax_matrix, *, cfg):
    del label_ids, attention_mask   # unused when vms is not None (as in torch)
    B, L = input_ids.shape
    H = cfg['bert_dim']; NH_B = cfg['bert_heads']
    NH = cfg['attention_heads']; ATT = cfg['attdim']; NL = cfg['num_layers']
    bf = jnp.bfloat16
    f32 = jnp.float32
    ATTP = _round_up(ATT, 128)
    assert ATT % NH == 0 and ATTP % NH == 0
    DK, DKP = ATT // NH, ATTP // NH

    # ---- one-time weight prep: fuse, transpose to (in, out), pad, cast ----
    qkv_w_t = jnp.concatenate([p['bq_w'], p['bk_w'], p['bv_w']], 0).T.astype(bf)
    qkv_b = jnp.concatenate([p['bq_b'], p['bk_b'], p['bv_b']], 0)
    bao_w_t = p['bao_w'].T.astype(bf)
    bi_w_t = p['bi_w'].T.astype(bf)
    bo_w_t = p['bo_w'].T.astype(bf)
    # Wxx padded to ATTP output columns (zeros -> padded features stay zero)
    wxx_w_t = jnp.zeros((H, ATTP), f32).at[:, :ATT].set(p['Wxx_w'].T).astype(bf)
    wxx_b = jnp.zeros((ATTP,), f32).at[:ATT].set(p['Wxx_b'])

    def pad_head_proj(w, b):
        # (out=ATT, in=ATT) torch weight -> (ATTP, ATTP) with each head's DK
        # columns placed at h*DKP (zero padding keeps q.k dot products exact).
        wt = jnp.zeros((ATTP, ATT), f32).at[:ATT].set(w.T)
        wt = wt.reshape(ATTP, NH, DK)
        wt = jnp.zeros((ATTP, NH, DKP), f32).at[:, :, :DK].set(wt)
        bb = jnp.zeros((NH, DKP), f32).at[:, :DK].set(b.reshape(NH, DK))
        return wt.reshape(ATTP, ATTP), bb.reshape(ATTP)

    aq_wp, aq_bp = pad_head_proj(p['aq_w'], p['aq_b'])
    ak_wp, ak_bp = pad_head_proj(p['ak_w'], p['ak_b'])
    aqk_w_t = jnp.concatenate([aq_wp, ak_wp], axis=1).astype(bf)
    aqk_b = jnp.concatenate([aq_bp, ak_bp], axis=0)

    w_w_t = jnp.zeros((ATTP, ATTP), f32).at[:ATT, :ATT].set(p['W_w'].T).astype(bf)
    w_b = jnp.zeros((ATTP,), f32).at[:ATT].set(p['W_b'])
    wx1 = jnp.zeros((NH, ATTP), f32).at[:, :ATT].set(p['Wx_1']).astype(bf)
    wx2 = jnp.zeros((NH, ATTP), f32).at[:, :ATT].set(p['Wx_2']).astype(bf)
    wxa = p['Wx_a'].astype(f32)
    wxb = p['Wx_b'].reshape(NH, 1).astype(f32)
    aggw = p['agg_w'].T.reshape(NL + 1, ATT, ATT)
    aggw_p = jnp.zeros((NL + 1, ATTP, ATTP), f32).at[:, :ATT, :ATT].set(aggw).astype(bf)
    aggb_p = jnp.zeros((ATTP,), f32).at[:ATT].set(p['agg_b'])

    # ---- BERT embeddings (synthetic stand-in; gathers stay in JAX) ----
    emb = (p['word_emb'][input_ids] + p['pos_emb'][pos_ids]
           + p['tok_emb'][0][None, None, :])
    emb = _ln(emb, p['emb_ln_g'], p['emb_ln_b'], 1e-12)
    emb2 = emb.reshape(B * L, H)
    vms_f = vms.astype(f32)

    # ---- BERT encoder: one transformer layer, fused residual+LN linears ----
    qkv = pallas_linear(emb2, qkv_w_t, qkv_b, out_dtype=bf).reshape(B, L, 3 * H)
    ctx = pallas_bert_attn(qkv, vms_f, NH_B)                       # (B,L,H) bf16
    h1 = pallas_linear_res_ln(ctx.reshape(B * L, H), emb2, bao_w_t, p['bao_b'],
                              p['aln_g'], p['aln_b'])              # f32
    inter = pallas_linear(h1, bi_w_t, p['bi_b'], act='gelu', out_dtype=bf)
    # FFN-out + residual + BERT LN + custom LN + Wxx + fused GCN q/k projection
    gi, qk = pallas_tail_fused(inter, h1, bo_w_t, p['bo_b'], p['oln_g'],
                               p['oln_b'], p['ln_a2'], p['ln_b2'],
                               wxx_w_t, wxx_b, aqk_w_t, aqk_b)
    gcn_inputs = gi.reshape(B, L, ATTP)                            # bf16
    qk3 = qk.reshape(B, L, 2 * ATTP)                               # bf16

    # ---- fused GCN attention + stack + aggregate_W (one kernel / batch) ----
    src3 = src_mask.reshape(B, 1, L).astype(f32)
    node = pallas_gcn_attn_stack(qk3, src3, syntax_matrix.astype(f32),
                                 gcn_inputs, w_w_t, w_b, wx1, wx2, aggw_p,
                                 aggb_p, wxa, wxb, num_layers=NL,
                                 num_heads=NH, d_k=DK)
    return node[..., :ATT]


# ---------------------------------------------------------------------------
# Main
# ---------------------------------------------------------------------------

if __name__ == "__main__":
    B, L = 2, 8
    VOCAB, MAXPOS = 50, 32
    cfg = dict(bert_dim=32, bert_heads=4, attention_heads=4, attdim=100,
               num_layers=2)
    H, ATT, NH = cfg['bert_dim'], cfg['attdim'], cfg['attention_heads']
    INTER = 4 * H

    keys = iter(jax.random.split(jax.random.PRNGKey(0), 64))

    def nrm(shape, scale=0.02):
        return (scale * jax.random.normal(next(keys), shape)).astype(jnp.float32)

    p = {
        # BERT embeddings
        'word_emb': nrm((VOCAB, H)), 'pos_emb': nrm((MAXPOS, H)), 'tok_emb': nrm((2, H)),
        'emb_ln_g': jnp.ones((H,), jnp.float32), 'emb_ln_b': jnp.zeros((H,), jnp.float32),
        # BERT encoder layer
        'bq_w': nrm((H, H)), 'bq_b': jnp.zeros((H,), jnp.float32),
        'bk_w': nrm((H, H)), 'bk_b': jnp.zeros((H,), jnp.float32),
        'bv_w': nrm((H, H)), 'bv_b': jnp.zeros((H,), jnp.float32),
        'bao_w': nrm((H, H)), 'bao_b': jnp.zeros((H,), jnp.float32),
        'aln_g': jnp.ones((H,), jnp.float32), 'aln_b': jnp.zeros((H,), jnp.float32),
        'bi_w': nrm((INTER, H)), 'bi_b': jnp.zeros((INTER,), jnp.float32),
        'bo_w': nrm((H, INTER)), 'bo_b': jnp.zeros((H,), jnp.float32),
        'oln_g': jnp.ones((H,), jnp.float32), 'oln_b': jnp.zeros((H,), jnp.float32),
        # GCNBert head
        'ln_a2': jnp.ones((H,), jnp.float32), 'ln_b2': jnp.zeros((H,), jnp.float32),
        'Wxx_w': nrm((ATT, H)), 'Wxx_b': jnp.zeros((ATT,), jnp.float32),
        'aq_w': nrm((ATT, ATT)), 'aq_b': jnp.zeros((ATT,), jnp.float32),
        'ak_w': nrm((ATT, ATT)), 'ak_b': jnp.zeros((ATT,), jnp.float32),
        'W_w': nrm((ATT, ATT)), 'W_b': jnp.zeros((ATT,), jnp.float32),
        # self.Wx = Linear(heads + 2*attdim -> heads), split by the concat order
        # [weight_adj (heads) | node_j (attdim) | node_i (attdim)]
        'Wx_a': nrm((NH, NH)), 'Wx_1': nrm((NH, ATT)), 'Wx_2': nrm((NH, ATT)),
        'Wx_b': jnp.zeros((NH,), jnp.float32),
        'agg_w': nrm((ATT, ATT * (cfg['num_layers'] + 1))),
        'agg_b': jnp.zeros((ATT,), jnp.float32),
    }

    kk = jax.random.split(jax.random.PRNGKey(0), 4)
    input_ids = jax.random.randint(kk[0], (B, L), 0, VOCAB, dtype=jnp.int32)
    label_ids = jnp.zeros((B,), jnp.int32)
    pos_ids = jnp.broadcast_to(jnp.arange(L, dtype=jnp.int32)[None, :], (B, L))
    src_mask = jnp.ones((B, L), jnp.float32).at[1, 6:].set(0.0)
    attention_mask = (src_mask > 0).astype(jnp.int32)
    vms = jnp.broadcast_to(src_mask[:, None, :], (B, L, L)).astype(jnp.float32)
    syntax_matrix = (0.1 * jax.random.normal(kk[1], (B, NH, L, L))).astype(jnp.float32)

    fwd = jax.jit(functools.partial(gcn_bert_forward, cfg=cfg))
    out = fwd(p, input_ids, label_ids, attention_mask, pos_ids, vms, src_mask,
              syntax_matrix)
    out = jax.block_until_ready(out)
    assert out.shape == (B, L, ATT) and out.dtype == jnp.float32
    assert bool(jnp.all(jnp.isfinite(out)))
    print("KERNEL_OK")
</pallas_src>

<mosaic_0001>
module attributes {stable_mosaic.version = 11 : i64} {
  func.func @linear_kernel(%arg0: i32, %arg1: memref<16x32xf32, #tpu.memory_space<vmem>>, %arg2: memref<32x96xbf16, #tpu.memory_space<vmem>>, %arg3: memref<1x96xf32, #tpu.memory_space<vmem>>, %arg4: memref<16x96xbf16, #tpu.memory_space<vmem>>) attributes {dimension_semantics = [#tpu.dimension_semantics<parallel>], iteration_bounds = array<i64: 1>, scalar_prefetch = 0 : i64, scratch_operands = 0 : i64, tpu.core_type = #tpu.core_type<tc>, window_params = [{transform_indices = @transform_0, window_bounds = array<i64: 16, 32>}, {pipeline_mode = #tpu.pipeline_mode<synchronous>, transform_indices = @transform_1, window_bounds = array<i64: 32, 96>}, {pipeline_mode = #tpu.pipeline_mode<synchronous>, transform_indices = @transform_2, window_bounds = array<i64: 1, 96>}, {transform_indices = @transform_3, window_bounds = array<i64: 16, 96>}]} {
    %c0 = arith.constant 0 : index
    %c0_0 = arith.constant 0 : index
    %0 = vector.load %arg1[%c0, %c0_0] : memref<16x32xf32, #tpu.memory_space<vmem>>, vector<16x32xf32>
    %1 = arith.truncf %0 : vector<16x32xf32> to vector<16x32xbf16>
    %c0_1 = arith.constant 0 : index
    %c0_2 = arith.constant 0 : index
    %2 = vector.load %arg2[%c0_1, %c0_2] : memref<32x96xbf16, #tpu.memory_space<vmem>>, vector<32x96xbf16>
    %cst = arith.constant dense<0.000000e+00> : vector<16x96xf32>
    %3 = tpu.matmul %1, %2, %cst {dimension_numbers = #tpu.dot_dimension_numbers<[1], [0], [0], [1], [0, 0, 1, 1], [], []>} : vector<16x32xbf16>, vector<32x96xbf16>, vector<16x96xf32> -> vector<16x96xf32>
    %c0_3 = arith.constant 0 : index
    %c0_4 = arith.constant 0 : index
    %4 = vector.load %arg3[%c0_3, %c0_4] : memref<1x96xf32, #tpu.memory_space<vmem>>, vector<1x96xf32>
    %5 = vector.broadcast %4 : vector<1x96xf32> to vector<16x96xf32>
    %6 = arith.addf %3, %5 : vector<16x96xf32>
    %7 = arith.truncf %6 : vector<16x96xf32> to vector<16x96xbf16>
    %c0_5 = arith.constant 0 : index
    %c0_6 = arith.constant 0 : index
    %8 = vector.load %arg4[%c0_5, %c0_6] : memref<16x96xbf16, #tpu.memory_space<vmem>>, vector<16x96xbf16>
    tpu.vector_store %arg4[%c0_5, %c0_6], %7 {strides = array<i32>} : memref<16x96xbf16, #tpu.memory_space<vmem>>, vector<16x96xbf16>,
    return
  }
  func.func @transform_0(%arg0: i32) -> (i32, i32) {
    %c0_i32 = arith.constant 0 : i32
    %c0_i32_0 = arith.constant 0 : i32
    return %arg0, %c0_i32 : i32, i32
  }
  func.func @transform_1(%arg0: i32) -> (i32, i32) {
    %c0_i32 = arith.constant 0 : i32
    %c0_i32_0 = arith.constant 0 : i32
    %c0_i32_1 = arith.constant 0 : i32
    return %c0_i32, %c0_i32_0 : i32, i32
  }
  func.func @transform_2(%arg0: i32) -> (i32, i32) {
    %c0_i32 = arith.constant 0 : i32
    %c0_i32_0 = arith.constant 0 : i32
    %c0_i32_1 = arith.constant 0 : i32
    return %c0_i32, %c0_i32_0 : i32, i32
  }
  func.func @transform_3(%arg0: i32) -> (i32, i32) {
    %c0_i32 = arith.constant 0 : i32
    %c0_i32_0 = arith.constant 0 : i32
    return %arg0, %c0_i32 : i32, i32
  }
}

module attributes {stable_mosaic.version = 11 : i64} {
  func.func @linear_kernel(%arg0: i32, %arg1: memref<16x32xf32, #tpu.memory_space<vmem>>, %arg2: memref<32x128xbf16, #tpu.memory_space<vmem>>, %arg3: memref<1x128xf32, #tpu.memory_space<vmem>>, %arg4: memref<16x128xbf16, #tpu.memory_space<vmem>>) attributes {dimension_semantics = [#tpu.dimension_semantics<parallel>], iteration_bounds = array<i64: 1>, scalar_prefetch = 0 : i64, scratch_operands = 0 : i64, tpu.core_type = #tpu.core_type<tc>, window_params = [{transform_indices = @transform_0, window_bounds = array<i64: 16, 32>}, {pipeline_mode = #tpu.pipeline_mode<synchronous>, transform_indices = @transform_1, window_bounds = array<i64: 32, 128>}, {pipeline_mode = #tpu.pipeline_mode<synchronous>, transform_indices = @transform_2, window_bounds = array<i64: 1, 128>}, {transform_indices = @transform_3, window_bounds = array<i64: 16, 128>}]} {
    %c0 = arith.constant 0 : index
    %c0_0 = arith.constant 0 : index
    %0 = vector.load %arg1[%c0, %c0_0] : memref<16x32xf32, #tpu.memory_space<vmem>>, vector<16x32xf32>
    %1 = arith.truncf %0 : vector<16x32xf32> to vector<16x32xbf16>
    %c0_1 = arith.constant 0 : index
    %c0_2 = arith.constant 0 : index
    %2 = vector.load %arg2[%c0_1, %c0_2] : memref<32x128xbf16, #tpu.memory_space<vmem>>, vector<32x128xbf16>
    %cst = arith.constant dense<0.000000e+00> : vector<16x128xf32>
    %3 = tpu.matmul %1, %2, %cst {dimension_numbers = #tpu.dot_dimension_numbers<[1], [0], [0], [1], [0, 0, 1, 1], [], []>} : vector<16x32xbf16>, vector<32x128xbf16>, vector<16x128xf32> -> vector<16x128xf32>
    %c0_3 = arith.constant 0 : index
    %c0_4 = arith.constant 0 : index
    %4 = vector.load %arg3[%c0_3, %c0_4] : memref<1x128xf32, #tpu.memory_space<vmem>>, vector<1x128xf32>
    %5 = vector.broadcast %4 : vector<1x128xf32> to vector<16x128xf32>
    %6 = arith.addf %3, %5 : vector<16x128xf32>
    %7 = arith.mulf %6, %6 : vector<16x128xf32>
    %8 = arith.mulf %6, %7 : vector<16x128xf32>
    %cst_5 = arith.constant 4.471500e-02 : f32
    %9 = vector.broadcast %cst_5 : f32 to vector<16x128xf32>
    %10 = arith.mulf %9, %8 : vector<16x128xf32>
    %11 = arith.addf %6, %10 : vector<16x128xf32>
    %cst_6 = arith.constant 0.797884583 : f32
    %12 = vector.broadcast %cst_6 : f32 to vector<16x128xf32>
    %13 = arith.mulf %12, %11 : vector<16x128xf32>
    %14 = math.tanh %13 : vector<16x128xf32>
    %cst_7 = arith.constant 1.000000e+00 : f32
    %15 = vector.broadcast %cst_7 : f32 to vector<16x128xf32>
    %16 = arith.addf %15, %14 : vector<16x128xf32>
    %cst_8 = arith.constant 5.000000e-01 : f32
    %17 = vector.broadcast %cst_8 : f32 to vector<16x128xf32>
    %18 = arith.mulf %17, %16 : vector<16x128xf32>
    %19 = arith.mulf %6, %18 : vector<16x128xf32>
    %20 = arith.truncf %19 : vector<16x128xf32> to vector<16x128xbf16>
    %c0_9 = arith.constant 0 : index
    %c0_10 = arith.constant 0 : index
    %21 = vector.load %arg4[%c0_9, %c0_10] : memref<16x128xbf16, #tpu.memory_space<vmem>>, vector<16x128xbf16>
    tpu.vector_store %arg4[%c0_9, %c0_10], %20 {strides = array<i32>} : memref<16x128xbf16, #tpu.memory_space<vmem>>, vector<16x128xbf16>,
    return
  }
  func.func @transform_0(%arg0: i32) -> (i32, i32) {
    %c0_i32 = arith.constant 0 : i32
    %c0_i32_0 = arith.constant 0 : i32
    return %arg0, %c0_i32 : i32, i32
  }
  func.func @transform_1(%arg0: i32) -> (i32, i32) {
    %c0_i32 = arith.constant 0 : i32
    %c0_i32_0 = arith.constant 0 : i32
    %c0_i32_1 = arith.constant 0 : i32
    return %c0_i32, %c0_i32_0 : i32, i32
  }
  func.func @transform_2(%arg0: i32) -> (i32, i32) {
    %c0_i32 = arith.constant 0 : i32
    %c0_i32_0 = arith.constant 0 : i32
    %c0_i32_1 = arith.constant 0 : i32
    return %c0_i32, %c0_i32_0 : i32, i32
  }
  func.func @transform_3(%arg0: i32) -> (i32, i32) {
    %c0_i32 = arith.constant 0 : i32
    %c0_i32_0 = arith.constant 0 : i32
    return %arg0, %c0_i32 : i32, i32
  }
}

module attributes {stable_mosaic.version = 11 : i64} {
  func.func @linear_res_ln_kernel(%arg0: i32, %arg1: memref<16x32xbf16, #tpu.memory_space<vmem>>, %arg2: memref<16x32xf32, #tpu.memory_space<vmem>>, %arg3: memref<32x32xbf16, #tpu.memory_space<vmem>>, %arg4: memref<1x32xf32, #tpu.memory_space<vmem>>, %arg5: memref<1x32xf32, #tpu.memory_space<vmem>>, %arg6: memref<1x32xf32, #tpu.memory_space<vmem>>, %arg7: memref<16x32xf32, #tpu.memory_space<vmem>>) attributes {dimension_semantics = [#tpu.dimension_semantics<parallel>], iteration_bounds = array<i64: 1>, scalar_prefetch = 0 : i64, scratch_operands = 0 : i64, tpu.core_type = #tpu.core_type<tc>, window_params = [{transform_indices = @transform_0, window_bounds = array<i64: 16, 32>}, {transform_indices = @transform_1, window_bounds = array<i64: 16, 32>}, {pipeline_mode = #tpu.pipeline_mode<synchronous>, transform_indices = @transform_2, window_bounds = array<i64: 32, 32>}, {pipeline_mode = #tpu.pipeline_mode<synchronous>, transform_indices = @transform_3, window_bounds = array<i64: 1, 32>}, {pipeline_mode = #tpu.pipeline_mode<synchronous>, transform_indices = @transform_4, window_bounds = array<i64: 1, 32>}, {pipeline_mode = #tpu.pipeline_mode<synchronous>, transform_indices = @transform_5, window_bounds = array<i64: 1, 32>}, {transform_indices = @transform_6, window_bounds = array<i64: 16, 32>}]} {
    %c0 = arith.constant 0 : index
    %c0_0 = arith.constant 0 : index
    %0 = vector.load %arg1[%c0, %c0_0] : memref<16x32xbf16, #tpu.memory_space<vmem>>, vector<16x32xbf16>
    %c0_1 = arith.constant 0 : index
    %c0_2 = arith.constant 0 : index
    %1 = vector.load %arg3[%c0_1, %c0_2] : memref<32x32xbf16, #tpu.memory_space<vmem>>, vector<32x32xbf16>
    %cst = arith.constant dense<0.000000e+00> : vector<16x32xf32>
    %2 = tpu.matmul %0, %1, %cst {dimension_numbers = #tpu.dot_dimension_numbers<[1], [0], [0], [1], [0, 0, 1, 1], [], []>} : vector<16x32xbf16>, vector<32x32xbf16>, vector<16x32xf32> -> vector<16x32xf32>
    %c0_3 = arith.constant 0 : index
    %c0_4 = arith.constant 0 : index
    %3 = vector.load %arg4[%c0_3, %c0_4] : memref<1x32xf32, #tpu.memory_space<vmem>>, vector<1x32xf32>
    %4 = vector.broadcast %3 : vector<1x32xf32> to vector<16x32xf32>
    %5 = arith.addf %2, %4 : vector<16x32xf32>
    %c0_5 = arith.constant 0 : index
    %c0_6 = arith.constant 0 : index
    %6 = vector.load %arg2[%c0_5, %c0_6] : memref<16x32xf32, #tpu.memory_space<vmem>>, vector<16x32xf32>
    %7 = arith.addf %5, %6 : vector<16x32xf32>
    %cst_7 = arith.constant dense<0.000000e+00> : vector<16xf32>
    %8 = vector.multi_reduction <add>, %7, %cst_7 [1] : vector<16x32xf32> to vector<16xf32>
    %9 = vector.shape_cast %8 : vector<16xf32> to vector<16x1xf32>
    %cst_8 = arith.constant 3.200000e+01 : f32
    %10 = vector.broadcast %cst_8 : f32 to vector<16x1xf32>
    %11 = arith.divf %9, %10 : vector<16x1xf32>
    %12 = vector.broadcast %11 : vector<16x1xf32> to vector<16x32xf32>
    %13 = arith.subf %7, %12 : vector<16x32xf32>
    %14 = vector.broadcast %11 : vector<16x1xf32> to vector<16x32xf32>
    %15 = arith.subf %7, %14 : vector<16x32xf32>
    %16 = arith.mulf %13, %15 : vector<16x32xf32>
    %cst_9 = arith.constant dense<0.000000e+00> : vector<16xf32>
    %17 = vector.multi_reduction <add>, %16, %cst_9 [1] : vector<16x32xf32> to vector<16xf32>
    %18 = vector.shape_cast %17 : vector<16xf32> to vector<16x1xf32>
    %cst_10 = arith.constant 3.200000e+01 : f32
    %19 = vector.broadcast %cst_10 : f32 to vector<16x1xf32>
    %20 = arith.divf %18, %19 : vector<16x1xf32>
    %c0_11 = arith.constant 0 : index
    %c0_12 = arith.constant 0 : index
    %21 = vector.load %arg5[%c0_11, %c0_12] : memref<1x32xf32, #tpu.memory_space<vmem>>, vector<1x32xf32>
    %22 = vector.broadcast %11 : vector<16x1xf32> to vector<16x32xf32>
    %23 = arith.subf %7, %22 : vector<16x32xf32>
    %24 = vector.broadcast %21 : vector<1x32xf32> to vector<16x32xf32>
    %25 = arith.mulf %24, %23 : vector<16x32xf32>
    %cst_13 = arith.constant 9.99999996E-13 : f32
    %26 = vector.broadcast %cst_13 : f32 to vector<16x1xf32>
    %27 = arith.addf %20, %26 : vector<16x1xf32>
    %28 = math.rsqrt %27 : vector<16x1xf32>
    %29 = vector.broadcast %28 : vector<16x1xf32> to vector<16x32xf32>
    %30 = arith.mulf %25, %29 : vector<16x32xf32>
    %c0_14 = arith.constant 0 : index
    %c0_15 = arith.constant 0 : index
    %31 = vector.load %arg6[%c0_14, %c0_15] : memref<1x32xf32, #tpu.memory_space<vmem>>, vector<1x32xf32>
    %32 = vector.broadcast %31 : vector<1x32xf32> to vector<16x32xf32>
    %33 = arith.addf %30, %32 : vector<16x32xf32>
    %c0_16 = arith.constant 0 : index
    %c0_17 = arith.constant 0 : index
    %34 = vector.load %arg7[%c0_16, %c0_17] : memref<16x32xf32, #tpu.memory_space<vmem>>, vector<16x32xf32>
    tpu.vector_store %arg7[%c0_16, %c0_17], %33 {strides = array<i32>} : memref<16x32xf32, #tpu.memory_space<vmem>>, vector<16x32xf32>,
    return
  }
  func.func @transform_0(%arg0: i32) -> (i32, i32) {
    %c0_i32 = arith.constant 0 : i32
    %c0_i32_0 = arith.constant 0 : i32
    return %arg0, %c0_i32 : i32, i32
  }
  func.func @transform_1(%arg0: i32) -> (i32, i32) {
    %c0_i32 = arith.constant 0 : i32
    %c0_i32_0 = arith.constant 0 : i32
    return %arg0, %c0_i32 : i32, i32
  }
  func.func @transform_2(%arg0: i32) -> (i32, i32) {
    %c0_i32 = arith.constant 0 : i32
    %c0_i32_0 = arith.constant 0 : i32
    %c0_i32_1 = arith.constant 0 : i32
    return %c0_i32, %c0_i32_0 : i32, i32
  }
  func.func @transform_3(%arg0: i32) -> (i32, i32) {
    %c0_i32 = arith.constant 0 : i32
    %c0_i32_0 = arith.constant 0 : i32
    %c0_i32_1 = arith.constant 0 : i32
    return %c0_i32, %c0_i32_0 : i32, i32
  }
  func.func @transform_4(%arg0: i32) -> (i32, i32) {
    %c0_i32 = arith.constant 0 : i32
    %c0_i32_0 = arith.constant 0 : i32
    %c0_i32_1 = arith.constant 0 : i32
    return %c0_i32, %c0_i32_0 : i32, i32
  }
  func.func @transform_5(%arg0: i32) -> (i32, i32) {
    %c0_i32 = arith.constant 0 : i32
    %c0_i32_0 = arith.constant 0 : i32
    %c0_i32_1 = arith.constant 0 : i32
    return %c0_i32, %c0_i32_0 : i32, i32
  }
  func.func @transform_6(%arg0: i32) -> (i32, i32) {
    %c0_i32 = arith.constant 0 : i32
    %c0_i32_0 = arith.constant 0 : i32
    return %arg0, %c0_i32 : i32, i32
  }
}

module attributes {stable_mosaic.version = 11 : i64} {
  func.func @bert_attn_kernel(%arg0: i32, %arg1: memref<1x8x96xbf16, #tpu.memory_space<vmem>>, %arg2: memref<1x8x8xf32, #tpu.memory_space<vmem>>, %arg3: memref<1x8x32xbf16, #tpu.memory_space<vmem>>) attributes {dimension_semantics = [#tpu.dimension_semantics<parallel>], iteration_bounds = array<i64: 2>, scalar_prefetch = 0 : i64, scratch_operands = 0 : i64, tpu.core_type = #tpu.core_type<tc>, window_params = [{transform_indices = @transform_0, window_bounds = array<i64: 1, 8, 96>}, {transform_indices = @transform_1, window_bounds = array<i64: 1, 8, 8>}, {transform_indices = @transform_2, window_bounds = array<i64: 1, 8, 32>}]} {
    %c0 = arith.constant 0 : index
    %c0_0 = arith.constant 0 : index
    %c0_1 = arith.constant 0 : index
    %0 = vector.load %arg2[%c0, %c0_0, %c0_1] : memref<1x8x8xf32, #tpu.memory_space<vmem>>, vector<1x8x8xf32>
    %1 = vector.shape_cast %0 : vector<1x8x8xf32> to vector<8x8xf32>
    %cst = arith.constant 1.000000e+00 : f32
    %2 = vector.broadcast %cst : f32 to vector<8x8xf32>
    %3 = arith.subf %2, %1 : vector<8x8xf32>
    %cst_2 = arith.constant -1.000000e+04 : f32
    %4 = vector.broadcast %cst_2 : f32 to vector<8x8xf32>
    %5 = arith.mulf %3, %4 : vector<8x8xf32>
    %c0_3 = arith.constant 0 : index
    %c0_4 = arith.constant 0 : index
    %c0_5 = arith.constant 0 : index
    %6 = vector.load %arg1[%c0_3, %c0_4, %c0_5] : memref<1x8x96xbf16, #tpu.memory_space<vmem>>, vector<1x8x8xbf16>
    %7 = vector.shape_cast %6 : vector<1x8x8xbf16> to vector<8x8xbf16>
    %c0_6 = arith.constant 0 : index
    %c0_7 = arith.constant 0 : index
    %c32 = arith.constant 32 : index
    %8 = vector.load %arg1[%c0_6, %c0_7, %c32] : memref<1x8x96xbf16, #tpu.memory_space<vmem>>, vector<1x8x8xbf16>
    %9 = vector.shape_cast %8 : vector<1x8x8xbf16> to vector<8x8xbf16>
    %c0_8 = arith.constant 0 : index
    %c0_9 = arith.constant 0 : index
    %c64 = arith.constant 64 : index
    %10 = vector.load %arg1[%c0_8, %c0_9, %c64] : memref<1x8x96xbf16, #tpu.memory_space<vmem>>, vector<1x8x8xbf16>
    %11 = vector.shape_cast %10 : vector<1x8x8xbf16> to vector<8x8xbf16>
    "tpu.trace_start"() <{level = 10 : i32, message = "qd,kd->qk"}> : () -> ()
    %cst_10 = arith.constant dense<0.000000e+00> : vector<8x8xf32>
    %12 = tpu.matmul %7, %9, %cst_10 {dimension_numbers = #tpu.dot_dimension_numbers<[1], [1], [0], [0], [0, 0, 1, 0], [], []>} : vector<8x8xbf16>, vector<8x8xbf16>, vector<8x8xf32> -> vector<8x8xf32>
    "tpu.trace_stop"() : () -> ()
    %cst_11 = arith.constant 0.353553385 : f32
    %13 = vector.broadcast %cst_11 : f32 to vector<8x8xf32>
    %14 = arith.mulf %12, %13 : vector<8x8xf32>
    %15 = arith.addf %14, %5 : vector<8x8xf32>
    %cst_12 = arith.constant dense<0xFF800000> : vector<8xf32>
    %16 = vector.multi_reduction <maximumf>, %15, %cst_12 [1] : vector<8x8xf32> to vector<8xf32>
    %17 = vector.shape_cast %16 : vector<8xf32> to vector<8x1xf32>
    %18 = vector.broadcast %17 : vector<8x1xf32> to vector<8x8xf32>
    %19 = arith.subf %15, %18 : vector<8x8xf32>
    %20 = math.exp %19 : vector<8x8xf32>
    %cst_13 = arith.constant dense<0.000000e+00> : vector<8xf32>
    %21 = vector.multi_reduction <add>, %20, %cst_13 [1] : vector<8x8xf32> to vector<8xf32>
    %22 = vector.shape_cast %21 : vector<8xf32> to vector<8x1xf32>
    %23 = tpu.reciprocal %22 {approx = true} : vector<8x1xf32> -> vector<8x1xf32>
    %24 = vector.broadcast %23 : vector<8x1xf32> to vector<8x8xf32>
    %25 = arith.mulf %20, %24 : vector<8x8xf32>
    %26 = arith.truncf %25 : vector<8x8xf32> to vector<8x8xbf16>
    %cst_14 = arith.constant dense<0.000000e+00> : vector<8x8xf32>
    %27 = tpu.matmul %26, %11, %cst_14 {dimension_numbers = #tpu.dot_dimension_numbers<[1], [0], [0], [1], [0, 0, 1, 1], [], []>} : vector<8x8xbf16>, vector<8x8xbf16>, vector<8x8xf32> -> vector<8x8xf32>
    %c0_15 = arith.constant 0 : index
    %c0_16 = arith.constant 0 : index
    %c8 = arith.constant 8 : index
    %28 = vector.load %arg1[%c0_15, %c0_16, %c8] : memref<1x8x96xbf16, #tpu.memory_space<vmem>>, vector<1x8x8xbf16>
    %29 = vector.shape_cast %28 : vector<1x8x8xbf16> to vector<8x8xbf16>
    %c0_17 = arith.constant 0 : index
    %c0_18 = arith.constant 0 : index
    %c40 = arith.constant 40 : index
    %30 = vector.load %arg1[%c0_17, %c0_18, %c40] : memref<1x8x96xbf16, #tpu.memory_space<vmem>>, vector<1x8x8xbf16>
    %31 = vector.shape_cast %30 : vector<1x8x8xbf16> to vector<8x8xbf16>
    %c0_19 = arith.constant 0 : index
    %c0_20 = arith.constant 0 : index
    %c72 = arith.constant 72 : index
    %32 = vector.load %arg1[%c0_19, %c0_20, %c72] : memref<1x8x96xbf16, #tpu.memory_space<vmem>>, vector<1x8x8xbf16>
    %33 = vector.shape_cast %32 : vector<1x8x8xbf16> to vector<8x8xbf16>
    "tpu.trace_start"() <{level = 10 : i32, message = "qd,kd->qk"}> : () -> ()
    %cst_21 = arith.constant dense<0.000000e+00> : vector<8x8xf32>
    %34 = tpu.matmul %29, %31, %cst_21 {dimension_numbers = #tpu.dot_dimension_numbers<[1], [1], [0], [0], [0, 0, 1, 0], [], []>} : vector<8x8xbf16>, vector<8x8xbf16>, vector<8x8xf32> -> vector<8x8xf32>
    "tpu.trace_stop"() : () -> ()
    %cst_22 = arith.constant 0.353553385 : f32
    %35 = vector.broadcast %cst_22 : f32 to vector<8x8xf32>
    %36 = arith.mulf %34, %35 : vector<8x8xf32>
    %37 = arith.addf %36, %5 : vector<8x8xf32>
    %cst_23 = arith.constant dense<0xFF800000> : vector<8xf32>
    %38 = vector.multi_reduction <maximumf>, %37, %cst_23 [1] : vector<8x8xf32> to vector<8xf32>
    %39 = vector.shape_cast %38 : vector<8xf32> to vector<8x1xf32>
    %40 = vector.broadcast %39 : vector<8x1xf32> to vector<8x8xf32>
    %41 = arith.subf %37, %40 : vector<8x8xf32>
    %42 = math.exp %41 : vector<8x8xf32>
    %cst_24 = arith.constant dense<0.000000e+00> : vector<8xf32>
    %43 = vector.multi_reduction <add>, %42, %cst_24 [1] : vector<8x8xf32> to vector<8xf32>
    %44 = vector.shape_cast %43 : vector<8xf32> to vector<8x1xf32>
    %45 = tpu.reciprocal %44 {approx = true} : vector<8x1xf32> -> vector<8x1xf32>
    %46 = vector.broadcast %45 : vector<8x1xf32> to vector<8x8xf32>
    %47 = arith.mulf %42, %46 : vector<8x8xf32>
    %48 = arith.truncf %47 : vector<8x8xf32> to vector<8x8xbf16>
    %cst_25 = arith.constant dense<0.000000e+00> : vector<8x8xf32>
    %49 = tpu.matmul %48, %33, %cst_25 {dimension_numbers = #tpu.dot_dimension_numbers<[1], [0], [0], [1], [0, 0, 1, 1], [], []>} : vector<8x8xbf16>, vector<8x8xbf16>, vector<8x8xf32> -> vector<8x8xf32>
    %c0_26 = arith.constant 0 : index
    %c0_27 = arith.constant 0 : index
    %c16 = arith.constant 16 : index
    %50 = vector.load %arg1[%c0_26, %c0_27, %c16] : memref<1x8x96xbf16, #tpu.memory_space<vmem>>, vector<1x8x8xbf16>
    %51 = vector.shape_cast %50 : vector<1x8x8xbf16> to vector<8x8xbf16>
    %c0_28 = arith.constant 0 : index
    %c0_29 = arith.constant 0 : index
    %c48 = arith.constant 48 : index
    %52 = vector.load %arg1[%c0_28, %c0_29, %c48] : memref<1x8x96xbf16, #tpu.memory_space<vmem>>, vector<1x8x8xbf16>
    %53 = vector.shape_cast %52 : vector<1x8x8xbf16> to vector<8x8xbf16>
    %c0_30 = arith.constant 0 : index
    %c0_31 = arith.constant 0 : index
    %c80 = arith.constant 80 : index
    %54 = vector.load %arg1[%c0_30, %c0_31, %c80] : memref<1x8x96xbf16, #tpu.memory_space<vmem>>, vector<1x8x8xbf16>
    %55 = vector.shape_cast %54 : vector<1x8x8xbf16> to vector<8x8xbf16>
    "tpu.trace_start"() <{level = 10 : i32, message = "qd,kd->qk"}> : () -> ()
    %cst_32 = arith.constant dense<0.000000e+00> : vector<8x8xf32>
    %56 = tpu.matmul %51, %53, %cst_32 {dimension_numbers = #tpu.dot_dimension_numbers<[1], [1], [0], [0], [0, 0, 1, 0], [], []>} : vector<8x8xbf16>, vector<8x8xbf16>, vector<8x8xf32> -> vector<8x8xf32>
    "tpu.trace_stop"() : () -> ()
    %cst_33 = arith.constant 0.353553385 : f32
    %57 = vector.broadcast %cst_33 : f32 to vector<8x8xf32>
    %58 = arith.mulf %56, %57 : vector<8x8xf32>
    %59 = arith.addf %58, %5 : vector<8x8xf32>
    %cst_34 = arith.constant dense<0xFF800000> : vector<8xf32>
    %60 = vector.multi_reduction <maximumf>, %59, %cst_34 [1] : vector<8x8xf32> to vector<8xf32>
    %61 = vector.shape_cast %60 : vector<8xf32> to vector<8x1xf32>
    %62 = vector.broadcast %61 : vector<8x1xf32> to vector<8x8xf32>
    %63 = arith.subf %59, %62 : vector<8x8xf32>
    %64 = math.exp %63 : vector<8x8xf32>
    %cst_35 = arith.constant dense<0.000000e+00> : vector<8xf32>
    %65 = vector.multi_reduction <add>, %64, %cst_35 [1] : vector<8x8xf32> to vector<8xf32>
    %66 = vector.shape_cast %65 : vector<8xf32> to vector<8x1xf32>
    %67 = tpu.reciprocal %66 {approx = true} : vector<8x1xf32> -> vector<8x1xf32>
    %68 = vector.broadcast %67 : vector<8x1xf32> to vector<8x8xf32>
    %69 = arith.mulf %64, %68 : vector<8x8xf32>
    %70 = arith.truncf %69 : vector<8x8xf32> to vector<8x8xbf16>
    %cst_36 = arith.constant dense<0.000000e+00> : vector<8x8xf32>
    %71 = tpu.matmul %70, %55, %cst_36 {dimension_numbers = #tpu.dot_dimension_numbers<[1], [0], [0], [1], [0, 0, 1, 1], [], []>} : vector<8x8xbf16>, vector<8x8xbf16>, vector<8x8xf32> -> vector<8x8xf32>
    %c0_37 = arith.constant 0 : index
    %c0_38 = arith.constant 0 : index
    %c24 = arith.constant 24 : index
    %72 = vector.load %arg1[%c0_37, %c0_38, %c24] : memref<1x8x96xbf16, #tpu.memory_space<vmem>>, vector<1x8x8xbf16>
    %73 = vector.shape_cast %72 : vector<1x8x8xbf16> to vector<8x8xbf16>
    %c0_39 = arith.constant 0 : index
    %c0_40 = arith.constant 0 : index
    %c56 = arith.constant 56 : index
    %74 = vector.load %arg1[%c0_39, %c0_40, %c56] : memref<1x8x96xbf16, #tpu.memory_space<vmem>>, vector<1x8x8xbf16>
    %75 = vector.shape_cast %74 : vector<1x8x8xbf16> to vector<8x8xbf16>
    %c0_41 = arith.constant 0 : index
    %c0_42 = arith.constant 0 : index
    %c88 = arith.constant 88 : index
    %76 = vector.load %arg1[%c0_41, %c0_42, %c88] : memref<1x8x96xbf16, #tpu.memory_space<vmem>>, vector<1x8x8xbf16>
    %77 = vector.shape_cast %76 : vector<1x8x8xbf16> to vector<8x8xbf16>
    "tpu.trace_start"() <{level = 10 : i32, message = "qd,kd->qk"}> : () -> ()
    %cst_43 = arith.constant dense<0.000000e+00> : vector<8x8xf32>
    %78 = tpu.matmul %73, %75, %cst_43 {dimension_numbers = #tpu.dot_dimension_numbers<[1], [1], [0], [0], [0, 0, 1, 0], [], []>} : vector<8x8xbf16>, vector<8x8xbf16>, vector<8x8xf32> -> vector<8x8xf32>
    "tpu.trace_stop"() : () -> ()
    %cst_44 = arith.constant 0.353553385 : f32
    %79 = vector.broadcast %cst_44 : f32 to vector<8x8xf32>
    %80 = arith.mulf %78, %79 : vector<8x8xf32>
    %81 = arith.addf %80, %5 : vector<8x8xf32>
    %cst_45 = arith.constant dense<0xFF800000> : vector<8xf32>
    %82 = vector.multi_reduction <maximumf>, %81, %cst_45 [1] : vector<8x8xf32> to vector<8xf32>
    %83 = vector.shape_cast %82 : vector<8xf32> to vector<8x1xf32>
    %84 = vector.broadcast %83 : vector<8x1xf32> to vector<8x8xf32>
    %85 = arith.subf %81, %84 : vector<8x8xf32>
    %86 = math.exp %85 : vector<8x8xf32>
    %cst_46 = arith.constant dense<0.000000e+00> : vector<8xf32>
    %87 = vector.multi_reduction <add>, %86, %cst_46 [1] : vector<8x8xf32> to vector<8xf32>
    %88 = vector.shape_cast %87 : vector<8xf32> to vector<8x1xf32>
    %89 = tpu.reciprocal %88 {approx = true} : vector<8x1xf32> -> vector<8x1xf32>
    %90 = vector.broadcast %89 : vector<8x1xf32> to vector<8x8xf32>
    %91 = arith.mulf %86, %90 : vector<8x8xf32>
    %92 = arith.truncf %91 : vector<8x8xf32> to vector<8x8xbf16>
    %cst_47 = arith.constant dense<0.000000e+00> : vector<8x8xf32>
    %93 = tpu.matmul %92, %77, %cst_47 {dimension_numbers = #tpu.dot_dimension_numbers<[1], [0], [0], [1], [0, 0, 1, 1], [], []>} : vector<8x8xbf16>, vector<8x8xbf16>, vector<8x8xf32> -> vector<8x8xf32>
    %94 = tpu.concatenate %27, %49, %71, %93 in 1 : vector<8x8xf32>, vector<8x8xf32>, vector<8x8xf32>, vector<8x8xf32> -> vector<8x32xf32>
    %95 = arith.truncf %94 : vector<8x32xf32> to vector<8x32xbf16>
    %c0_48 = arith.constant 0 : index
    %c0_49 = arith.constant 0 : index
    %c0_50 = arith.constant 0 : index
    %96 = vector.load %arg3[%c0_48, %c0_49, %c0_50] : memref<1x8x32xbf16, #tpu.memory_space<vmem>>, vector<1x8x32xbf16>
    %97 = vector.shape_cast %96 : vector<1x8x32xbf16> to vector<8x32xbf16>
    %98 = vector.shape_cast %95 : vector<8x32xbf16> to vector<1x8x32xbf16>
    tpu.vector_store %arg3[%c0_48, %c0_49, %c0_50], %98 {strides = array<i32>} : memref<1x8x32xbf16, #tpu.memory_space<vmem>>, vector<1x8x32xbf16>,
    return
  }
  func.func @transform_0(%arg0: i32) -> (i32, i32, i32) {
    %c0_i32 = arith.constant 0 : i32
    %c0_i32_0 = arith.constant 0 : i32
    %c0_i32_1 = arith.constant 0 : i32
    return %arg0, %c0_i32, %c0_i32_0 : i32, i32, i32
  }
  func.func @transform_1(%arg0: i32) -> (i32, i32, i32) {
    %c0_i32 = arith.constant 0 : i32
    %c0_i32_0 = arith.constant 0 : i32
    %c0_i32_1 = arith.constant 0 : i32
    return %arg0, %c0_i32, %c0_i32_0 : i32, i32, i32
  }
  func.func @transform_2(%arg0: i32) -> (i32, i32, i32) {
    %c0_i32 = arith.constant 0 : i32
    %c0_i32_0 = arith.constant 0 : i32
    %c0_i32_1 = arith.constant 0 : i32
    return %arg0, %c0_i32, %c0_i32_0 : i32, i32, i32
  }
}

module attributes {stable_mosaic.version = 11 : i64} {
  func.func @tail_fused_kernel(%arg0: i32, %arg1: memref<16x128xbf16, #tpu.memory_space<vmem>>, %arg2: memref<16x32xf32, #tpu.memory_space<vmem>>, %arg3: memref<128x32xbf16, #tpu.memory_space<vmem>>, %arg4: memref<1x32xf32, #tpu.memory_space<vmem>>, %arg5: memref<1x32xf32, #tpu.memory_space<vmem>>, %arg6: memref<1x32xf32, #tpu.memory_space<vmem>>, %arg7: memref<1x32xf32, #tpu.memory_space<vmem>>, %arg8: memref<1x32xf32, #tpu.memory_space<vmem>>, %arg9: memref<32x128xbf16, #tpu.memory_space<vmem>>, %arg10: memref<1x128xf32, #tpu.memory_space<vmem>>, %arg11: memref<128x256xbf16, #tpu.memory_space<vmem>>, %arg12: memref<1x256xf32, #tpu.memory_space<vmem>>, %arg13: memref<16x128xbf16, #tpu.memory_space<vmem>>, %arg14: memref<16x256xbf16, #tpu.memory_space<vmem>>) attributes {dimension_semantics = [#tpu.dimension_semantics<parallel>], iteration_bounds = array<i64: 1>, scalar_prefetch = 0 : i64, scratch_operands = 0 : i64, tpu.core_type = #tpu.core_type<tc>, window_params = [{transform_indices = @transform_0, window_bounds = array<i64: 16, 128>}, {transform_indices = @transform_1, window_bounds = array<i64: 16, 32>}, {pipeline_mode = #tpu.pipeline_mode<synchronous>, transform_indices = @transform_2, window_bounds = array<i64: 128, 32>}, {pipeline_mode = #tpu.pipeline_mode<synchronous>, transform_indices = @transform_3, window_bounds = array<i64: 1, 32>}, {pipeline_mode = #tpu.pipeline_mode<synchronous>, transform_indices = @transform_4, window_bounds = array<i64: 1, 32>}, {pipeline_mode = #tpu.pipeline_mode<synchronous>, transform_indices = @transform_5, window_bounds = array<i64: 1, 32>}, {pipeline_mode = #tpu.pipeline_mode<synchronous>, transform_indices = @transform_6, window_bounds = array<i64: 1, 32>}, {pipeline_mode = #tpu.pipeline_mode<synchronous>, transform_indices = @transform_7, window_bounds = array<i64: 1, 32>}, {pipeline_mode = #tpu.pipeline_mode<synchronous>, transform_indices = @transform_8, window_bounds = array<i64: 32, 128>}, {pipeline_mode = #tpu.pipeline_mode<synchronous>, transform_indices = @transform_9, window_bounds = array<i64: 1, 128>}, {pipeline_mode = #tpu.pipeline_mode<synchronous>, transform_indices = @transform_10, window_bounds = array<i64: 128, 256>}, {pipeline_mode = #tpu.pipeline_mode<synchronous>, transform_indices = @transform_11, window_bounds = array<i64: 1, 256>}, {transform_indices = @transform_12, window_bounds = array<i64: 16, 128>}, {transform_indices = @transform_13, window_bounds = array<i64: 16, 256>}]} {
    %c0 = arith.constant 0 : index
    %c0_0 = arith.constant 0 : index
    %0 = vector.load %arg1[%c0, %c0_0] : memref<16x128xbf16, #tpu.memory_space<vmem>>, vector<16x128xbf16>
    %c0_1 = arith.constant 0 : index
    %c0_2 = arith.constant 0 : index
    %1 = vector.load %arg3[%c0_1, %c0_2] : memref<128x32xbf16, #tpu.memory_space<vmem>>, vector<128x32xbf16>
    %cst = arith.constant dense<0.000000e+00> : vector<16x32xf32>
    %2 = tpu.matmul %0, %1, %cst {dimension_numbers = #tpu.dot_dimension_numbers<[1], [0], [0], [1], [0, 0, 1, 1], [], []>} : vector<16x128xbf16>, vector<128x32xbf16>, vector<16x32xf32> -> vector<16x32xf32>
    %c0_3 = arith.constant 0 : index
    %c0_4 = arith.constant 0 : index
    %3 = vector.load %arg4[%c0_3, %c0_4] : memref<1x32xf32, #tpu.memory_space<vmem>>, vector<1x32xf32>
    %4 = vector.broadcast %3 : vector<1x32xf32> to vector<16x32xf32>
    %5 = arith.addf %2, %4 : vector<16x32xf32>
    %c0_5 = arith.constant 0 : index
    %c0_6 = arith.constant 0 : index
    %6 = vector.load %arg2[%c0_5, %c0_6] : memref<16x32xf32, #tpu.memory_space<vmem>>, vector<16x32xf32>
    %7 = arith.addf %5, %6 : vector<16x32xf32>
    %cst_7 = arith.constant dense<0.000000e+00> : vector<16xf32>
    %8 = vector.multi_reduction <add>, %7, %cst_7 [1] : vector<16x32xf32> to vector<16xf32>
    %9 = vector.shape_cast %8 : vector<16xf32> to vector<16x1xf32>
    %cst_8 = arith.constant 3.200000e+01 : f32
    %10 = vector.broadcast %cst_8 : f32 to vector<16x1xf32>
    %11 = arith.divf %9, %10 : vector<16x1xf32>
    %12 = vector.broadcast %11 : vector<16x1xf32> to vector<16x32xf32>
    %13 = arith.subf %7, %12 : vector<16x32xf32>
    %14 = vector.broadcast %11 : vector<16x1xf32> to vector<16x32xf32>
    %15 = arith.subf %7, %14 : vector<16x32xf32>
    %16 = arith.mulf %13, %15 : vector<16x32xf32>
    %cst_9 = arith.constant dense<0.000000e+00> : vector<16xf32>
    %17 = vector.multi_reduction <add>, %16, %cst_9 [1] : vector<16x32xf32> to vector<16xf32>
    %18 = vector.shape_cast %17 : vector<16xf32> to vector<16x1xf32>
    %cst_10 = arith.constant 3.200000e+01 : f32
    %19 = vector.broadcast %cst_10 : f32 to vector<16x1xf32>
    %20 = arith.divf %18, %19 : vector<16x1xf32>
    %c0_11 = arith.constant 0 : index
    %c0_12 = arith.constant 0 : index
    %21 = vector.load %arg5[%c0_11, %c0_12] : memref<1x32xf32, #tpu.memory_space<vmem>>, vector<1x32xf32>
    %22 = vector.broadcast %11 : vector<16x1xf32> to vector<16x32xf32>
    %23 = arith.subf %7, %22 : vector<16x32xf32>
    %24 = vector.broadcast %21 : vector<1x32xf32> to vector<16x32xf32>
    %25 = arith.mulf %24, %23 : vector<16x32xf32>
    %cst_13 = arith.constant 9.99999996E-13 : f32
    %26 = vector.broadcast %cst_13 : f32 to vector<16x1xf32>
    %27 = arith.addf %20, %26 : vector<16x1xf32>
    %28 = math.rsqrt %27 : vector<16x1xf32>
    %29 = vector.broadcast %28 : vector<16x1xf32> to vector<16x32xf32>
    %30 = arith.mulf %25, %29 : vector<16x32xf32>
    %c0_14 = arith.constant 0 : index
    %c0_15 = arith.constant 0 : index
    %31 = vector.load %arg6[%c0_14, %c0_15] : memref<1x32xf32, #tpu.memory_space<vmem>>, vector<1x32xf32>
    %32 = vector.broadcast %31 : vector<1x32xf32> to vector<16x32xf32>
    %33 = arith.addf %30, %32 : vector<16x32xf32>
    %cst_16 = arith.constant dense<0.000000e+00> : vector<16xf32>
    %34 = vector.multi_reduction <add>, %33, %cst_16 [1] : vector<16x32xf32> to vector<16xf32>
    %35 = vector.shape_cast %34 : vector<16xf32> to vector<16x1xf32>
    %cst_17 = arith.constant 3.200000e+01 : f32
    %36 = vector.broadcast %cst_17 : f32 to vector<16x1xf32>
    %37 = arith.divf %35, %36 : vector<16x1xf32>
    %38 = vector.broadcast %37 : vector<16x1xf32> to vector<16x32xf32>
    %39 = arith.subf %33, %38 : vector<16x32xf32>
    %40 = arith.mulf %39, %39 : vector<16x32xf32>
    %cst_18 = arith.constant dense<0.000000e+00> : vector<16xf32>
    %41 = vector.multi_reduction <add>, %40, %cst_18 [1] : vector<16x32xf32> to vector<16xf32>
    %42 = vector.shape_cast %41 : vector<16xf32> to vector<16x1xf32>
    %cst_19 = arith.constant 3.100000e+01 : f32
    %43 = vector.broadcast %cst_19 : f32 to vector<16x1xf32>
    %44 = arith.divf %42, %43 : vector<16x1xf32>
    %45 = math.sqrt %44 : vector<16x1xf32>
    %c0_20 = arith.constant 0 : index
    %c0_21 = arith.constant 0 : index
    %46 = vector.load %arg7[%c0_20, %c0_21] : memref<1x32xf32, #tpu.memory_space<vmem>>, vector<1x32xf32>
    %47 = vector.broadcast %46 : vector<1x32xf32> to vector<16x32xf32>
    %48 = arith.mulf %47, %39 : vector<16x32xf32>
    %cst_22 = arith.constant 9.99999997E-7 : f32
    %49 = vector.broadcast %cst_22 : f32 to vector<16x1xf32>
    %50 = arith.addf %45, %49 : vector<16x1xf32>
    %51 = vector.broadcast %50 : vector<16x1xf32> to vector<16x32xf32>
    %52 = arith.divf %48, %51 : vector<16x32xf32>
    %c0_23 = arith.constant 0 : index
    %c0_24 = arith.constant 0 : index
    %53 = vector.load %arg8[%c0_23, %c0_24] : memref<1x32xf32, #tpu.memory_space<vmem>>, vector<1x32xf32>
    %54 = vector.broadcast %53 : vector<1x32xf32> to vector<16x32xf32>
    %55 = arith.addf %52, %54 : vector<16x32xf32>
    %56 = arith.truncf %55 : vector<16x32xf32> to vector<16x32xbf16>
    %c0_25 = arith.constant 0 : index
    %c0_26 = arith.constant 0 : index
    %57 = vector.load %arg9[%c0_25, %c0_26] : memref<32x128xbf16, #tpu.memory_space<vmem>>, vector<32x128xbf16>
    %cst_27 = arith.constant dense<0.000000e+00> : vector<16x128xf32>
    %58 = tpu.matmul %56, %57, %cst_27 {dimension_numbers = #tpu.dot_dimension_numbers<[1], [0], [0], [1], [0, 0, 1, 1], [], []>} : vector<16x32xbf16>, vector<32x128xbf16>, vector<16x128xf32> -> vector<16x128xf32>
    %c0_28 = arith.constant 0 : index
    %c0_29 = arith.constant 0 : index
    %59 = vector.load %arg10[%c0_28, %c0_29] : memref<1x128xf32, #tpu.memory_space<vmem>>, vector<1x128xf32>
    %60 = vector.broadcast %59 : vector<1x128xf32> to vector<16x128xf32>
    %61 = arith.addf %58, %60 : vector<16x128xf32>
    %62 = arith.truncf %61 : vector<16x128xf32> to vector<16x128xbf16>
    %c0_30 = arith.constant 0 : index
    %c0_31 = arith.constant 0 : index
    %63 = vector.load %arg13[%c0_30, %c0_31] : memref<16x128xbf16, #tpu.memory_space<vmem>>, vector<16x128xbf16>
    tpu.vector_store %arg13[%c0_30, %c0_31], %62 {strides = array<i32>} : memref<16x128xbf16, #tpu.memory_space<vmem>>, vector<16x128xbf16>,
    %64 = arith.truncf %61 : vector<16x128xf32> to vector<16x128xbf16>
    %c0_32 = arith.constant 0 : index
    %c0_33 = arith.constant 0 : index
    %65 = vector.load %arg11[%c0_32, %c0_33] : memref<128x256xbf16, #tpu.memory_space<vmem>>, vector<128x256xbf16>
    %cst_34 = arith.constant dense<0.000000e+00> : vector<16x256xf32>
    %66 = tpu.matmul %64, %65, %cst_34 {dimension_numbers = #tpu.dot_dimension_numbers<[1], [0], [0], [1], [0, 0, 1, 1], [], []>} : vector<16x128xbf16>, vector<128x256xbf16>, vector<16x256xf32> -> vector<16x256xf32>
    %c0_35 = arith.constant 0 : index
    %c0_36 = arith.constant 0 : index
    %67 = vector.load %arg12[%c0_35, %c0_36] : memref<1x256xf32, #tpu.memory_space<vmem>>, vector<1x256xf32>
    %68 = vector.broadcast %67 : vector<1x256xf32> to vector<16x256xf32>
    %69 = arith.addf %66, %68 : vector<16x256xf32>
    %70 = arith.truncf %69 : vector<16x256xf32> to vector<16x256xbf16>
    %c0_37 = arith.constant 0 : index
    %c0_38 = arith.constant 0 : index
    %71 = vector.load %arg14[%c0_37, %c0_38] : memref<16x256xbf16, #tpu.memory_space<vmem>>, vector<16x256xbf16>
    tpu.vector_store %arg14[%c0_37, %c0_38], %70 {strides = array<i32>} : memref<16x256xbf16, #tpu.memory_space<vmem>>, vector<16x256xbf16>,
    return
  }
  func.func @transform_0(%arg0: i32) -> (i32, i32) {
    %c0_i32 = arith.constant 0 : i32
    %c0_i32_0 = arith.constant 0 : i32
    return %arg0, %c0_i32 : i32, i32
  }
  func.func @transform_1(%arg0: i32) -> (i32, i32) {
    %c0_i32 = arith.constant 0 : i32
    %c0_i32_0 = arith.constant 0 : i32
    return %arg0, %c0_i32 : i32, i32
  }
  func.func @transform_2(%arg0: i32) -> (i32, i32) {
    %c0_i32 = arith.constant 0 : i32
    %c0_i32_0 = arith.constant 0 : i32
    %c0_i32_1 = arith.constant 0 : i32
    return %c0_i32, %c0_i32_0 : i32, i32
  }
  func.func @transform_3(%arg0: i32) -> (i32, i32) {
    %c0_i32 = arith.constant 0 : i32
    %c0_i32_0 = arith.constant 0 : i32
    %c0_i32_1 = arith.constant 0 : i32
    return %c0_i32, %c0_i32_0 : i32, i32
  }
  func.func @transform_4(%arg0: i32) -> (i32, i32) {
    %c0_i32 = arith.constant 0 : i32
    %c0_i32_0 = arith.constant 0 : i32
    %c0_i32_1 = arith.constant 0 : i32
    return %c0_i32, %c0_i32_0 : i32, i32
  }
  func.func @transform_5(%arg0: i32) -> (i32, i32) {
    %c0_i32 = arith.constant 0 : i32
    %c0_i32_0 = arith.constant 0 : i32
    %c0_i32_1 = arith.constant 0 : i32
    return %c0_i32, %c0_i32_0 : i32, i32
  }
  func.func @transform_6(%arg0: i32) -> (i32, i32) {
    %c0_i32 = arith.constant 0 : i32
    %c0_i32_0 = arith.constant 0 : i32
    %c0_i32_1 = arith.constant 0 : i32
    return %c0_i32, %c0_i32_0 : i32, i32
  }
  func.func @transform_7(%arg0: i32) -> (i32, i32) {
    %c0_i32 = arith.constant 0 : i32
    %c0_i32_0 = arith.constant 0 : i32
    %c0_i32_1 = arith.constant 0 : i32
    return %c0_i32, %c0_i32_0 : i32, i32
  }
  func.func @transform_8(%arg0: i32) -> (i32, i32) {
    %c0_i32 = arith.constant 0 : i32
    %c0_i32_0 = arith.constant 0 : i32
    %c0_i32_1 = arith.constant 0 : i32
    return %c0_i32, %c0_i32_0 : i32, i32
  }
  func.func @transform_9(%arg0: i32) -> (i32, i32) {
    %c0_i32 = arith.constant 0 : i32
    %c0_i32_0 = arith.constant 0 : i32
    %c0_i32_1 = arith.constant 0 : i32
    return %c0_i32, %c0_i32_0 : i32, i32
  }
  func.func @transform_10(%arg0: i32) -> (i32, i32) {
    %c0_i32 = arith.constant 0 : i32
    %c0_i32_0 = arith.constant 0 : i32
    %c0_i32_1 = arith.constant 0 : i32
    return %c0_i32, %c0_i32_0 : i32, i32
  }
  func.func @transform_11(%arg0: i32) -> (i32, i32) {
    %c0_i32 = arith.constant 0 : i32
    %c0_i32_0 = arith.constant 0 : i32
    %c0_i32_1 = arith.constant 0 : i32
    return %c0_i32, %c0_i32_0 : i32, i32
  }
  func.func @transform_12(%arg0: i32) -> (i32, i32) {
    %c0_i32 = arith.constant 0 : i32
    %c0_i32_0 = arith.constant 0 : i32
    return %arg0, %c0_i32 : i32, i32
  }
  func.func @transform_13(%arg0: i32) -> (i32, i32) {
    %c0_i32 = arith.constant 0 : i32
    %c0_i32_0 = arith.constant 0 : i32
    return %arg0, %c0_i32 : i32, i32
  }
}

module attributes {stable_mosaic.version = 11 : i64} {
  func.func @gcn_attn_stack_kernel(%arg0: i32, %arg1: memref<1x8x256xbf16, #tpu.memory_space<vmem>>, %arg2: memref<1x1x8xf32, #tpu.memory_space<vmem>>, %arg3: memref<1x4x8x8xf32, #tpu.memory_space<vmem>>, %arg4: memref<1x8x128xbf16, #tpu.memory_space<vmem>>, %arg5: memref<128x128xbf16, #tpu.memory_space<vmem>>, %arg6: memref<1x128xf32, #tpu.memory_space<vmem>>, %arg7: memref<4x128xbf16, #tpu.memory_space<vmem>>, %arg8: memref<4x128xbf16, #tpu.memory_space<vmem>>, %arg9: memref<3x128x128xbf16, #tpu.memory_space<vmem>>, %arg10: memref<1x128xf32, #tpu.memory_space<vmem>>, %arg11: memref<4x4xf32, #tpu.memory_space<vmem>>, %arg12: memref<4x1xf32, #tpu.memory_space<vmem>>, %arg13: memref<1x8x128xf32, #tpu.memory_space<vmem>>) attributes {dimension_semantics = [#tpu.dimension_semantics<parallel>], iteration_bounds = array<i64: 2>, scalar_prefetch = 0 : i64, scratch_operands = 0 : i64, tpu.core_type = #tpu.core_type<tc>, window_params = [{transform_indices = @transform_0, window_bounds = array<i64: 1, 8, 256>}, {transform_indices = @transform_1, window_bounds = array<i64: 1, 1, 8>}, {transform_indices = @transform_2, window_bounds = array<i64: 1, 4, 8, 8>}, {transform_indices = @transform_3, window_bounds = array<i64: 1, 8, 128>}, {pipeline_mode = #tpu.pipeline_mode<synchronous>, transform_indices = @transform_4, window_bounds = array<i64: 128, 128>}, {pipeline_mode = #tpu.pipeline_mode<synchronous>, transform_indices = @transform_5, window_bounds = array<i64: 1, 128>}, {pipeline_mode = #tpu.pipeline_mode<synchronous>, transform_indices = @transform_6, window_bounds = array<i64: 4, 128>}, {pipeline_mode = #tpu.pipeline_mode<synchronous>, transform_indices = @transform_7, window_bounds = array<i64: 4, 128>}, {pipeline_mode = #tpu.pipeline_mode<synchronous>, transform_indices = @transform_8, window_bounds = array<i64: 3, 128, 128>}, {pipeline_mode = #tpu.pipeline_mode<synchronous>, transform_indices = @transform_9, window_bounds = array<i64: 1, 128>}, {pipeline_mode = #tpu.pipeline_mode<synchronous>, transform_indices = @transform_10, window_bounds = array<i64: 4, 4>}, {pipeline_mode = #tpu.pipeline_mode<synchronous>, transform_indices = @transform_11, window_bounds = array<i64: 4, 1>}, {transform_indices = @transform_12, window_bounds = array<i64: 1, 8, 128>}]} {
    %c0 = arith.constant 0 : index
    %c0_0 = arith.constant 0 : index
    %c0_1 = arith.constant 0 : index
    %0 = vector.load %arg2[%c0, %c0_0, %c0_1] : memref<1x1x8xf32, #tpu.memory_space<vmem>>, vector<1x1x8xf32>
    %1 = vector.shape_cast %0 : vector<1x1x8xf32> to vector<1x8xf32>
    %cst = arith.constant 0.000000e+00 : f32
    %2 = vector.broadcast %cst : f32 to vector<1x8xf32>
    %3 = arith.cmpf one, %1, %2 : vector<1x8xf32>
    %c0_2 = arith.constant 0 : index
    %c0_3 = arith.constant 0 : index
    %c0_4 = arith.constant 0 : index
    %4 = vector.load %arg1[%c0_2, %c0_3, %c0_4] : memref<1x8x256xbf16, #tpu.memory_space<vmem>>, vector<1x8x32xbf16>
    %5 = vector.shape_cast %4 : vector<1x8x32xbf16> to vector<8x32xbf16>
    %c0_5 = arith.constant 0 : index
    %c0_6 = arith.constant 0 : index
    %c128 = arith.constant 128 : index
    %6 = vector.load %arg1[%c0_5, %c0_6, %c128] : memref<1x8x256xbf16, #tpu.memory_space<vmem>>, vector<1x8x32xbf16>
    %7 = vector.shape_cast %6 : vector<1x8x32xbf16> to vector<8x32xbf16>
    "tpu.trace_start"() <{level = 10 : i32, message = "qd,kd->qk"}> : () -> ()
    %cst_7 = arith.constant dense<0.000000e+00> : vector<8x8xf32>
    %8 = tpu.matmul %5, %7, %cst_7 {dimension_numbers = #tpu.dot_dimension_numbers<[1], [1], [0], [0], [0, 0, 1, 0], [], []>} : vector<8x32xbf16>, vector<8x32xbf16>, vector<8x8xf32> -> vector<8x8xf32>
    "tpu.trace_stop"() : () -> ()
    %cst_8 = arith.constant 2.000000e-01 : f32
    %9 = vector.broadcast %cst_8 : f32 to vector<8x8xf32>
    %10 = arith.mulf %8, %9 : vector<8x8xf32>
    %cst_9 = arith.constant -1.000000e+09 : f32
    %11 = vector.shape_cast %3 : vector<1x8xi1> to vector<1x8xi1>
    %12 = vector.broadcast %11 : vector<1x8xi1> to vector<8x8xi1>
    %13 = vector.broadcast %cst_9 : f32 to vector<8x8xf32>
    %14 = arith.select %12, %10, %13 : vector<8x8xi1>, vector<8x8xf32>
    %c0_10 = arith.constant 0 : index
    %c0_11 = arith.constant 0 : index
    %c0_12 = arith.constant 0 : index
    %c0_13 = arith.constant 0 : index
    %15 = vector.load %arg3[%c0_10, %c0_11, %c0_12, %c0_13] : memref<1x4x8x8xf32, #tpu.memory_space<vmem>>, vector<1x1x8x8xf32>
    %16 = vector.shape_cast %15 : vector<1x1x8x8xf32> to vector<8x8xf32>
    %17 = arith.addf %14, %16 : vector<8x8xf32>
    %cst_14 = arith.constant dense<0xFF800000> : vector<8xf32>
    %18 = vector.multi_reduction <maximumf>, %17, %cst_14 [1] : vector<8x8xf32> to vector<8xf32>
    %19 = vector.shape_cast %18 : vector<8xf32> to vector<8x1xf32>
    %20 = vector.broadcast %19 : vector<8x1xf32> to vector<8x8xf32>
    %21 = arith.subf %17, %20 : vector<8x8xf32>
    %22 = math.exp %21 : vector<8x8xf32>
    %cst_15 = arith.constant dense<0.000000e+00> : vector<8xf32>
    %23 = vector.multi_reduction <add>, %22, %cst_15 [1] : vector<8x8xf32> to vector<8xf32>
    %24 = vector.shape_cast %23 : vector<8xf32> to vector<8x1xf32>
    %25 = tpu.reciprocal %24 {approx = true} : vector<8x1xf32> -> vector<8x1xf32>
    %26 = vector.broadcast %25 : vector<8x1xf32> to vector<8x8xf32>
    %27 = arith.mulf %22, %26 : vector<8x8xf32>
    %c0_16 = arith.constant 0 : index
    %c0_17 = arith.constant 0 : index
    %c32 = arith.constant 32 : index
    %28 = vector.load %arg1[%c0_16, %c0_17, %c32] : memref<1x8x256xbf16, #tpu.memory_space<vmem>>, vector<1x8x32xbf16>
    %29 = vector.shape_cast %28 : vector<1x8x32xbf16> to vector<8x32xbf16>
    %c0_18 = arith.constant 0 : index
    %c0_19 = arith.constant 0 : index
    %c160 = arith.constant 160 : index
    %30 = vector.load %arg1[%c0_18, %c0_19, %c160] : memref<1x8x256xbf16, #tpu.memory_space<vmem>>, vector<1x8x32xbf16>
    %31 = vector.shape_cast %30 : vector<1x8x32xbf16> to vector<8x32xbf16>
    "tpu.trace_start"() <{level = 10 : i32, message = "qd,kd->qk"}> : () -> ()
    %cst_20 = arith.constant dense<0.000000e+00> : vector<8x8xf32>
    %32 = tpu.matmul %29, %31, %cst_20 {dimension_numbers = #tpu.dot_dimension_numbers<[1], [1], [0], [0], [0, 0, 1, 0], [], []>} : vector<8x32xbf16>, vector<8x32xbf16>, vector<8x8xf32> -> vector<8x8xf32>
    "tpu.trace_stop"() : () -> ()
    %cst_21 = arith.constant 2.000000e-01 : f32
    %33 = vector.broadcast %cst_21 : f32 to vector<8x8xf32>
    %34 = arith.mulf %32, %33 : vector<8x8xf32>
    %cst_22 = arith.constant -1.000000e+09 : f32
    %35 = vector.shape_cast %3 : vector<1x8xi1> to vector<1x8xi1>
    %36 = vector.broadcast %35 : vector<1x8xi1> to vector<8x8xi1>
    %37 = vector.broadcast %cst_22 : f32 to vector<8x8xf32>
    %38 = arith.select %36, %34, %37 : vector<8x8xi1>, vector<8x8xf32>
    %c0_23 = arith.constant 0 : index
    %c1 = arith.constant 1 : index
    %c0_24 = arith.constant 0 : index
    %c0_25 = arith.constant 0 : index
    %39 = vector.load %arg3[%c0_23, %c1, %c0_24, %c0_25] : memref<1x4x8x8xf32, #tpu.memory_space<vmem>>, vector<1x1x8x8xf32>
    %40 = vector.shape_cast %39 : vector<1x1x8x8xf32> to vector<8x8xf32>
    %41 = arith.addf %38, %40 : vector<8x8xf32>
    %cst_26 = arith.constant dense<0xFF800000> : vector<8xf32>
    %42 = vector.multi_reduction <maximumf>, %41, %cst_26 [1] : vector<8x8xf32> to vector<8xf32>
    %43 = vector.shape_cast %42 : vector<8xf32> to vector<8x1xf32>
    %44 = vector.broadcast %43 : vector<8x1xf32> to vector<8x8xf32>
    %45 = arith.subf %41, %44 : vector<8x8xf32>
    %46 = math.exp %45 : vector<8x8xf32>
    %cst_27 = arith.constant dense<0.000000e+00> : vector<8xf32>
    %47 = vector.multi_reduction <add>, %46, %cst_27 [1] : vector<8x8xf32> to vector<8xf32>
    %48 = vector.shape_cast %47 : vector<8xf32> to vector<8x1xf32>
    %49 = tpu.reciprocal %48 {approx = true} : vector<8x1xf32> -> vector<8x1xf32>
    %50 = vector.broadcast %49 : vector<8x1xf32> to vector<8x8xf32>
    %51 = arith.mulf %46, %50 : vector<8x8xf32>
    %c0_28 = arith.constant 0 : index
    %c0_29 = arith.constant 0 : index
    %c64 = arith.constant 64 : index
    %52 = vector.load %arg1[%c0_28, %c0_29, %c64] : memref<1x8x256xbf16, #tpu.memory_space<vmem>>, vector<1x8x32xbf16>
    %53 = vector.shape_cast %52 : vector<1x8x32xbf16> to vector<8x32xbf16>
    %c0_30 = arith.constant 0 : index
    %c0_31 = arith.constant 0 : index
    %c192 = arith.constant 192 : index
    %54 = vector.load %arg1[%c0_30, %c0_31, %c192] : memref<1x8x256xbf16, #tpu.memory_space<vmem>>, vector<1x8x32xbf16>
    %55 = vector.shape_cast %54 : vector<1x8x32xbf16> to vector<8x32xbf16>
    "tpu.trace_start"() <{level = 10 : i32, message = "qd,kd->qk"}> : () -> ()
    %cst_32 = arith.constant dense<0.000000e+00> : vector<8x8xf32>
    %56 = tpu.matmul %53, %55, %cst_32 {dimension_numbers = #tpu.dot_dimension_numbers<[1], [1], [0], [0], [0, 0, 1, 0], [], []>} : vector<8x32xbf16>, vector<8x32xbf16>, vector<8x8xf32> -> vector<8x8xf32>
    "tpu.trace_stop"() : () -> ()
    %cst_33 = arith.constant 2.000000e-01 : f32
    %57 = vector.broadcast %cst_33 : f32 to vector<8x8xf32>
    %58 = arith.mulf %56, %57 : vector<8x8xf32>
    %cst_34 = arith.constant -1.000000e+09 : f32
    %59 = vector.shape_cast %3 : vector<1x8xi1> to vector<1x8xi1>
    %60 = vector.broadcast %59 : vector<1x8xi1> to vector<8x8xi1>
    %61 = vector.broadcast %cst_34 : f32 to vector<8x8xf32>
    %62 = arith.select %60, %58, %61 : vector<8x8xi1>, vector<8x8xf32>
    %c0_35 = arith.constant 0 : index
    %c2 = arith.constant 2 : index
    %c0_36 = arith.constant 0 : index
    %c0_37 = arith.constant 0 : index
    %63 = vector.load %arg3[%c0_35, %c2, %c0_36, %c0_37] : memref<1x4x8x8xf32, #tpu.memory_space<vmem>>, vector<1x1x8x8xf32>
    %64 = vector.shape_cast %63 : vector<1x1x8x8xf32> to vector<8x8xf32>
    %65 = arith.addf %62, %64 : vector<8x8xf32>
    %cst_38 = arith.constant dense<0xFF800000> : vector<8xf32>
    %66 = vector.multi_reduction <maximumf>, %65, %cst_38 [1] : vector<8x8xf32> to vector<8xf32>
    %67 = vector.shape_cast %66 : vector<8xf32> to vector<8x1xf32>
    %68 = vector.broadcast %67 : vector<8x1xf32> to vector<8x8xf32>
    %69 = arith.subf %65, %68 : vector<8x8xf32>
    %70 = math.exp %69 : vector<8x8xf32>
    %cst_39 = arith.constant dense<0.000000e+00> : vector<8xf32>
    %71 = vector.multi_reduction <add>, %70, %cst_39 [1] : vector<8x8xf32> to vector<8xf32>
    %72 = vector.shape_cast %71 : vector<8xf32> to vector<8x1xf32>
    %73 = tpu.reciprocal %72 {approx = true} : vector<8x1xf32> -> vector<8x1xf32>
    %74 = vector.broadcast %73 : vector<8x1xf32> to vector<8x8xf32>
    %75 = arith.mulf %70, %74 : vector<8x8xf32>
    %c0_40 = arith.constant 0 : index
    %c0_41 = arith.constant 0 : index
    %c96 = arith.constant 96 : index
    %76 = vector.load %arg1[%c0_40, %c0_41, %c96] : memref<1x8x256xbf16, #tpu.memory_space<vmem>>, vector<1x8x32xbf16>
    %77 = vector.shape_cast %76 : vector<1x8x32xbf16> to vector<8x32xbf16>
    %c0_42 = arith.constant 0 : index
    %c0_43 = arith.constant 0 : index
    %c224 = arith.constant 224 : index
    %78 = vector.load %arg1[%c0_42, %c0_43, %c224] : memref<1x8x256xbf16, #tpu.memory_space<vmem>>, vector<1x8x32xbf16>
    %79 = vector.shape_cast %78 : vector<1x8x32xbf16> to vector<8x32xbf16>
    "tpu.trace_start"() <{level = 10 : i32, message = "qd,kd->qk"}> : () -> ()
    %cst_44 = arith.constant dense<0.000000e+00> : vector<8x8xf32>
    %80 = tpu.matmul %77, %79, %cst_44 {dimension_numbers = #tpu.dot_dimension_numbers<[1], [1], [0], [0], [0, 0, 1, 0], [], []>} : vector<8x32xbf16>, vector<8x32xbf16>, vector<8x8xf32> -> vector<8x8xf32>
    "tpu.trace_stop"() : () -> ()
    %cst_45 = arith.constant 2.000000e-01 : f32
    %81 = vector.broadcast %cst_45 : f32 to vector<8x8xf32>
    %82 = arith.mulf %80, %81 : vector<8x8xf32>
    %cst_46 = arith.constant -1.000000e+09 : f32
    %83 = vector.shape_cast %3 : vector<1x8xi1> to vector<1x8xi1>
    %84 = vector.broadcast %83 : vector<1x8xi1> to vector<8x8xi1>
    %85 = vector.broadcast %cst_46 : f32 to vector<8x8xf32>
    %86 = arith.select %84, %82, %85 : vector<8x8xi1>, vector<8x8xf32>
    %c0_47 = arith.constant 0 : index
    %c3 = arith.constant 3 : index
    %c0_48 = arith.constant 0 : index
    %c0_49 = arith.constant 0 : index
    %87 = vector.load %arg3[%c0_47, %c3, %c0_48, %c0_49] : memref<1x4x8x8xf32, #tpu.memory_space<vmem>>, vector<1x1x8x8xf32>
    %88 = vector.shape_cast %87 : vector<1x1x8x8xf32> to vector<8x8xf32>
    %89 = arith.addf %86, %88 : vector<8x8xf32>
    %cst_50 = arith.constant dense<0xFF800000> : vector<8xf32>
    %90 = vector.multi_reduction <maximumf>, %89, %cst_50 [1] : vector<8x8xf32> to vector<8xf32>
    %91 = vector.shape_cast %90 : vector<8xf32> to vector<8x1xf32>
    %92 = vector.broadcast %91 : vector<8x1xf32> to vector<8x8xf32>
    %93 = arith.subf %89, %92 : vector<8x8xf32>
    %94 = math.exp %93 : vector<8x8xf32>
    %cst_51 = arith.constant dense<0.000000e+00> : vector<8xf32>
    %95 = vector.multi_reduction <add>, %94, %cst_51 [1] : vector<8x8xf32> to vector<8xf32>
    %96 = vector.shape_cast %95 : vector<8xf32> to vector<8x1xf32>
    %97 = tpu.reciprocal %96 {approx = true} : vector<8x1xf32> -> vector<8x1xf32>
    %98 = vector.broadcast %97 : vector<8x1xf32> to vector<8x8xf32>
    %99 = arith.mulf %94, %98 : vector<8x8xf32>
    %100 = vector.shape_cast %27 : vector<8x8xf32> to vector<1x8x8xf32>
    %101 = vector.shape_cast %51 : vector<8x8xf32> to vector<1x8x8xf32>
    %102 = vector.shape_cast %75 : vector<8x8xf32> to vector<1x8x8xf32>
    %103 = vector.shape_cast %99 : vector<8x8xf32> to vector<1x8x8xf32>
    %104 = tpu.concatenate %100, %101, %102, %103 in 0 : vector<1x8x8xf32>, vector<1x8x8xf32>, vector<1x8x8xf32>, vector<1x8x8xf32> -> vector<4x8x8xf32>
    %c0_52 = arith.constant 0 : index
    %c0_53 = arith.constant 0 : index
    %c0_54 = arith.constant 0 : index
    %105 = vector.load %arg4[%c0_52, %c0_53, %c0_54] : memref<1x8x128xbf16, #tpu.memory_space<vmem>>, vector<1x8x128xbf16>
    %106 = vector.shape_cast %105 : vector<1x8x128xbf16> to vector<8x128xbf16>
    %c0_55 = arith.constant 0 : index
    %c0_56 = arith.constant 0 : index
    %c0_57 = arith.constant 0 : index
    %107 = vector.load %arg9[%c0_55, %c0_56, %c0_57] : memref<3x128x128xbf16, #tpu.memory_space<vmem>>, vector<1x128x128xbf16>
    %108 = vector.shape_cast %107 : vector<1x128x128xbf16> to vector<128x128xbf16>
    %cst_58 = arith.constant dense<0.000000e+00> : vector<8x128xf32>
    %109 = tpu.matmul %106, %108, %cst_58 {dimension_numbers = #tpu.dot_dimension_numbers<[1], [0], [0], [1], [0, 0, 1, 1], [], []>} : vector<8x128xbf16>, vector<128x128xbf16>, vector<8x128xf32> -> vector<8x128xf32>
    %cst_59 = arith.constant dense<0.000000e+00> : vector<8x8xf32>
    %110 = vector.multi_reduction <add>, %104, %cst_59 [0] : vector<4x8x8xf32> to vector<8x8xf32>
    %cst_60 = arith.constant 4.000000e+00 : f32
    %111 = vector.broadcast %cst_60 : f32 to vector<8x8xf32>
    %112 = arith.divf %110, %111 : vector<8x8xf32>
    %113 = arith.truncf %112 : vector<8x8xf32> to vector<8x8xbf16>
    %cst_61 = arith.constant dense<0.000000e+00> : vector<8x128xf32>
    %114 = tpu.matmul %113, %106, %cst_61 {dimension_numbers = #tpu.dot_dimension_numbers<[1], [0], [0], [1], [0, 0, 1, 1], [], []>} : vector<8x8xbf16>, vector<8x128xbf16>, vector<8x128xf32> -> vector<8x128xf32>
    %115 = arith.truncf %114 : vector<8x128xf32> to vector<8x128xbf16>
    %c0_62 = arith.constant 0 : index
    %c0_63 = arith.constant 0 : index
    %116 = vector.load %arg5[%c0_62, %c0_63] : memref<128x128xbf16, #tpu.memory_space<vmem>>, vector<128x128xbf16>
    %cst_64 = arith.constant dense<0.000000e+00> : vector<8x128xf32>
    %117 = tpu.matmul %115, %116, %cst_64 {dimension_numbers = #tpu.dot_dimension_numbers<[1], [0], [0], [1], [0, 0, 1, 1], [], []>} : vector<8x128xbf16>, vector<128x128xbf16>, vector<8x128xf32> -> vector<8x128xf32>
    %c0_65 = arith.constant 0 : index
    %c0_66 = arith.constant 0 : index
    %118 = vector.load %arg6[%c0_65, %c0_66] : memref<1x128xf32, #tpu.memory_space<vmem>>, vector<1x128xf32>
    %119 = vector.broadcast %118 : vector<1x128xf32> to vector<8x128xf32>
    %120 = arith.addf %117, %119 : vector<8x128xf32>
    %cst_67 = arith.constant 0.000000e+00 : f32
    %121 = vector.broadcast %cst_67 : f32 to vector<8x128xf32>
    %122 = arith.maximumf %120, %121 : vector<8x128xf32>
    %123 = arith.truncf %122 : vector<8x128xf32> to vector<8x128xbf16>
    %c1_68 = arith.constant 1 : index
    %c0_69 = arith.constant 0 : index
    %c0_70 = arith.constant 0 : index
    %124 = vector.load %arg9[%c1_68, %c0_69, %c0_70] : memref<3x128x128xbf16, #tpu.memory_space<vmem>>, vector<1x128x128xbf16>
    %125 = vector.shape_cast %124 : vector<1x128x128xbf16> to vector<128x128xbf16>
    %cst_71 = arith.constant dense<0.000000e+00> : vector<8x128xf32>
    %126 = tpu.matmul %123, %125, %cst_71 {dimension_numbers = #tpu.dot_dimension_numbers<[1], [0], [0], [1], [0, 0, 1, 1], [], []>} : vector<8x128xbf16>, vector<128x128xbf16>, vector<8x128xf32> -> vector<8x128xf32>
    %127 = arith.addf %109, %126 : vector<8x128xf32>
    %c0_72 = arith.constant 0 : index
    %c0_73 = arith.constant 0 : index
    %128 = vector.load %arg7[%c0_72, %c0_73] : memref<4x128xbf16, #tpu.memory_space<vmem>>, vector<4x128xbf16>
    "tpu.trace_start"() <{level = 10 : i32, message = "od,ld->ol"}> : () -> ()
    %cst_74 = arith.constant dense<0.000000e+00> : vector<4x8xf32>
    %129 = tpu.matmul %128, %123, %cst_74 {dimension_numbers = #tpu.dot_dimension_numbers<[1], [1], [0], [0], [0, 0, 1, 0], [], []>} : vector<4x128xbf16>, vector<8x128xbf16>, vector<4x8xf32> -> vector<4x8xf32>
    "tpu.trace_stop"() : () -> ()
    %c0_75 = arith.constant 0 : index
    %c0_76 = arith.constant 0 : index
    %130 = vector.load %arg8[%c0_75, %c0_76] : memref<4x128xbf16, #tpu.memory_space<vmem>>, vector<4x128xbf16>
    "tpu.trace_start"() <{level = 10 : i32, message = "od,ld->ol"}> : () -> ()
    %cst_77 = arith.constant dense<0.000000e+00> : vector<4x8xf32>
    %131 = tpu.matmul %130, %123, %cst_77 {dimension_numbers = #tpu.dot_dimension_numbers<[1], [1], [0], [0], [0, 0, 1, 0], [], []>} : vector<4x128xbf16>, vector<8x128xbf16>, vector<4x8xf32> -> vector<4x8xf32>
    "tpu.trace_stop"() : () -> ()
    %132 = vector.shape_cast %104 : vector<4x8x8xf32> to vector<1x4x8x8xf32>
    %c0_78 = arith.constant 0 : index
    %c0_79 = arith.constant 0 : index
    %133 = vector.load %arg11[%c0_78, %c0_79] : memref<4x4xf32, #tpu.memory_space<vmem>>, vector<4x4xf32>
    %134 = vector.shape_cast %133 : vector<4x4xf32> to vector<4x4x1x1xf32>
    %135 = vector.broadcast %132 : vector<1x4x8x8xf32> to vector<4x4x8x8xf32>
    %136 = vector.broadcast %134 : vector<4x4x1x1xf32> to vector<4x4x8x8xf32>
    %137 = arith.mulf %135, %136 : vector<4x4x8x8xf32>
    %cst_80 = arith.constant dense<0.000000e+00> : vector<4x8x8xf32>
    %138 = vector.multi_reduction <add>, %137, %cst_80 [1] : vector<4x4x8x8xf32> to vector<4x8x8xf32>
    %139 = vector.shape_cast %129 : vector<4x8xf32> to vector<4x1x8xf32>
    %140 = vector.broadcast %139 : vector<4x1x8xf32> to vector<4x8x8xf32>
    %141 = arith.addf %138, %140 : vector<4x8x8xf32>
    %142 = vector.shape_cast %131 : vector<4x8xf32> to vector<4x8x1xf32>
    %143 = vector.broadcast %142 : vector<4x8x1xf32> to vector<4x8x8xf32>
    %144 = arith.addf %141, %143 : vector<4x8x8xf32>
    %c0_81 = arith.constant 0 : index
    %c0_82 = arith.constant 0 : index
    %145 = vector.load %arg12[%c0_81, %c0_82] : memref<4x1xf32, #tpu.memory_space<vmem>>, vector<4x1xf32>
    %146 = vector.shape_cast %145 : vector<4x1xf32> to vector<4x1x1xf32>
    %147 = vector.broadcast %146 : vector<4x1x1xf32> to vector<4x8x8xf32>
    %148 = arith.addf %144, %147 : vector<4x8x8xf32>
    %cst_83 = arith.constant dense<0.000000e+00> : vector<8x8xf32>
    %149 = vector.multi_reduction <add>, %148, %cst_83 [0] : vector<4x8x8xf32> to vector<8x8xf32>
    %cst_84 = arith.constant 4.000000e+00 : f32
    %150 = vector.broadcast %cst_84 : f32 to vector<8x8xf32>
    %151 = arith.divf %149, %150 : vector<8x8xf32>
    %152 = arith.truncf %151 : vector<8x8xf32> to vector<8x8xbf16>
    %cst_85 = arith.constant dense<0.000000e+00> : vector<8x128xf32>
    %153 = tpu.matmul %152, %123, %cst_85 {dimension_numbers = #tpu.dot_dimension_numbers<[1], [0], [0], [1], [0, 0, 1, 1], [], []>} : vector<8x8xbf16>, vector<8x128xbf16>, vector<8x128xf32> -> vector<8x128xf32>
    %154 = arith.truncf %153 : vector<8x128xf32> to vector<8x128xbf16>
    %c0_86 = arith.constant 0 : index
    %c0_87 = arith.constant 0 : index
    %155 = vector.load %arg5[%c0_86, %c0_87] : memref<128x128xbf16, #tpu.memory_space<vmem>>, vector<128x128xbf16>
    %cst_88 = arith.constant dense<0.000000e+00> : vector<8x128xf32>
    %156 = tpu.matmul %154, %155, %cst_88 {dimension_numbers = #tpu.dot_dimension_numbers<[1], [0], [0], [1], [0, 0, 1, 1], [], []>} : vector<8x128xbf16>, vector<128x128xbf16>, vector<8x128xf32> -> vector<8x128xf32>
    %c0_89 = arith.constant 0 : index
    %c0_90 = arith.constant 0 : index
    %157 = vector.load %arg6[%c0_89, %c0_90] : memref<1x128xf32, #tpu.memory_space<vmem>>, vector<1x128xf32>
    %158 = vector.broadcast %157 : vector<1x128xf32> to vector<8x128xf32>
    %159 = arith.addf %156, %158 : vector<8x128xf32>
    %cst_91 = arith.constant 0.000000e+00 : f32
    %160 = vector.broadcast %cst_91 : f32 to vector<8x128xf32>
    %161 = arith.maximumf %159, %160 : vector<8x128xf32>
    %162 = arith.truncf %161 : vector<8x128xf32> to vector<8x128xbf16>
    %c2_92 = arith.constant 2 : index
    %c0_93 = arith.constant 0 : index
    %c0_94 = arith.constant 0 : index
    %163 = vector.load %arg9[%c2_92, %c0_93, %c0_94] : memref<3x128x128xbf16, #tpu.memory_space<vmem>>, vector<1x128x128xbf16>
    %164 = vector.shape_cast %163 : vector<1x128x128xbf16> to vector<128x128xbf16>
    %cst_95 = arith.constant dense<0.000000e+00> : vector<8x128xf32>
    %165 = tpu.matmul %162, %164, %cst_95 {dimension_numbers = #tpu.dot_dimension_numbers<[1], [0], [0], [1], [0, 0, 1, 1], [], []>} : vector<8x128xbf16>, vector<128x128xbf16>, vector<8x128xf32> -> vector<8x128xf32>
    %166 = arith.addf %127, %165 : vector<8x128xf32>
    %c0_96 = arith.constant 0 : index
    %c0_97 = arith.constant 0 : index
    %167 = vector.load %arg10[%c0_96, %c0_97] : memref<1x128xf32, #tpu.memory_space<vmem>>, vector<1x128xf32>
    %168 = vector.broadcast %167 : vector<1x128xf32> to vector<8x128xf32>
    %169 = arith.addf %166, %168 : vector<8x128xf32>
    %cst_98 = arith.constant 0.000000e+00 : f32
    %170 = vector.broadcast %cst_98 : f32 to vector<8x128xf32>
    %171 = arith.maximumf %169, %170 : vector<8x128xf32>
    %c0_99 = arith.constant 0 : index
    %c0_100 = arith.constant 0 : index
    %c0_101 = arith.constant 0 : index
    %172 = vector.load %arg13[%c0_99, %c0_100, %c0_101] : memref<1x8x128xf32, #tpu.memory_space<vmem>>, vector<1x8x128xf32>
    %173 = vector.shape_cast %172 : vector<1x8x128xf32> to vector<8x128xf32>
    %174 = vector.shape_cast %171 : vector<8x128xf32> to vector<1x8x128xf32>
    tpu.vector_store %arg13[%c0_99, %c0_100, %c0_101], %174 {strides = array<i32>} : memref<1x8x128xf32, #tpu.memory_space<vmem>>, vector<1x8x128xf32>,
    return
  }
  func.func @transform_0(%arg0: i32) -> (i32, i32, i32) {
    %c0_i32 = arith.constant 0 : i32
    %c0_i32_0 = arith.constant 0 : i32
    %c0_i32_1 = arith.constant 0 : i32
    return %arg0, %c0_i32, %c0_i32_0 : i32, i32, i32
  }
  func.func @transform_1(%arg0: i32) -> (i32, i32, i32) {
    %c0_i32 = arith.constant 0 : i32
    %c0_i32_0 = arith.constant 0 : i32
    %c0_i32_1 = arith.constant 0 : i32
    return %arg0, %c0_i32, %c0_i32_0 : i32, i32, i32
  }
  func.func @transform_2(%arg0: i32) -> (i32, i32, i32, i32) {
    %c0_i32 = arith.constant 0 : i32
    %c0_i32_0 = arith.constant 0 : i32
    %c0_i32_1 = arith.constant 0 : i32
    %c0_i32_2 = arith.constant 0 : i32
    return %arg0, %c0_i32, %c0_i32_0, %c0_i32_1 : i32, i32, i32, i32
  }
  func.func @transform_3(%arg0: i32) -> (i32, i32, i32) {
    %c0_i32 = arith.constant 0 : i32
    %c0_i32_0 = arith.constant 0 : i32
    %c0_i32_1 = arith.constant 0 : i32
    return %arg0, %c0_i32, %c0_i32_0 : i32, i32, i32
  }
  func.func @transform_4(%arg0: i32) -> (i32, i32) {
    %c0_i32 = arith.constant 0 : i32
    %c0_i32_0 = arith.constant 0 : i32
    %c0_i32_1 = arith.constant 0 : i32
    return %c0_i32, %c0_i32_0 : i32, i32
  }
  func.func @transform_5(%arg0: i32) -> (i32, i32) {
    %c0_i32 = arith.constant 0 : i32
    %c0_i32_0 = arith.constant 0 : i32
    %c0_i32_1 = arith.constant 0 : i32
    return %c0_i32, %c0_i32_0 : i32, i32
  }
  func.func @transform_6(%arg0: i32) -> (i32, i32) {
    %c0_i32 = arith.constant 0 : i32
    %c0_i32_0 = arith.constant 0 : i32
    %c0_i32_1 = arith.constant 0 : i32
    return %c0_i32, %c0_i32_0 : i32, i32
  }
  func.func @transform_7(%arg0: i32) -> (i32, i32) {
    %c0_i32 = arith.constant 0 : i32
    %c0_i32_0 = arith.constant 0 : i32
    %c0_i32_1 = arith.constant 0 : i32
    return %c0_i32, %c0_i32_0 : i32, i32
  }
  func.func @transform_8(%arg0: i32) -> (i32, i32, i32) {
    %c0_i32 = arith.constant 0 : i32
    %c0_i32_0 = arith.constant 0 : i32
    %c0_i32_1 = arith.constant 0 : i32
    %c0_i32_2 = arith.constant 0 : i32
    return %c0_i32, %c0_i32_0, %c0_i32_1 : i32, i32, i32
  }
  func.func @transform_9(%arg0: i32) -> (i32, i32) {
    %c0_i32 = arith.constant 0 : i32
    %c0_i32_0 = arith.constant 0 : i32
    %c0_i32_1 = arith.constant 0 : i32
    return %c0_i32, %c0_i32_0 : i32, i32
  }
  func.func @transform_10(%arg0: i32) -> (i32, i32) {
    %c0_i32 = arith.constant 0 : i32
    %c0_i32_0 = arith.constant 0 : i32
    %c0_i32_1 = arith.constant 0 : i32
    return %c0_i32, %c0_i32_0 : i32, i32
  }
  func.func @transform_11(%arg0: i32) -> (i32, i32) {
    %c0_i32 = arith.constant 0 : i32
    %c0_i32_0 = arith.constant 0 : i32
    %c0_i32_1 = arith.constant 0 : i32
    return %c0_i32, %c0_i32_0 : i32, i32
  }
  func.func @transform_12(%arg0: i32) -> (i32, i32, i32) {
    %c0_i32 = arith.constant 0 : i32
    %c0_i32_0 = arith.constant 0 : i32
    %c0_i32_1 = arith.constant 0 : i32
    return %arg0, %c0_i32, %c0_i32_0 : i32, i32, i32
  }
}

</mosaic_0001>

<bundles_post_ra>
// kernel: gcn_bert_forward.9
= control target key start
LH: loop header
LB: loop body
LE: loop exit
PB: predicated region body
PF: predicated region fallthrough
CT: control target
= control target key end

     0   :  { %v150_v0 = vmov 0.0   ;;  %vm151_vm0 = vmmov 0   ;;  %vm41_vm1 = vcmask 261120   ;;  %s190_s1 = inlined_call_operand.vmem [shape: bf16[32,128], index: 1, kind: input, shape index: {}]   ;;  %s191_s0 = inlined_call_operand.vmem [shape: f32[16,32], index: 0, kind: input, shape index: {}]   ;;  %s192_s2 = inlined_call_operand.vmem [shape: f32[1,128], index: 2, kind: input, shape index: {}]   ;;  %s193_s3 = inlined_call_operand.vmem [shape: bf16[16,128], index: 3, kind: output, shape index: {}]  }
   0x1   :  { %134 = vmatprep.subr.bf16.mxu0 %v150_v0  ;;  %v144_v1 = vld [vmem:[%s190_s1 + $0x8] sm:$0xff]   ;;  %138 = vmatprep.mubr.msk.bf16.mxu0 %vm151_vm0, %v150_v0  ;;  %v145_v2 = vld [vmem:[%s190_s1] sm:$0xff]  }
   0x2   :  { %135 = vmatpush3.bf16.msra.mxu0 %v144_v1  ;;  %v15_v3 = vld [vmem:[%s191_s0] sm:$0xff]  ;;  %v16_v4 = vld [vmem:[%s191_s0 + $0x8] sm:$0xff] }
   0x3   :  { %136 = vmatprep.subr.bf16.mxu0 %v150_v0  ;;  %v17_v5 = vpack.c.bf16 %v16_v4, %v15_v3  ;;  %v118_v6 = vld [vmem:[%s192_s2] ss:$0 sm:$0xff] }
   0x6   :  { %137 = vmatpush3.bf16.msra.mxu0 %v145_v2 }
   0x9   :  { %139 = vmatmul.mubr.msk.bf16.vlgmr.msra.gmra.mxu0 %vm41_vm1, %v17_v5 }
  0xc9   :  { %v79_v7 = vpop.f32.mrf.mxu0 }
  0xca   :  { %v80_v8 = vadd.f32 %v118_v6, %v79_v7 }
  0xcb   :  { %v140_v9 = vpop.f32.mrf.mxu0 }
  0xcc   :  { %v86_v10 = vmul.f32 %v80_v8, %v80_v8 }
  0xcd   :  { %v82_v11 = vpop.f32.mrf.mxu0 }
  0xce   :  { %v88_v12 = vmul.f32 %v86_v10, %v80_v8  ;;  %v83_v13 = vadd.f32 %v118_v6, %v82_v11 }
  0xcf   :  { %v141_v14 = vpop.f32.mrf.mxu0 }
  0xd0   :  { %v90_v15 = vmul.f32 0.044715, %v88_v12  ;;  %v87_v16 = vmul.f32 %v83_v13, %v83_v13 }
  0xd2   :  { %v92_v17 = vadd.f32 %v90_v15, %v80_v8  ;;  %v89_v18 = vmul.f32 %v87_v16, %v83_v13 }
  0xd4   :  { %v94_v19 = vmul.f32 0.7978846, %v92_v17  ;;  %v91_v20 = vmul.f32 0.044715, %v89_v18 }
  0xd6   :  { %146 = vtanh.f32 %v94_v19  ;;  %v93_v21 = vadd.f32 %v91_v20, %v83_v13 }
  0xd8   :  { %v95_v22 = vmul.f32 0.7978846, %v93_v21 }
  0xda   :  { %148 = vtanh.f32 %v95_v22 }
  0xe3   :  { %v147_v23 = vpop.eup %146 }
  0xe4   :  { %v98_v24 = vadd.f32 1.0, %v147_v23 }
  0xe6   :  { %v100_v26 = vmul.f32 0.5, %v98_v24 }
  0xe7   :  { %v149_v25 = vpop.eup %148 }
  0xe8   :  { %v99_v27 = vadd.f32 1.0, %v149_v25  ;;  %v102_v29 = vmul.f32 %v100_v26, %v80_v8 }
  0xea   :  { %v101_v28 = vmul.f32 0.5, %v99_v27 }
  0xec   :  { %v103_v30 = vmul.f32 %v101_v28, %v83_v13 }
  0xee   :  { %v129_v31 = vpack.c.bf16 %v103_v30, %v102_v29 }
  0xf0   :  { %130 = vst [vmem:[%s193_s3] sm:$0xff] %v129_v31  }

// kernel: gcn_bert_forward.6
= control target key start
LH: loop header
LB: loop body
LE: loop exit
PB: predicated region body
PF: predicated region fallthrough
CT: control target
= control target key end

     0   :  { %v124_v0 = vmov 0.0   ;;  %vm125_vm0 = vmmov 0   ;;  %vm41_vm1 = vcmask 261120   ;;  %vm94_vm2 = vcmask 781312   ;;  %s167_s1 = inlined_call_operand.vmem [shape: bf16[32,96], index: 1, kind: input, shape index: {}]   ;;  %s168_s0 = inlined_call_operand.vmem [shape: f32[16,32], index: 0, kind: input, shape index: {}]   ;;  %s169_s2 = inlined_call_operand.vmem [shape: f32[1,96], index: 2, kind: input, shape index: {}]   ;;  %s170_s3 = inlined_call_operand.vmem [shape: bf16[16,96], index: 3, kind: output, shape index: {}]  }
   0x1   :  { %112 = vmatprep.subr.bf16.mxu0 %v124_v0  ;;  %v122_v1 = vld [vmem:[%s167_s1 + $0x8] sm:$0xff]   ;;  %116 = vmatprep.mubr.msk.bf16.mxu0 %vm125_vm0, %v124_v0  ;;  %v123_v2 = vld [vmem:[%s167_s1] sm:$0xff]  }
   0x2   :  { %113 = vmatpush3.bf16.msra.mxu0 %v122_v1  ;;  %v15_v3 = vld [vmem:[%s168_s0] sm:$0xff]  ;;  %v16_v4 = vld [vmem:[%s168_s0 + $0x8] sm:$0xff] }
   0x3   :  { %114 = vmatprep.subr.bf16.mxu0 %v124_v0  ;;  %v17_v5 = vpack.c.bf16 %v16_v4, %v15_v3  ;;  %v101_v6 = vld [vmem:[%s169_s2] ss:$0 sm:$0xff] }
   0x6   :  { %115 = vmatpush3.bf16.msra.mxu0 %v123_v2 }
   0x9   :  { %117 = vmatmul.mubr.msk.bf16.vlgmr.msra.gmra.mxu0 %vm41_vm1, %v17_v5 }
  0xc9   :  { %v79_v7 = vpop.f32.mrf.mxu0 }
  0xca   :  { %v80_v8 = vadd.f32 %v101_v6, %v79_v7 }
  0xcb   :  { %v118_v9 = vpop.f32.mrf.mxu0 }
  0xcc   :  { %v107_v10 = vpack.c.bf16 %v80_v8, %v80_v8 }
  0xcd   :  { %v82_v11 = vpop.f32.mrf.mxu0 }
  0xce   :  { %95 = vst.msk [vmem:[%s170_s3] sm:$0xf] %vm94_vm2, %v107_v10  ;;  %v83_v12 = vadd.f32 %v101_v6, %v82_v11 }
  0xcf   :  { %v119_v13 = vpop.f32.mrf.mxu0 }
  0xd0   :  { %v108_v14 = vpack.c.bf16 %v83_v12, %v83_v12 }
  0xd2   :  { %96 = vst.msk [vmem:[%s170_s3 + $0x4] sm:$0xf] %vm94_vm2, %v108_v14 }

// kernel: gcn_bert_forward.8
= control target key start
LH: loop header
LB: loop body
LE: loop exit
PB: predicated region body
PF: predicated region fallthrough
CT: control target
= control target key end

     0   :  { %v181_v0 = vmov 0.0   ;;  %vm182_vm0 = vmmov 0   ;;  %vm54_vm1 = vcmask 261120   ;;  %s255_s2 = inlined_call_operand.vmem [shape: bf16[32,32], index: 2, kind: input, shape index: {}]   ;;  %s256_s0 = inlined_call_operand.vmem [shape: bf16[16,32], index: 0, kind: input, shape index: {}]   ;;  %s257_s3 = inlined_call_operand.vmem [shape: f32[1,32], index: 3, kind: input, shape index: {}]   ;;  %s258_s1 = inlined_call_operand.vmem [shape: f32[16,32], index: 1, kind: input, shape index: {}]   ;;  %s259_s4 = inlined_call_operand.vmem [shape: f32[1,32], index: 4, kind: input, shape index: {}]   ;;  %s260_s5 = inlined_call_operand.vmem [shape: f32[1,32], index: 5, kind: input, shape index: {}]   ;;  %s261_s6 = inlined_call_operand.vmem [shape: f32[16,32], index: 6, kind: output, shape index: {}]  }
   0x1   :  { %164 = vmatprep.subr.bf16.mxu0 %v181_v0  ;;  %v174_v1 = vld [vmem:[%s255_s2 + $0x8] sm:$0xff]   ;;  %168 = vmatprep.mubr.msk.bf16.mxu0 %vm182_vm0, %v181_v0  ;;  %v175_v2 = vld [vmem:[%s255_s2] sm:$0xff]  }
   0x2   :  { %165 = vmatpush3.bf16.msra.mxu0 %v174_v1  ;;  %v176_v3 = vld [vmem:[%s256_s0] sm:$0xff]   ;;  %v100_v11 = vld [vmem:[%s258_s1 + $0x8] sm:$0xff] }
   0x3   :  { %166 = vmatprep.subr.bf16.mxu0 %v181_v0  ;;  %v154_v4 = vld [vmem:[%s257_s3] ss:$0 sm:$0xff] }
   0x4   :  { %v99_v6 = vld [vmem:[%s258_s1] sm:$0xff] }
   0x5   :  { %v159_v33 = vld [vmem:[%s259_s4] ss:$0 sm:$0xff] }
   0x6   :  { %167 = vmatpush3.bf16.msra.mxu0 %v175_v2  ;;  %v160_v36 = vld [vmem:[%s260_s5] ss:$0 sm:$0xff] }
   0x9   :  { %169 = vmatmul.mubr.msk.bf16.vlgmr.msra.gmra.mxu0 %vm54_vm1, %v176_v3 }
  0xc9   :  { %v92_v5 = vpop.f32.mrf.mxu0 }
  0xca   :  { %v93_v7 = vadd.f32 %v154_v4, %v92_v5 }
  0xcb   :  { %v170_v8 = vpop.f32.mrf.mxu0 }
  0xcc   :  { %v101_v9 = vadd.f32 %v99_v6, %v93_v7 }
  0xcd   :  { %v95_v10 = vpop.f32.mrf.mxu0 }
  0xce   :  { %v96_v12 = vadd.f32 %v154_v4, %v95_v10  ;;  %v103_v13 = vsel %vm54_vm1, %v101_v9, 0.0 }
  0xcf   :  { %104 = vadd.xlane.f32.xlu0 %v103_v13  ;;  %v171_v14 = vpop.f32.mrf.mxu0 }
  0xd0   :  { %v102_v15 = vadd.f32 %v100_v11, %v96_v12 }
  0xd2   :  { %v106_v16 = vsel %vm54_vm1, %v102_v15, 0.0 }
  0xd3   :  { %107 = vadd.xlane.f32.xlu0 %v106_v16 }
 0x158   :  { %v105_v17 = vpop.xlane.xlu0 %104 }
 0x159   :  { %v110_v18 = vmul.f32 0.03125, %v105_v17 }
 0x15b   :  { %v112_v19 = vsub.f32 %v101_v9, %v110_v18 }
 0x15c   :  { %v108_v20 = vpop.xlane.xlu0 %107 }
 0x15d   :  { %v111_v21 = vmul.f32 0.03125, %v108_v20  ;;  %v114_v22 = vmul.f32 %v112_v19, %v112_v19  ;;  %v131_v34 = vmul.f32 %v159_v33, %v112_v19 }
 0x15f   :  { %v113_v23 = vsub.f32 %v102_v15, %v111_v21  ;;  %v116_v24 = vsel %vm54_vm1, %v114_v22, 0.0 }
 0x160   :  { %117 = vadd.xlane.f32.xlu1 %v116_v24 }
 0x161   :  { %v115_v25 = vmul.f32 %v113_v23, %v113_v23  ;;  %v132_v38 = vmul.f32 %v159_v33, %v113_v23 }
 0x163   :  { %v119_v26 = vsel %vm54_vm1, %v115_v25, 0.0 }
 0x164   :  { %120 = vadd.xlane.f32.xlu1 %v119_v26 }
 0x1e9   :  { %v118_v27 = vpop.xlane.xlu1 %117 }
 0x1ea   :  { %v122_v28 = vmul.f32 0.03125, %v118_v27 }
 0x1ec   :  { %v133_v29 = vadd.f32 1e-12, %v122_v28 }
 0x1ed   :  { %v121_v30 = vpop.xlane.xlu1 %120 }
 0x1ee   :  { %177 = vrsqrt.f32 %v133_v29  ;;  %v123_v31 = vmul.f32 0.03125, %v121_v30 }
 0x1f0   :  { %v134_v32 = vadd.f32 1e-12, %v123_v31 }
 0x1f2   :  { %179 = vrsqrt.f32 %v134_v32 }
 0x1fb   :  { %v178_v35 = vpop.eup %177 }
 0x1fc   :  { %v137_v37 = vmul.f32 %v178_v35, %v131_v34 }
 0x1fe   :  { %v146_v39 = vadd.f32 %v160_v36, %v137_v37 }
 0x1ff   :  { %v180_v40 = vpop.eup %179 }
 0x200   :  { %148 = vst.msk [vmem:[%s261_s6] sm:$0xff] %vm54_vm1, %v146_v39  ;;  %v138_v41 = vmul.f32 %v180_v40, %v132_v38 }
 0x202   :  { %v147_v42 = vadd.f32 %v160_v36, %v138_v41 }
 0x204   :  { %149 = vst.msk [vmem:[%s261_s6 + $0x8] sm:$0xff] %vm54_vm1, %v147_v42 }

// kernel: gcn_bert_forward.7
= control target key start
LH: loop header
LB: loop body
LE: loop exit
PB: predicated region body
PF: predicated region fallthrough
CT: control target
= control target key end

     0   :  { %s878_s9 = smov 0   ;;  %s985_s0 = inlined_call_operand.vmem [shape: bf16[2,8,96], index: 0, kind: input, shape index: {}]   ;;  %s986_s1 = inlined_call_operand.vmem [shape: f32[2,8,8], index: 1, kind: input, shape index: {}]   ;;  %s987_s2 = inlined_call_operand.vmem [shape: bf16[2,8,32], index: 2, kind: output, shape index: {}]  }
   0x1 LB: > { %s709_s10 = sadd.s32 4294967295, %s845_s9   ;;  %p713_p0 = scmp.ge.s32.totalorder %s845_s9, 1  ;;  %s845_s9 = sphi %s878_s9, %s12_s9  }
   0x2   : > { %p120_p1 = scmp.lt.s32.totalorder %s845_s9, 3 }
   0x4   : > { %p121_p2 = pnand %p713_p0, %p120_p1 }
   0x5   : > { %p144_p3 = scmp.lt.s32.totalorder (!%p121_p2), %s709_s10, 1  ;;  %s849_s15 = smov (!%p121_p2), 96  }
   0x6   : > { %124 = sbr.rel (%p121_p2) target bundleno = 1543 (0x607), region = 28  ;;  %s850_s16 = smov (!%p121_p2), 64  }
   0x7   : > { %s851_s17 = smov (!%p121_p2), 88   ;;  %s852_s22 = smov (!%p121_p2), 72  }
   0x8   : > { %s853_s23 = smov (!%p121_p2), 120   ;;  %s854_s24 = smov (!%p121_p2), 80  }
   0x9   : > { %s855_s25 = smov (!%p121_p2), 112   ;;  %s856_s26 = smov (!%p121_p2), 104  }
   0xa   : > { %s857_s27 = smov (!%p121_p2), 56   ;;  %s858_s28 = smov (!%p121_p2), 48  }
   0xb   : > { %v847_v0 = vmov 0.0   ;;  %vm848_vm0 = vmmov 0   ;;  %s989_s10 = smov (!%p144_p3, %s709_s10), 1  ;;  %vm166_vm1 = vcmask 64512   ;;  %vm232_vm2 = vcmask 1043456   ;;  %s859_s29 = smov 40  }
   0xc   : > { %747 = vmatprep.subr.bf16.mxu0 %v847_v0  ;;  %749 = vmatprep.mubr.msk.bf16.mxu0 %vm848_vm0, %v847_v0  ;;  %s714_s11 = sshll.u32 %s989_s10, 2  ;;  %s715_s18 = sshll.u32 %s989_s10, 3  ;;  %vm637_vm3 = vcmask 130048   ;;  %vm639_vm4 = vcmask 195584   ;;  %vm642_vm5 = vcmask 257024  }
   0xd   : > { %753 = vmatprep.subr.bf16.mxu1 %v847_v0  ;;  %755 = vmatprep.mubr.msk.bf16.mxu1 %vm848_vm0, %v847_v0  ;;  %s900_s14 = scalar_lea.vmem %s985_s0, %s714_s11  ;;  %s151_s21 = scalar_lea.vmem %s986_s1, %s715_s18 }
   0xe   : > { %v160_v1 = vld [vmem:[%s900_s14] sm:$0xf]  ;;  %s860_s30 = smov 8   ;;  %s861_s3 = smov 16  }
   0xf   : > { %v717_v2 = vcombine.low %v160_v1, %v160_v1  ;;  %v909_v5 = vld [vmem:[%s900_s14] ss:$0 sps:$4 sm:$0xff]   ;;  %s862_s4 = smov 24   ;;  %s155_s7 = scalar_lea.vmem %s987_s2, %s714_s11 }
  0x10   : > { %v157_v6 = vld [vmem:[%s151_s21] sm:$0xff] }
  0x11   : > { %164 = vrot.lane.b32.xlu0 %v717_v2, %s849_s15  ;;  %227 = vrot.lane.b32.xlu1 %v717_v2, %s850_s16  ;;  %v158_v7 = vsub.f32 1.0, %v157_v6  ;;  %v921_v16 = vld [vmem:[%s900_s14] ss:$0 sps:$4 sm:$0xff]  }
  0x12   : > { %v929_v24 = vld [vmem:[%s900_s14] ss:$0 sps:$4 sm:$0xff]  }
  0x13   : > { %v916_v8 = vmul.f32 -10000.0, %v158_v7 }
  0x15   : > { %282 = vrot.lane.b32.xlu1 %v909_v5, %s851_s17 }
  0x83   : > { %v165_v3 = vpop.permute.xlu0 %164  ;;  %v228_v17 = vpop.permute.xlu1 %227 }
  0x84   : > { %v171_v4 = vsel %vm166_vm1, %v165_v3, 0  ;;  %v234_v18 = vsel %vm232_vm2, %v228_v17, 0 }
  0x85   : > { %748 = vmatpush3.bf16.xpose.msra.mxu0 %v171_v4  ;;  %754 = vmatpush3.bf16.msra.mxu1 %v234_v18 }
  0x86   : > { %765 = vmatprep.subr.bf16.mxu0 %v847_v0  ;;  %759 = vmatprep.subr.bf16.mxu1 %v847_v0 }
  0x87   : > { %v283_v25 = vpop.permute.xlu1 %282 }
  0x88   : > { %v288_v31 = vsel %vm166_vm1, %v283_v25, 0 }
  0x8c   : > { %750 = vmatmul.mubr.msk.bf16.vlgmr.msra.gmra.mxu0 %vm166_vm1, %v160_v1 }
  0x8d   : > { %767 = vmatprep.mubr.msk.bf16.mxu0 %vm848_vm0, %v847_v0 }
 0x14c   : > { %v207_v9 = vpop.f32.mrf.mxu0 }
 0x14d   : > { %v213_v10 = vmul.f32 0.35355338, %v207_v9 }
 0x14e   : > { %v751_v11 = vpop.f32.mrf.mxu0 }
 0x14f   : > { %v214_v12 = vadd.f32 %v213_v10, %v916_v8 }
 0x150   : > { %v210_v13 = vpop.f32.mrf.mxu0 }
 0x151   : > { %v215_v14 = vsel %vm166_vm1, %v214_v12, -inf }
 0x152   : > { %216 = vmax.xlane.f32.xlu0 %v215_v14  ;;  %v752_v15 = vpop.f32.mrf.mxu0 }
 0x168   : > { %514 = vrot.lane.b32.xlu0 %v921_v16, %s852_s22 }
 0x1db   : > { %v217_v19 = vpop.xlane.xlu0 %216 }
 0x1dc   : > { %v218_v20 = vsub.f32 %v214_v12, %v217_v19 }
 0x1de   : > { %v219_v21 = vmul.f32 1.442695, %v218_v20 }
 0x1df   : > { %v515_v34 = vpop.permute.xlu0 %514 }
 0x1e0   : > { %823 = vpow2.f32 %v219_v21  ;;  %v520_v36 = vsel %vm166_vm1, %v515_v34, 0 }
 0x1ed   : > { %v824_v22 = vpop.eup %823 }
 0x1ee   : > { %v221_v23 = vsel %vm166_vm1, %v824_v22, 0.0 }
 0x1ef   : > { %222 = vadd.xlane.f32.xlu1 %v221_v23 }
 0x200   : > { %280 = vrot.lane.b32.xlu1 %v909_v5, %s853_s23 }
 0x204   : > { %398 = vrot.lane.b32.xlu1 %v929_v24, %s854_s24 }
 0x208   : > { %396 = vrot.lane.b32.xlu1 %v929_v24, %s855_s25 }
 0x20c   : > { %512 = vrot.lane.b32.xlu1 %v921_v16, %s856_s26 }
 0x278   : > { %v223_v26 = vpop.xlane.xlu1 %222 }
 0x279   : > { %825 = vrcp.f32 %v223_v26 }
 0x27c   : > { %v281_v29 = vpop.permute.xlu1 %280 }
 0x280   : > { %v399_v32 = vpop.permute.xlu1 %398 }
 0x281   : > { %v404_v33 = vsel %vm166_vm1, %v399_v32, 0 }
 0x284   : > { %v397_v35 = vpop.permute.xlu1 %396 }
 0x286   : > { %v826_v27 = vpop.eup %825 }
 0x287   : > { %v225_v28 = vmul.f32 %v826_v27, %v824_v22 }
 0x288   : > { %v513_v37 = vpop.permute.xlu1 %512 }
 0x289   : > { %v226_v30 = vpack.c.bf16 %v225_v28, %v225_v28 }
 0x28b   : > { %756 = vmatmul.mubr.msk.bf16.vlgmr.msra.gmra.mxu1 %vm166_vm1, %v226_v30 }
 0x28c   : > { %760 = vmatpush3.bf16.xpose.msra.mxu1 %v288_v31  ;;  %761 = vmatprep.mubr.msk.bf16.mxu1 %vm848_vm0, %v847_v0 }
 0x28d   : > { %771 = vmatprep.subr.bf16.mxu1 %v847_v0 }
 0x293   : > { %762 = vmatmul.mubr.msk.bf16.vlgmr.msra.gmra.mxu1 %vm166_vm1, %v281_v29 }
 0x294   : > { %772 = vmatpush3.bf16.xpose.msra.mxu1 %v404_v33  ;;  %773 = vmatprep.mubr.msk.bf16.mxu1 %vm848_vm0, %v847_v0 }
 0x295   : > { %783 = vmatprep.subr.bf16.mxu1 %v847_v0 }
 0x29b   : > { %774 = vmatmul.mubr.msk.bf16.vlgmr.msra.gmra.mxu1 %vm166_vm1, %v397_v35 }
 0x29c   : > { %784 = vmatpush3.bf16.xpose.msra.mxu1 %v520_v36  ;;  %785 = vmatprep.mubr.msk.bf16.mxu1 %vm848_vm0, %v847_v0 }
 0x2a3   : > { %786 = vmatmul.mubr.msk.bf16.vlgmr.msra.gmra.mxu1 %vm166_vm1, %v513_v37 }
 0x34b   : > { %v949_v38 = vpop.f32.mrf.mxu1 }
 0x34d   : > { %v757_v39 = vpop.f32.mrf.mxu1 }
 0x34f   : > { %v273_v40 = vpop.f32.mrf.mxu1 }
 0x351   : > { %v758_v41 = vpop.f32.mrf.mxu1 }
 0x353   : > { %v324_v42 = vpop.f32.mrf.mxu1 }
 0x354   : > { %v330_v43 = vmul.f32 0.35355338, %v324_v42 }
 0x355   : > { %v763_v44 = vpop.f32.mrf.mxu1 }
 0x356   : > { %v331_v45 = vadd.f32 %v330_v43, %v916_v8 }
 0x357   : > { %v327_v46 = vpop.f32.mrf.mxu1 }
 0x358   : > { %v332_v47 = vsel %vm166_vm1, %v331_v45, -inf }
 0x359   : > { %333 = vmax.xlane.f32.xlu1 %v332_v47  ;;  %v764_v48 = vpop.f32.mrf.mxu1 }
 0x35b   : > { %v440_v49 = vpop.f32.mrf.mxu1 }
 0x35c   : > { %v446_v50 = vmul.f32 0.35355338, %v440_v49 }
 0x35d   : > { %v775_v51 = vpop.f32.mrf.mxu1 }
 0x35e   : > { %v447_v52 = vadd.f32 %v446_v50, %v916_v8 }
 0x35f   : > { %v443_v53 = vpop.f32.mrf.mxu1 }
 0x360   : > { %v448_v54 = vsel %vm166_vm1, %v447_v52, -inf }
 0x361   : > { %449 = vmax.xlane.f32.xlu0 %v448_v54  ;;  %v776_v55 = vpop.f32.mrf.mxu1 }
 0x363   : > { %v556_v56 = vpop.f32.mrf.mxu1 }
 0x364   : > { %v562_v57 = vmul.f32 0.35355338, %v556_v56 }
 0x365   : > { %v787_v58 = vpop.f32.mrf.mxu1 }
 0x366   : > { %v563_v59 = vadd.f32 %v562_v57, %v916_v8 }
 0x367   : > { %v559_v60 = vpop.f32.mrf.mxu1 }
 0x368   : > { %v564_v61 = vsel %vm166_vm1, %v563_v59, -inf }
 0x369   : > { %565 = vmax.xlane.f32.xlu1 %v564_v61  ;;  %v788_v62 = vpop.f32.mrf.mxu1 }
 0x3e2   : > { %v334_v63 = vpop.xlane.xlu1 %333 }
 0x3e3   : > { %v335_v1 = vsub.f32 %v331_v45, %v334_v63 }
 0x3e5   : > { %v336_v2 = vmul.f32 1.442695, %v335_v1 }
 0x3e7   : > { %827 = vpow2.f32 %v336_v2 }
 0x3ea   : > { %v450_v11 = vpop.xlane.xlu0 %449 }
 0x3eb   : > { %v451_v12 = vsub.f32 %v447_v52, %v450_v11 }
 0x3ed   : > { %v452_v13 = vmul.f32 1.442695, %v451_v12 }
 0x3f2   : > { %v566_v3 = vpop.xlane.xlu1 %565 }
 0x3f3   : > { %v567_v4 = vsub.f32 %v563_v59, %v566_v3 }
 0x3f4   : > { %v828_v6 = vpop.eup %827 }
 0x3f5   : > { %v568_v7 = vmul.f32 1.442695, %v567_v4  ;;  %v338_v9 = vsel %vm166_vm1, %v828_v6, 0.0 }
 0x3f6   : > { %339 = vadd.xlane.f32.xlu1 %v338_v9 }
 0x3f7   : > { %829 = vpow2.f32 %v568_v7 }
 0x3f8   : > { %831 = vpow2.f32 %v452_v13 }
 0x404   : > { %v830_v10 = vpop.eup %829 }
 0x405   : > { %v570_v8 = vsel %vm166_vm1, %v830_v10, 0.0  ;;  %v832_v14 = vpop.eup %831 }
 0x406   : > { %571 = vadd.xlane.f32.xlu0 %v570_v8  ;;  %v454_v15 = vsel %vm166_vm1, %v832_v14, 0.0 }
 0x407   : > { %344 = vrot.lane.b32.xlu1 %v909_v5, %s857_s27 }
 0x41c   : > { %460 = vrot.lane.b32.xlu0 %v929_v24, %s858_s28 }
 0x42b   : > { %455 = vadd.xlane.f32.xlu1 %v454_v15 }
 0x43c   : > { %576 = vrot.lane.b32.xlu1 %v921_v16, %s859_s29 }
 0x47f   : > { %v340_v17 = vpop.xlane.xlu1 %339 }
 0x480   : > { %833 = vrcp.f32 %v340_v17 }
 0x483   : > { %v345_v18 = vpop.permute.xlu1 %344 }
 0x484   : > { %v350_v19 = vsel %vm232_vm2, %v345_v18, 0 }
 0x485   : > { %766 = vmatpush3.bf16.msra.mxu0 %v350_v19 }
 0x486   : > { %777 = vmatprep.subr.bf16.mxu0 %v847_v0 }
 0x48d   : > { %v834_v5 = vpop.eup %833 }
 0x48e   : > { %v342_v20 = vmul.f32 %v834_v5, %v828_v6 }
 0x48f   : > { %v572_v21 = vpop.xlane.xlu0 %571 }
 0x490   : > { %v343_v22 = vpack.c.bf16 %v342_v20, %v342_v20 }
 0x492   : > { %768 = vmatmul.mubr.msk.bf16.vlgmr.msra.gmra.mxu0 %vm166_vm1, %v343_v22 }
 0x493   : > { %v461_v23 = vpop.permute.xlu0 %460  ;;  %779 = vmatprep.mubr.msk.bf16.mxu0 %vm848_vm0, %v847_v0 }
 0x494   : > { %v466_v16 = vsel %vm232_vm2, %v461_v23, 0 }
 0x495   : > { %778 = vmatpush3.bf16.msra.mxu0 %v466_v16 }
 0x496   : > { %789 = vmatprep.subr.bf16.mxu0 %v847_v0 }
 0x4b4   : > { %v456_v24 = vpop.xlane.xlu1 %455 }
 0x4b5   : > { %835 = vrcp.f32 %v456_v24 }
 0x4b6   : > { %837 = vrcp.f32 %v572_v21 }
 0x4b8   : > { %v577_v26 = vpop.permute.xlu1 %576 }
 0x4b9   : > { %v582_v28 = vsel %vm232_vm2, %v577_v26, 0 }
 0x4c2   : > { %v836_v25 = vpop.eup %835 }
 0x4c3   : > { %v458_v27 = vmul.f32 %v836_v25, %v832_v14  ;;  %v838_v30 = vpop.eup %837 }
 0x4c4   : > { %v574_v31 = vmul.f32 %v838_v30, %v830_v10 }
 0x4c5   : > { %v459_v29 = vpack.c.bf16 %v458_v27, %v458_v27 }
 0x4c6   : > { %v575_v32 = vpack.c.bf16 %v574_v31, %v574_v31 }
 0x4c7   : > { %780 = vmatmul.mubr.msk.bf16.vlgmr.msra.gmra.mxu0 %vm166_vm1, %v459_v29 }
 0x4c8   : > { %790 = vmatpush3.bf16.msra.mxu0 %v582_v28  ;;  %791 = vmatprep.mubr.msk.bf16.mxu0 %vm848_vm0, %v847_v0 }
 0x4cf   : > { %792 = vmatmul.mubr.msk.bf16.vlgmr.msra.gmra.mxu0 %vm166_vm1, %v575_v32 }
 0x552   : > { %v386_v33 = vpop.f32.mrf.mxu0 }
 0x553   : > { %625 = vrot.lane.b32.xlu1 %v386_v33, %s860_s30 }
 0x554   : > { %v769_v34 = vpop.f32.mrf.mxu0 }
 0x556   : > { %v389_v35 = vpop.f32.mrf.mxu0 }
 0x558   : > { %v770_v36 = vpop.f32.mrf.mxu0 }
 0x587   : > { %v502_v37 = vpop.f32.mrf.mxu0 }
 0x588   : > { %629 = vrot.lane.b32.xlu0 %v502_v37, %s861_s3 }
 0x589   : > { %v781_v39 = vpop.f32.mrf.mxu0 }
 0x58b   : > { %v505_v40 = vpop.f32.mrf.mxu0 }
 0x58d   : > { %v782_v41 = vpop.f32.mrf.mxu0 }
 0x58f   : > { %v618_v42 = vpop.f32.mrf.mxu0 }
 0x590   : > { %633 = vrot.lane.b32.xlu1 %v618_v42, %s862_s4 }
 0x591   : > { %v793_v0 = vpop.f32.mrf.mxu0 }
 0x593   : > { %v621_v43 = vpop.f32.mrf.mxu0 }
 0x595   : > { %v794_v44 = vpop.f32.mrf.mxu0 }
 0x5c5   : > { %v626_v45 = vpop.permute.xlu1 %625 }
 0x5c6   : > { %v636_v47 = vsel %vm166_vm1, %v949_v38, %v626_v45 }
 0x5fa   : > { %v630_v46 = vpop.permute.xlu0 %629 }
 0x5fb   : > { %v638_v48 = vsel %vm637_vm3, %v636_v47, %v630_v46 }
 0x602   : > { %v634_v49 = vpop.permute.xlu1 %633 }
 0x603   : > { %v640_v50 = vsel %vm639_vm4, %v638_v48, %v634_v49 }
 0x604   : > { %v641_v51 = vpack.c.bf16 %v640_v50, %v640_v50 }
 0x606   : > { %643 = vst.msk [vmem:[%s155_s7] sm:$0xf] %vm642_vm5, %v641_v51 }
 0x607 PF: > { %s12_s9 = sadd.s32 1, %s845_s9  }
 0x608   : > { %p9_p4 = scmp.ge.s32.totalorder %s12_s9, 4  }
 0x60a   :  { %11 = sbr.rel (!%p9_p4) target bundleno = 1 (0x1), region = 61 }

// kernel: gcn_bert_forward.10
= control target key start
LH: loop header
LB: loop body
LE: loop exit
PB: predicated region body
PF: predicated region fallthrough
CT: control target
= control target key end

     0   :  { %v661_v0 = vmov 0.0   ;;  %vm662_vm0 = vmmov 0   ;;  %vm168_vm1 = vcmask 261120   ;;  %s872_s2 = inlined_call_operand.vmem [shape: bf16[128,32], index: 2, kind: input, shape index: {}]   ;;  %s873_s0 = inlined_call_operand.vmem [shape: bf16[16,128], index: 0, kind: input, shape index: {}]   ;;  %s874_s3 = inlined_call_operand.vmem [shape: f32[1,32], index: 3, kind: input, shape index: {}]   ;;  %s875_s1 = inlined_call_operand.vmem [shape: f32[16,32], index: 1, kind: input, shape index: {}]   ;;  %s876_s4 = inlined_call_operand.vmem [shape: f32[1,32], index: 4, kind: input, shape index: {}]   ;;  %s877_s5 = inlined_call_operand.vmem [shape: f32[1,32], index: 5, kind: input, shape index: {}]   ;;  %s878_s8 = inlined_call_operand.vmem [shape: bf16[32,128], index: 8, kind: input, shape index: {}]   ;;  %s879_s10 = inlined_call_operand.vmem [shape: bf16[128,256], index: 10, kind: input, shape index: {}]   ;;  %s880_s6 = inlined_call_operand.vmem [shape: f32[1,32], index: 6, kind: input, shape index: {}]   ;;  %s881_s7 = inlined_call_operand.vmem [shape: f32[1,32], index: 7, kind: input, shape index: {}]   ;;  %s882_s9 = inlined_call_operand.vmem [shape: f32[1,128], index: 9, kind: input, shape index: {}]   ;;  %s883_s12 = inlined_call_operand.vmem [shape: bf16[16,128], index: 12, kind: output, shape index: {0}]   ;;  %s884_s11 = inlined_call_operand.vmem [shape: f32[1,256], index: 11, kind: input, shape index: {}]   ;;  %s885_s13 = inlined_call_operand.vmem [shape: bf16[16,256], index: 13, kind: output, shape index: {1}]  }
   0x1   :  { %583 = vmatprep.subr.bf16.mxu0 %v661_v0  ;;  %v614_v1 = vld [vmem:[%s872_s2 + $0x38] sm:$0xff]   ;;  %599 = vmatprep.mubr.msk.bf16.mxu0 %vm662_vm0, %v661_v0  ;;  %v615_v2 = vld [vmem:[%s872_s2 + $0x30] sm:$0xff]   ;;  %v616_v3 = vld [vmem:[%s872_s2 + $0x28] sm:$0xff]  }
   0x2   :  { %603 = vmatprep.subr.bf16.mxu1 %v661_v0  ;;  %607 = vmatprep.mubr.msk.bf16.mxu1 %vm662_vm0, %v661_v0  ;;  %v617_v4 = vld [vmem:[%s872_s2 + $0x20] sm:$0xff]   ;;  %v618_v5 = vld [vmem:[%s872_s2 + $0x18] sm:$0xff]   ;;  %v619_v6 = vld [vmem:[%s872_s2 + $0x10] sm:$0xff]  }
   0x3   :  { %584 = vmatpush3.bf16.msra.mxu0 %v614_v1  ;;  %v620_v7 = vld [vmem:[%s872_s2 + $0x8] sm:$0xff]   ;;  %v621_v8 = vld [vmem:[%s872_s2] sm:$0xff]   ;;  %v627_v63 = vld [vmem:[%s879_s10 + $0x74] ss:$8 sps:$4 sm:$0xff]  }
   0x4   :  { %585 = vmatprep.subr.bf16.mxu0 %v661_v0  ;;  %v622_v9 = vld [vmem:[%s873_s0] sm:$0xff]   ;;  %v165_v17 = vld [vmem:[%s875_s1 + $0x8] sm:$0xff] }
   0x5   :  { %v524_v10 = vld [vmem:[%s874_s3] ss:$0 sm:$0xff]  ;;  %v623_v61 = vld [vmem:[%s878_s8 + $0x8] sm:$0xff]  }
   0x6   :  { %v164_v12 = vld [vmem:[%s875_s1] sm:$0xff]  ;;  %604 = vmatpush3.bf16.msra.mxu1 %v623_v61 }
   0x7   :  { %586 = vmatpush3.bf16.msra.mxu0 %v615_v2  ;;  %v534_v39 = vld [vmem:[%s876_s4] ss:$0 sm:$0xff]  ;;  %605 = vmatprep.subr.bf16.mxu1 %v661_v0 }
   0x8   :  { %587 = vmatprep.subr.bf16.mxu0 %v661_v0  ;;  %v535_v42 = vld [vmem:[%s877_s5] ss:$0 sm:$0xff] }
   0x9   :  { %v624_v62 = vld [vmem:[%s878_s8] sm:$0xff]  }
   0xa   :  { %606 = vmatpush3.bf16.msra.mxu1 %v624_v62 }
   0xb   :  { %588 = vmatpush3.bf16.msra.mxu0 %v616_v3  ;;  %459 = vmatprep.subr.bf16.mxu1 %v627_v63 }
   0xc   :  { %589 = vmatprep.subr.bf16.mxu0 %v661_v0 }
   0xf   :  { %590 = vmatpush3.bf16.msra.mxu0 %v617_v4 }
  0x10   :  { %591 = vmatprep.subr.bf16.mxu0 %v661_v0 }
  0x13   :  { %592 = vmatpush3.bf16.msra.mxu0 %v618_v5 }
  0x14   :  { %593 = vmatprep.subr.bf16.mxu0 %v661_v0 }
  0x17   :  { %594 = vmatpush3.bf16.msra.mxu0 %v619_v6 }
  0x18   :  { %595 = vmatprep.subr.bf16.mxu0 %v661_v0 }
  0x1b   :  { %596 = vmatpush3.bf16.msra.mxu0 %v620_v7 }
  0x1c   :  { %597 = vmatprep.subr.bf16.mxu0 %v661_v0 }
  0x1f   :  { %598 = vmatpush3.bf16.msra.mxu0 %v621_v8 }
  0x22   :  { %600 = vmatmul.mubr.bf16.vlgmr.msra.gmra.mxu0 %v622_v9 }
  0xe2   :  { %v157_v11 = vpop.f32.mrf.mxu0 }
  0xe3   :  { %v158_v13 = vadd.f32 %v524_v10, %v157_v11 }
  0xe4   :  { %v601_v14 = vpop.f32.mrf.mxu0 }
  0xe5   :  { %v166_v15 = vadd.f32 %v164_v12, %v158_v13 }
  0xe6   :  { %v160_v16 = vpop.f32.mrf.mxu0 }
  0xe7   :  { %v161_v18 = vadd.f32 %v524_v10, %v160_v16  ;;  %v169_v19 = vsel %vm168_vm1, %v166_v15, 0.0  ;;  %v536_v16 = vld [vmem:[%s880_s6] ss:$0 sm:$0xff] }
  0xe8   :  { %170 = vadd.xlane.f32.xlu0 %v169_v19  ;;  %v602_v20 = vpop.f32.mrf.mxu0 }
  0xe9   :  { %v167_v21 = vadd.f32 %v165_v17, %v161_v18 }
  0xeb   :  { %v172_v22 = vsel %vm168_vm1, %v167_v21, 0.0 }
  0xec   :  { %173 = vadd.xlane.f32.xlu0 %v172_v22  ;;  %v537_v22 = vld [vmem:[%s881_s7] ss:$0 sm:$0xff] }
 0x171   :  { %v171_v23 = vpop.xlane.xlu0 %170 }
 0x172   :  { %v176_v24 = vmul.f32 0.03125, %v171_v23 }
 0x174   :  { %v178_v25 = vsub.f32 %v166_v15, %v176_v24 }
 0x175   :  { %v174_v26 = vpop.xlane.xlu0 %173 }
 0x176   :  { %v177_v27 = vmul.f32 0.03125, %v174_v26  ;;  %v180_v28 = vmul.f32 %v178_v25, %v178_v25  ;;  %v197_v40 = vmul.f32 %v534_v39, %v178_v25  ;;  %v625_v26 = vld [vmem:[%s879_s10 + $0x70] ss:$8 sps:$4 sm:$0xff]  }
 0x178   :  { %v179_v29 = vsub.f32 %v167_v21, %v177_v27  ;;  %v182_v30 = vsel %vm168_vm1, %v180_v28, 0.0  ;;  %v630_v28 = vld [vmem:[%s879_s10 + $0x64] ss:$8 sps:$4 sm:$0xff]  }
 0x179   :  { %183 = vadd.xlane.f32.xlu1 %v182_v30  ;;  %v633_v30 = vld [vmem:[%s879_s10 + $0x54] ss:$8 sps:$4 sm:$0xff]  }
 0x17a   :  { %v181_v31 = vmul.f32 %v179_v29, %v179_v29  ;;  %v198_v44 = vmul.f32 %v534_v39, %v179_v29  ;;  %v628_v29 = vld [vmem:[%s879_s10 + $0x60] ss:$8 sps:$4 sm:$0xff]   ;;  %v643_v39 = vld [vmem:[%s879_s10 + $0x10] ss:$8 sps:$4 sm:$0xff]  }
 0x17c   :  { %v185_v32 = vsel %vm168_vm1, %v181_v31, 0.0  ;;  %v631_v31 = vld [vmem:[%s879_s10 + $0x50] ss:$8 sps:$4 sm:$0xff]  }
 0x17d   :  { %186 = vadd.xlane.f32.xlu1 %v185_v32  ;;  %v636_v32 = vld [vmem:[%s879_s10 + $0x44] ss:$8 sps:$4 sm:$0xff]  }
 0x202   :  { %v184_v33 = vpop.xlane.xlu1 %183 }
 0x203   :  { %v188_v34 = vmul.f32 0.03125, %v184_v33  ;;  %v634_v33 = vld [vmem:[%s879_s10 + $0x40] ss:$8 sps:$4 sm:$0xff]  }
 0x205   :  { %v199_v35 = vadd.f32 1e-12, %v188_v34  ;;  %v639_v34 = vld [vmem:[%s879_s10 + $0x34] ss:$8 sps:$4 sm:$0xff]  }
 0x206   :  { %v187_v36 = vpop.xlane.xlu1 %186 }
 0x207   :  { %649 = vrsqrt.f32 %v199_v35  ;;  %v189_v37 = vmul.f32 0.03125, %v187_v36  ;;  %v637_v35 = vld [vmem:[%s879_s10 + $0x30] ss:$8 sps:$4 sm:$0xff]   ;;  %v642_v36 = vld [vmem:[%s879_s10 + $0x24] ss:$8 sps:$4 sm:$0xff]  }
 0x209   :  { %v200_v38 = vadd.f32 1e-12, %v189_v37  ;;  %v640_v37 = vld [vmem:[%s879_s10 + $0x20] ss:$8 sps:$4 sm:$0xff]  }
 0x20b   :  { %651 = vrsqrt.f32 %v200_v38  ;;  %v645_v38 = vld [vmem:[%s879_s10 + $0x14] ss:$8 sps:$4 sm:$0xff]  }
 0x214   :  { %v650_v41 = vpop.eup %649 }
 0x215   :  { %v203_v43 = vmul.f32 %v650_v41, %v197_v40  ;;  %v648_v40 = vld [vmem:[%s879_s10 + $0x4] ss:$8 sps:$4 sm:$0xff]   ;;  %v646_v41 = vld [vmem:[%s879_s10] ss:$8 sps:$4 sm:$0xff]  }
 0x217   :  { %v212_v45 = vadd.f32 %v535_v42, %v203_v43 }
 0x218   :  { %v652_v46 = vpop.eup %651 }
 0x219   :  { %v214_v47 = vsel %vm168_vm1, %v212_v45, 0.0  ;;  %v204_v48 = vmul.f32 %v652_v46, %v198_v44  ;;  %v538_v44 = vld [vmem:[%s882_s9] ss:$0 sm:$0xff] }
 0x21a   :  { %215 = vadd.xlane.f32.xlu0 %v214_v47 }
 0x21b   :  { %v213_v49 = vadd.f32 %v535_v42, %v204_v48  ;;  %v663_v42 = vmov 0  }
 0x21d   :  { %v217_v50 = vsel %vm168_vm1, %v213_v49, 0.0 }
 0x21e   :  { %218 = vadd.xlane.f32.xlu1 %v217_v50 }
 0x2a3   :  { %v216_v51 = vpop.xlane.xlu0 %215 }
 0x2a4   :  { %v220_v52 = vmul.f32 0.03125, %v216_v51  ;;  %v369_v51 = vlaneseq }
 0x2a6   :  { %v222_v53 = vsub.f32 %v212_v45, %v220_v52  ;;  %v370_v52 = vshrl.u32 %v369_v51, 7 }
 0x2a7   :  { %v219_v54 = vpop.xlane.xlu1 %218 }
 0x2a8   :  { %v221_v55 = vmul.f32 0.03125, %v219_v54  ;;  %v224_v56 = vmul.f32 %v222_v53, %v222_v53  ;;  %v256_v18 = vmul.f32 %v536_v16, %v222_v53  ;;  %v371_v53 = vsub.s32 0, %v370_v52 }
 0x2a9   :  { %v375_v54 = vsub.s32 1, %v370_v52 }
 0x2aa   :  { %v223_v57 = vsub.f32 %v213_v49, %v221_v55  ;;  %v226_v58 = vsel %vm168_vm1, %v224_v56, 0.0  ;;  %v367_v55 = vld [vmem:[%s884_s11] sm:$0x3] }
 0x2ab   :  { %227 = vadd.xlane.f32.xlu0 %v226_v58  ;;  %v372_v56 = vrot.slane %v367_v55, %v371_v53 }
 0x2ac   :  { %v225_v59 = vmul.f32 %v223_v57, %v223_v57  ;;  %v257_v19 = vmul.f32 %v536_v16, %v223_v57  ;;  %v376_v57 = vrot.slane %v367_v55, %v375_v54 }
 0x2ae   :  { %v229_v60 = vsel %vm168_vm1, %v225_v59, 0.0 }
 0x2af   :  { %230 = vadd.xlane.f32.xlu1 %v229_v60 }
 0x334   :  { %v228_v1 = vpop.xlane.xlu0 %227 }
 0x335   :  { %v233_v2 = vmul.f32 0.032258064, %v228_v1 }
 0x337   :  { %653 = vrsqrt.f32 %v233_v2  ;;  %vm237_vm2 = vcmp.eq.f32.partialorder %v233_v2, inf  ;;  %v240_v7 = vand.u32 2147483648, %v233_v2  ;;  %vm239_vm3 = vcmp.eq.f32.partialorder %v233_v2, 0.0 }
 0x338   :  { %v231_v3 = vpop.xlane.xlu1 %230 }
 0x339   :  { %v234_v4 = vmul.f32 0.032258064, %v231_v3 }
 0x33b   :  { %655 = vrsqrt.f32 %v234_v4  ;;  %vm244_vm4 = vcmp.eq.f32.partialorder %v234_v4, inf  ;;  %v247_v12 = vand.u32 2147483648, %v234_v4  ;;  %vm246_vm5 = vcmp.eq.f32.partialorder %v234_v4, 0.0 }
 0x344   :  { %v654_v5 = vpop.eup %653 }
 0x345   :  { %v236_v6 = vmul.f32 %v654_v5, %v233_v2 }
 0x347   :  { %v238_v8 = vsel %vm237_vm2, %v233_v2, %v236_v6 }
 0x348   :  { %v656_v9 = vpop.eup %655  ;;  %v241_v0 = vsel %vm239_vm3, %v240_v7, %v238_v8 }
 0x349   :  { %v258_v10 = vadd.f32 1e-06, %v241_v0  ;;  %v243_v11 = vmul.f32 %v656_v9, %v234_v4 }
 0x34b   :  { %657 = vrcp.f32 %v258_v10  ;;  %v245_v13 = vsel %vm244_vm4, %v234_v4, %v243_v11 }
 0x34c   :  { %v248_v14 = vsel %vm246_vm5, %v247_v12, %v245_v13 }
 0x34d   :  { %v259_v15 = vadd.f32 1e-06, %v248_v14 }
 0x34f   :  { %659 = vrcp.f32 %v259_v15 }
 0x358   :  { %v658_v17 = vpop.eup %657 }
 0x359   :  { %v261_v20 = vmul.f32 %v658_v17, %v256_v18 }
 0x35b   :  { %v271_v24 = vadd.f32 %v537_v22, %v261_v20 }
 0x35c   :  { %v660_v21 = vpop.eup %659 }
 0x35d   :  { %v263_v23 = vmul.f32 %v660_v21, %v257_v19 }
 0x35f   :  { %v272_v25 = vadd.f32 %v537_v22, %v263_v23 }
 0x361   :  { %v273_v27 = vpack.c.bf16 %v272_v25, %v271_v24 }
 0x363   :  { %608 = vmatmul.mubr.msk.bf16.vlgmr.msra.gmra.mxu1 %vm168_vm1, %v273_v27 }
 0x364   :  { %460 = vmatpush1.bf16.msra.mxu1 %v625_v26  ;;  %491 = vmatprep.mubr.bf16.mxu1 %v663_v42 }
 0x365   :  { %461 = vmatprep.subr.bf16.mxu1 %v630_v28 }
 0x368   :  { %462 = vmatpush1.bf16.msra.mxu1 %v628_v29 }
 0x369   :  { %463 = vmatprep.subr.bf16.mxu1 %v633_v30 }
 0x36c   :  { %464 = vmatpush1.bf16.msra.mxu1 %v631_v31 }
 0x36d   :  { %465 = vmatprep.subr.bf16.mxu1 %v636_v32 }
 0x370   :  { %466 = vmatpush1.bf16.msra.mxu1 %v634_v33 }
 0x371   :  { %467 = vmatprep.subr.bf16.mxu1 %v639_v34 }
 0x374   :  { %468 = vmatpush1.bf16.msra.mxu1 %v637_v35 }
 0x375   :  { %469 = vmatprep.subr.bf16.mxu1 %v642_v36 }
 0x378   :  { %470 = vmatpush1.bf16.msra.mxu1 %v640_v37 }
 0x379   :  { %471 = vmatprep.subr.bf16.mxu1 %v645_v38 }
 0x37c   :  { %472 = vmatpush1.bf16.msra.mxu1 %v643_v39 }
 0x37d   :  { %473 = vmatprep.subr.bf16.mxu1 %v648_v40 }
 0x380   :  { %474 = vmatpush1.bf16.msra.mxu1 %v646_v41 }
 0x423   :  { %v334_v43 = vpop.f32.mrf.mxu1 }
 0x424   :  { %v335_v47 = vadd.f32 %v538_v44, %v334_v43 }
 0x425   :  { %v609_v45 = vpop.f32.mrf.mxu1 }
 0x427   :  { %v337_v46 = vpop.f32.mrf.mxu1 }
 0x428   :  { %v338_v48 = vadd.f32 %v538_v44, %v337_v46 }
 0x429   :  { %v610_v49 = vpop.f32.mrf.mxu1 }
 0x42a   :  { %v341_v50 = vpack.c.bf16 %v338_v48, %v335_v47 }
 0x42c   :  { %570 = vst [vmem:[%s883_s12] sm:$0xff] %v341_v50   ;;  %492 = vmatmul.mubr.bf16.vlgmr.msra.gmra.mxu1 %v341_v50 }
 0x4ec   :  { %v493_v58 = vpop.f32.mrf.mxu1 }
 0x4ed   :  { %v494_v60 = vadd.f32 %v493_v58, %v372_v56 }
 0x4ee   :  { %v495_v59 = vpop.f32.mrf.mxu1 }
 0x4ef   :  { %v496_v61 = vadd.f32 %v495_v59, %v376_v57 }
 0x4f0   :  { %v497_v62 = vpop.f32.mrf.mxu1 }
 0x4f1   :  { %v564_v63 = vpack.c.bf16 %v496_v61, %v494_v60  ;;  %v498_v2 = vadd.f32 %v497_v62, %v372_v56 }
 0x4f2   :  { %v499_v1 = vpop.f32.mrf.mxu1 }
 0x4f3   :  { %514 = vst [vmem:[%s885_s13] sm:$0xff] %v564_v63  ;;  %v500_v3 = vadd.f32 %v499_v1, %v376_v57 }
 0x4f5   :  { %v565_v4 = vpack.c.bf16 %v500_v3, %v498_v2 }
 0x4f7   :  { %515 = vst [vmem:[%s885_s13 + $0x8] sm:$0xff] %v565_v4 }

// kernel: gcn_bert_forward.11
= control target key start
LH: loop header
LB: loop body
LE: loop exit
PB: predicated region body
PF: predicated region fallthrough
CT: control target
= control target key end

     0   :  { %s2932_s0 = inlined_call_operand.vmem [shape: bf16[2,8,256], index: 0, kind: input, shape index: {}]   ;;  %s2933_s1 = inlined_call_operand.vmem [shape: f32[2,1,8], index: 1, kind: input, shape index: {}]   ;;  %s2934_s2 = inlined_call_operand.vmem [shape: f32[2,4,8,8], index: 2, kind: input, shape index: {}]   ;;  %s2935_s3 = inlined_call_operand.vmem [shape: bf16[2,8,128], index: 3, kind: input, shape index: {}]   ;;  %s2936_s4 = inlined_call_operand.vmem [shape: bf16[128,128], index: 4, kind: input, shape index: {}]   ;;  %s2937_s5 = inlined_call_operand.vmem [shape: f32[1,128], index: 5, kind: input, shape index: {}]   ;;  %s2938_s6 = inlined_call_operand.vmem [shape: bf16[4,128], index: 6, kind: input, shape index: {}]   ;;  %s2939_s7 = inlined_call_operand.vmem [shape: bf16[4,128], index: 7, kind: input, shape index: {}]   ;;  %s2940_s8 = inlined_call_operand.vmem [shape: bf16[3,128,128], index: 8, kind: input, shape index: {}]   ;;  %s2941_s9 = inlined_call_operand.vmem [shape: f32[1,128], index: 9, kind: input, shape index: {}]   ;;  %s2942_s10 = inlined_call_operand.vmem [shape: f32[4,4], index: 10, kind: input, shape index: {}]   ;;  %s2943_s11 = inlined_call_operand.vmem [shape: f32[4,1], index: 11, kind: input, shape index: {}]   ;;  %s2944_s12 = inlined_call_operand.hbm [shape: f32[2,8,128], index: 12, kind: output, shape index: {}]  }
   0x1   :  { %2945 = sst [smem:[#allocation5_spill]] %s2932_s0 }
   0x2   :  { %2946 = sst [smem:[#allocation6_spill]] %s2933_s1 }
   0x3   :  { %17 = vsyncpa [#allocation3], 0 }
   0x4   :  { %19 = vsyncpa [#allocation3 + $0x1], 0  ;;  %s2454_s21 = smov 0   ;;  %s2456_s22 = smov 0  }
   0x5   :  { %s2458_s23 = smov 0   ;;  %s2460_s24 = smov 0  }
   0x6 LB: > { %s2475_s25 = sadd.s32 4294967295, %s2379_s24   ;;  %s1893_s26 = sadd.s32 4294967294, %s2379_s24   ;;  %s2379_s24 = sphi %s2460_s24, %s2956_s24   ;;  %s2375_s23 = sphi %s2458_s23, %s2955_s23   ;;  %s2371_s22 = sphi %s2456_s22, %s2954_s22   ;;  %s2367_s21 = sphi %s2454_s21, %s2953_s21  }
   0x7   : > { %s2479_s27 = sadd.s32 1, %s2379_s24   ;;  %s304_s28 = sadd.s32 1, %s2375_s23 }
   0x8   : > { %s301_s29 = ssub.s32 %s2379_s24, %s2479_s27  ;;  %p314_p0 = scmp.ne.s32.totalorder %s2375_s23, %s2371_s22 }
   0x9   : > { %p302_p1 = scmp.eq.s32.totalorder %s301_s29, 0  ;;  %p315_p2 = scmp.eq.s32.totalorder %s2475_s25, 1 }
   0xa   : > { %p320_p3 = scmp.ne.s32.totalorder %s2371_s22, %s2367_s21  ;;  %p321_p4 = scmp.eq.s32.totalorder %s1893_s26, 1 }
   0xb   : > { %s2490_s30 = scalar_select %p302_p1, %s2375_s23, %s304_s28  }
   0xc   : > { %p2492_p5 = por %p315_p2, %p314_p0  ;;  %p2496_p6 = por %p321_p4, %p320_p3 }
   0xd   : > { %p1896_p7 = scmp.ge.s32.totalorder %s2379_s24, 1  ;;  %p392_p8 = scmp.lt.s32.totalorder %s2379_s24, 3 }
   0xf   : > { %p393_p9 = pnand %p1896_p7, %p392_p8 }
  0x10   : > { %p446_p10 = scmp.lt.s32.totalorder (!%p393_p9), %s2475_s25, 1  ;;  %s2949_s0 = sld [smem:[#allocation5_spill]] (!%p393_p9) }
  0x11   : > { %396 = sbr.rel (%p393_p9) target bundleno = 2019 (0x7e3), region = 68  ;;  %s2383_s20 = smov (!%p393_p9), 96  }
  0x12   : > { %s2384_s26 = smov (!%p393_p9), 64   ;;  %s2385_s28 = smov (!%p393_p9), 32  }
  0x13   : > { %s2950_s1 = sld [smem:[#allocation6_spill]] (!%p393_p9) }
  0x16   : > { %v2381_v0 = vmov 0.0   ;;  %vm2382_vm0 = vmmov 0   ;;  %s2507_s15 = scalar_select %p446_p10, %s2475_s25, 1  ;;  %vm468_vm1 = vcmask 261120   ;;  %v2386_v10 = vmov 0  }
  0x17   : > { %2061 = vmatprep.subr.bf16.mxu0 %v2381_v0  ;;  %2063 = vmatprep.mubr.msk.bf16.mxu0 %vm2382_vm0, %v2381_v0  ;;  %v517_v20 = vlaneseq  ;;  %vm525_vm4 = vcmask 64512   ;;  %vm789_vm5 = vcmask 1043456  }
  0x18   : > { %2067 = vmatprep.subr.bf16.mxu1 %v2381_v0  ;;  %2069 = vmatprep.mubr.msk.bf16.mxu1 %vm2382_vm0, %v2381_v0  ;;  %s1998_s16 = sshll.u32 %s2507_s15, 3  ;;  %s1999_s18 = sshll.u32 %s2507_s15, 5 }
  0x19   : > { %s450_s19 = scalar_lea.vmem %s2949_s0, %s1998_s16  ;;  %2256 = vset.pattern.permute.xlu1 %v2386_v10  ;;  %2255 = vset.pattern.permute.xlu0 %v2386_v10  ;;  %s453_s17 = scalar_lea.vmem %s2950_s1, %s2507_s15  ;;  %v2540_v22 = vshrl.u32 %v517_v20, 7  ;;  %v1222_v20 = vld [vmem:[%s2942_s10] sm:$0xf] }
  0x1a   : > { %v467_v1 = vld [vmem:[%s450_s19 + $0x4] sm:$0xf]  ;;  %v2259_v5 = vld [vmem:[%s450_s19] ss:$0 sps:$4 sm:$0xff]   ;;  %s1902_s16 = sshll.u32 %s2507_s15, 2 }
  0x1b   : > { %v2257_v2 = vld [vmem:[%s450_s19 + $0x4] ss:$0 sps:$4 sm:$0xff]   ;;  %v473_v3 = vsel %vm468_vm1, %v467_v1, 0  ;;  %542 = vrot.lane.b32.xlu1 %v2259_v5, %s2383_s20  ;;  %v466_v6 = vld [vmem:[%s450_s19] sm:$0xf]  ;;  %v2543_v23 = vsub.s32 0, %v2540_v22 }
  0x1c   : > { %2062 = vmatpush3.bf16.xpose.msra.mxu0 %v473_v3  ;;  %547 = vrot.lane.b32.xlu0 %v2257_v2, %s2383_s20  ;;  %v2258_v4 = vld [vmem:[%s450_s19 + $0x4] ss:$0 sps:$4 sm:$0xff]   ;;  %v2261_v8 = vld [vmem:[%s450_s19] ss:$0 sps:$4 sm:$0xff]   ;;  %v2600_v27 = vsub.s32 1, %v2540_v22 }
  0x1d   : > { %2073 = vmatprep.subr.bf16.mxu0 %v2381_v0  ;;  %v2260_v7 = vld [vmem:[%s450_s19 + $0x4] ss:$0 sps:$4 sm:$0xff]   ;;  %v2262_v9 = vld [vmem:[%s450_s19] ss:$0 sps:$4 sm:$0xff]   ;;  %s462_s19 = scalar_lea.vmem %s2935_s3, %s1902_s16 }
  0x1e   : > { %v464_v21 = vld [vmem:[%s453_s17] sm:$0x1] }
  0x1f   : > { %695 = vrot.lane.b32.xlu1 %v2260_v7, %s2385_s28  ;;  %vm465_vm2 = vcmp.ne.f32.partialorder %v464_v21, 0.0  ;;  %v1226_v21 = vrot.slane %v1222_v20, %v2543_v23 }
  0x20   : > { %621 = vrot.lane.b32.xlu0 %v2258_v4, %s2384_s26  ;;  %v516_v24 = vsel %vm465_vm2, 1, %v2386_v10 }
  0x21   : > { %v520_v25 = vrot.slane %v516_v24, %v2543_v23  ;;  %v2593_v24 = vsub.s32 2, %v2540_v22 }
  0x23   : > { %2064 = vmatmul.mubr.msk.bf16.vlgmr.msra.gmra.mxu0 %vm468_vm1, %v466_v6  ;;  %690 = vrot.lane.b32.xlu1 %v2262_v9, %s2385_s28  ;;  %vm2552_vm3 = vcmp.eq.s32.totalorder %v520_v25, 1  ;;  %v1240_v25 = vrot.slane %v1222_v20, %v2593_v24  ;;  %s1995_s28 = sshll.u32 %s2475_s25, 7  ;;  %s2388_s25 = smov [#allocation2]  }
  0x24   : > { %616 = vrot.lane.b32.xlu0 %v2261_v8, %s2384_s26  ;;  %2075 = vmatprep.mubr.msk.bf16.mxu0 %vm2382_vm0, %v2381_v0  ;;  %s2550_s26 = scalar_lea.vmem %s2934_s2, %s1999_s18  ;;  %s443_s18 = sand.u32 1, %s2371_s22  }
  0x25   : > { %v523_v29 = vld [vmem:[%s2550_s26] sm:$0xff]  ;;  %v1907_v38 = vld [vmem:[%s2550_s26 + $0x8] sm:$0xff]  ;;  %v1911_v45 = vld [vmem:[%s2550_s26 + $0x10] sm:$0xff]  ;;  %s2897_s0 = scalar_lea.hbm %s2944_s12, %s1995_s28  ;;  %s1788_s1 = scalar_lea.sflag [#allocation3], %s443_s18 }
  0x26   : > { %v1915_v54 = vld [vmem:[%s2550_s26 + $0x18] sm:$0xff] }
  0x8d   : > { %v543_v13 = vpop.permute.xlu1 %542 }
  0x8e   : > { %v548_v11 = vpop.permute.xlu0 %547 }
  0x8f   : > { %v553_v12 = vsel %vm468_vm1, %v548_v11, 0 }
  0x90   : > { %2068 = vmatpush3.bf16.xpose.msra.mxu1 %v553_v12 }
  0x91   : > { %2079 = vmatprep.subr.bf16.mxu1 %v2381_v0  ;;  %v696_v16 = vpop.permute.xlu1 %695 }
  0x92   : > { %v622_v14 = vpop.permute.xlu0 %621  ;;  %v701_v17 = vsel %vm468_vm1, %v696_v16, 0 }
  0x93   : > { %v627_v15 = vsel %vm468_vm1, %v622_v14, 0 }
  0x94   : > { %2074 = vmatpush3.bf16.xpose.msra.mxu0 %v627_v15 }
  0x95   : > { %2085 = vmatprep.subr.bf16.mxu0 %v2381_v0  ;;  %v691_v19 = vpop.permute.xlu1 %690 }
  0x96   : > { %v617_v18 = vpop.permute.xlu0 %616 }
  0x97   : > { %2070 = vmatmul.mubr.msk.bf16.vlgmr.msra.gmra.mxu1 %vm468_vm1, %v543_v13 }
  0x98   : > { %2080 = vmatpush3.bf16.xpose.msra.mxu1 %v701_v17  ;;  %2081 = vmatprep.mubr.msk.bf16.mxu1 %vm2382_vm0, %v2381_v0 }
  0x99   : > { %2091 = vmatprep.subr.bf16.mxu1 %v2381_v0 }
  0x9b   : > { %2076 = vmatmul.mubr.msk.bf16.vlgmr.msra.gmra.mxu0 %vm468_vm1, %v617_v18 }
  0x9c   : > { %2087 = vmatprep.mubr.msk.bf16.mxu0 %vm2382_vm0, %v2381_v0 }
  0x9f   : > { %2082 = vmatmul.mubr.msk.bf16.vlgmr.msra.gmra.mxu1 %vm468_vm1, %v691_v19 }
  0xa0   : > { %2107 = vmatprep.mubr.msk.bf16.mxu1 %vm2382_vm0, %v2381_v0 }
  0xe3   : > { %v509_v26 = vpop.f32.mrf.mxu0 }
  0xe4   : > { %v515_v28 = vmul.f32 0.2, %v509_v26  ;;  %v2597_v26 = vsub.s32 3, %v2540_v22 }
  0xe5   : > { %v2065_v30 = vpop.f32.mrf.mxu0 }
  0xe6   : > { %v522_v31 = vsel %vm2552_vm3, %v515_v28, -1e+09  ;;  %v1247_v28 = vrot.slane %v1222_v20, %v2597_v26  ;;  %v2608_v30 = vld [vmem:[%s462_s19] sm:$0xf]  ;;  %s1897_s19 = sshll.u32 %s443_s18, 3 }
  0xe7   : > { %v524_v32 = vadd.f32 %v523_v29, %v522_v31  ;;  %v512_v33 = vpop.f32.mrf.mxu0  ;;  %v1233_v29 = vrot.slane %v1222_v20, %v2600_v27  ;;  %v791_v31 = vsel %vm789_vm5, %v2608_v30, 0  ;;  %s445_s15 = scalar_lea.vmem [#allocation2], %s1897_s19  ;;  %s2323_s19 = sshll.u32 %s2388_s25, 4  ;;  %s2324_s19 = int_to_ptr.vmem [resolvable:$false] %s2323_s19 }
  0xe8   : > { %2086 = vmatpush3.bf16.msra.mxu0 %v791_v31  ;;  %v2264_v33 = vld [vmem:[%s2936_s4 + $0x30] sm:$0xff]   ;;  %s1801_s29 = sshll.u32 %s445_s15, 4  ;;  %s2325_s26 = scalar_lea.vmem %s2324_s19, 256  ;;  %s1802_s29 = int_to_ptr.vmem [resolvable:$true] %s1801_s29 }
  0xe9   : > { %v526_v34 = vsel %vm525_vm4, %v524_v32, -inf  ;;  %v2066_v35 = vpop.f32.mrf.mxu0  ;;  %2111 = vmatprep.subr.bf16.mxu0 %v2381_v0  ;;  %s2319_s20 = scalar_lea.vmem %s1802_s29, 128  ;;  %p2326_p0 = scmp.lt.s32.totalorder %s1802_s29, %s2324_s19 }
  0xea   : > { %527 = vmax.xlane.f32.xlu0 %v526_v34  ;;  %v2265_v34 = vld [vmem:[%s2936_s4 + $0x28] sm:$0xff]   ;;  %v2266_v35 = vld [vmem:[%s2936_s4 + $0x20] sm:$0xff]   ;;  %p2320_p11 = scmp.ne.s32.totalorder %s1802_s29, %s2319_s20  ;;  %p2327_p1 = scmp.lt.s32.totalorder %s2325_s26, %s2319_s20 }
  0xec   : > { %p2321_p12 = pnand %p2320_p11, %p2492_p5  ;;  %p2328_p2 = por %p2327_p1, %p2326_p0 }
  0xee   : > { %p2322_p13 = pneg %p2321_p12 }
  0xf0   : > { %p2329_p3 = pnand %p2328_p2, %p2322_p13 }
 0x157   : > { %v589_v36 = vpop.f32.mrf.mxu1 }
 0x158   : > { %v595_v37 = vmul.f32 0.2, %v589_v36  ;;  %v2267_v36 = vld [vmem:[%s2936_s4 + $0x18] sm:$0xff]  }
 0x159   : > { %v2071_v39 = vpop.f32.mrf.mxu1 }
 0x15a   : > { %v596_v40 = vsel %vm2552_vm3, %v595_v37, -1e+09  ;;  %v2268_v37 = vld [vmem:[%s2936_s4 + $0x10] sm:$0xff]  }
 0x15b   : > { %v592_v41 = vpop.f32.mrf.mxu1  ;;  %v663_v42 = vpop.f32.mrf.mxu0  ;;  %v599_v43 = vadd.f32 %v1907_v38, %v596_v40  ;;  %v2269_v38 = vld [vmem:[%s2936_s4 + $0x8] sm:$0xff]  }
 0x15c   : > { %v669_v44 = vmul.f32 0.2, %v663_v42 }
 0x15d   : > { %v2072_v46 = vpop.f32.mrf.mxu1  ;;  %v2077_v47 = vpop.f32.mrf.mxu0  ;;  %v600_v48 = vsel %vm525_vm4, %v599_v43, -inf }
 0x15e   : > { %v670_v49 = vsel %vm2552_vm3, %v669_v44, -1e+09  ;;  %601 = vmax.xlane.f32.xlu1 %v600_v48 }
 0x15f   : > { %v666_v50 = vpop.f32.mrf.mxu0  ;;  %v737_v51 = vpop.f32.mrf.mxu1  ;;  %v673_v52 = vadd.f32 %v1911_v45, %v670_v49 }
 0x160   : > { %v743_v53 = vmul.f32 0.2, %v737_v51 }
 0x161   : > { %v2078_v55 = vpop.f32.mrf.mxu0  ;;  %v2083_v56 = vpop.f32.mrf.mxu1  ;;  %v674_v57 = vsel %vm525_vm4, %v673_v52, -inf }
 0x162   : > { %v744_v58 = vsel %vm2552_vm3, %v743_v53, -1e+09  ;;  %675 = vmax.xlane.f32.xlu0 %v674_v57 }
 0x163   : > { %v740_v59 = vpop.f32.mrf.mxu1  ;;  %v747_v60 = vadd.f32 %v1915_v54, %v744_v58 }
 0x165   : > { %v2084_v61 = vpop.f32.mrf.mxu1  ;;  %v748_v62 = vsel %vm525_vm4, %v747_v60, -inf }
 0x166   : > { %749 = vmax.xlane.f32.xlu0 %v748_v62 }
 0x173   : > { %v528_v63 = vpop.xlane.xlu0 %527 }
 0x174   : > { %v529_v1 = vsub.f32 %v524_v32, %v528_v63  ;;  %v2263_v32 = vld [vmem:[%s2936_s4 + $0x38] sm:$0xff]  }
 0x175   : > { %2092 = vmatpush3.bf16.msra.mxu1 %v2263_v32 }
 0x176   : > { %v530_v2 = vmul.f32 1.442695, %v529_v1  ;;  %2093 = vmatprep.subr.bf16.mxu1 %v2381_v0 }
 0x178   : > { %2303 = vpow2.f32 %v530_v2 }
 0x179   : > { %2094 = vmatpush3.bf16.msra.mxu1 %v2264_v33 }
 0x17a   : > { %2095 = vmatprep.subr.bf16.mxu1 %v2381_v0 }
 0x17d   : > { %2096 = vmatpush3.bf16.msra.mxu1 %v2265_v34 }
 0x17e   : > { %2097 = vmatprep.subr.bf16.mxu1 %v2381_v0 }
 0x181   : > { %2098 = vmatpush3.bf16.msra.mxu1 %v2266_v35 }
 0x182   : > { %2099 = vmatprep.subr.bf16.mxu1 %v2381_v0 }
 0x185   : > { %v2572_v3 = vpop.eup %2303  ;;  %2100 = vmatpush3.bf16.msra.mxu1 %v2267_v36 }
 0x186   : > { %v532_v4 = vsel %vm525_vm4, %v2572_v3, 0.0  ;;  %2101 = vmatprep.subr.bf16.mxu1 %v2381_v0 }
 0x187   : > { %533 = vadd.xlane.f32.xlu1 %v532_v4 }
 0x189   : > { %2102 = vmatpush3.bf16.msra.mxu1 %v2268_v37 }
 0x18a   : > { %2103 = vmatprep.subr.bf16.mxu1 %v2381_v0 }
 0x18d   : > { %2104 = vmatpush3.bf16.msra.mxu1 %v2269_v38 }
 0x18e   : > { %2105 = vmatprep.subr.bf16.mxu1 %v2381_v0 }
 0x1e7   : > { %v602_v5 = vpop.xlane.xlu1 %601 }
 0x1e8   : > { %v603_v6 = vsub.f32 %v599_v43, %v602_v5 }
 0x1ea   : > { %v604_v7 = vmul.f32 1.442695, %v603_v6 }
 0x1eb   : > { %v676_v8 = vpop.xlane.xlu0 %675 }
 0x1ec   : > { %2305 = vpow2.f32 %v604_v7  ;;  %v677_v9 = vsub.f32 %v673_v52, %v676_v8 }
 0x1ee   : > { %v678_v10 = vmul.f32 1.442695, %v677_v9 }
 0x1ef   : > { %v750_v11 = vpop.xlane.xlu0 %749 }
 0x1f0   : > { %2307 = vpow2.f32 %v678_v10  ;;  %v751_v12 = vsub.f32 %v747_v60, %v750_v11 }
 0x1f2   : > { %v752_v13 = vmul.f32 1.442695, %v751_v12 }
 0x1f4   : > { %2309 = vpow2.f32 %v752_v13 }
 0x1f9   : > { %v2576_v14 = vpop.eup %2305 }
 0x1fa   : > { %v606_v15 = vsel %vm525_vm4, %v2576_v14, 0.0 }
 0x1fb   : > { %607 = vadd.xlane.f32.xlu0 %v606_v15 }
 0x1fd   : > { %v2580_v16 = vpop.eup %2307 }
 0x1fe   : > { %v680_v17 = vsel %vm525_vm4, %v2580_v16, 0.0 }
 0x1ff   : > { %681 = vadd.xlane.f32.xlu1 %v680_v17 }
 0x201   : > { %v2584_v18 = vpop.eup %2309 }
 0x202   : > { %v754_v19 = vsel %vm525_vm4, %v2584_v18, 0.0 }
 0x203   : > { %755 = vadd.xlane.f32.xlu0 %v754_v19 }
 0x210   : > { %1228 = vbcast.lane.b32.xlu1 %v1226_v21, 256  ;;  %v534_v39 = vpop.xlane.xlu1 %533 }
 0x211   : > { %2311 = vrcp.f32 %v534_v39 }
 0x214   : > { %1242 = vbcast.lane.b32.xlu1 %v1240_v25, 256 }
 0x218   : > { %1249 = vbcast.lane.b32.xlu1 %v1247_v28, 256 }
 0x219   : > { %1235 = vbcast.lane.b32.xlu0 %v1233_v29, 256 }
 0x21e   : > { %v2312_v42 = vpop.eup %2311 }
 0x21f   : > { %v536_v45 = vmul.f32 %v2312_v42, %v2572_v3 }
 0x221   : > { %v776_v52 = vsel %vm525_vm4, %v536_v45, 0.0 }
 0x284   : > { %v608_v40 = vpop.xlane.xlu0 %607 }
 0x285   : > { %2313 = vrcp.f32 %v608_v40 }
 0x288   : > { %v682_v41 = vpop.xlane.xlu1 %681 }
 0x289   : > { %2315 = vrcp.f32 %v682_v41 }
 0x28c   : > { %v2641_v43 = vpop.permute.xlu1 %1228  ;;  %v756_v44 = vpop.xlane.xlu0 %755 }
 0x28d   : > { %v1254_v46 = vrot.slane %v2641_v43, %v2543_v23  ;;  %2317 = vrcp.f32 %v756_v44  ;;  %v1258_v49 = vrot.slane %v2641_v43, %v2600_v27  ;;  %v1262_v54 = vrot.slane %v2641_v43, %v2593_v24 }
 0x28e   : > { %v1266_v59 = vrot.slane %v2641_v43, %v2597_v26 }
 0x28f   : > { %v1315_v50 = vmul.f32 %v1254_v46, %v536_v45 }
 0x290   : > { %v1243_v47 = vpop.permute.xlu1 %1242  ;;  %v1236_v48 = vpop.permute.xlu0 %1235 }
 0x291   : > { %v1286_v51 = vrot.slane %v1243_v47, %v2543_v23  ;;  %v1290_v55 = vrot.slane %v1243_v47, %v2600_v27  ;;  %v1270_v56 = vrot.slane %v1236_v48, %v2543_v23  ;;  %v1274_v57 = vrot.slane %v1236_v48, %v2600_v27 }
 0x292   : > { %v2314_v53 = vpop.eup %2313  ;;  %v1294_v60 = vrot.slane %v1243_v47, %v2593_v24  ;;  %v1298_v61 = vrot.slane %v1243_v47, %v2597_v26  ;;  %v1278_v63 = vrot.slane %v1236_v48, %v2593_v24  ;;  %v1282_v1 = vrot.slane %v1236_v48, %v2597_v26 }
 0x293   : > { %v610_v58 = vmul.f32 %v2314_v53, %v2576_v14  ;;  %v1323_v62 = vmul.f32 %v1286_v51, %v536_v45  ;;  %v1319_v2 = vmul.f32 %v1270_v56, %v536_v45  ;;  %v1331_v7 = vsel %vm525_vm4, %v1315_v50, 0.0 }
 0x294   : > { %v1250_v3 = vpop.permute.xlu1 %1249 }
 0x295   : > { %v1316_v4 = vmul.f32 %v1258_v49, %v610_v58  ;;  %v1320_v5 = vmul.f32 %v1274_v57, %v610_v58  ;;  %v1302_v6 = vrot.slane %v1250_v3, %v2543_v23  ;;  %v1324_v9 = vmul.f32 %v1290_v55, %v610_v58 }
 0x296   : > { %v2316_v8 = vpop.eup %2315  ;;  %v1306_v10 = vrot.slane %v1250_v3, %v2600_v27  ;;  %v1310_v11 = vrot.slane %v1250_v3, %v2593_v24  ;;  %v777_v12 = vsel %vm525_vm4, %v610_v58, 0.0  ;;  %v1314_v14 = vrot.slane %v1250_v3, %v2597_v26 }
 0x297   : > { %v684_v13 = vmul.f32 %v2316_v8, %v2580_v16  ;;  %v1327_v15 = vmul.f32 %v1302_v6, %v536_v45  ;;  %v778_v17 = vadd.f32 %v777_v12, %v776_v52  ;;  %v1338_v20 = vsel %vm525_vm4, %v1319_v2, 0.0  ;;  %v2273_v6 = vld [vmem:[%s2940_s8 + $0x70] sm:$0xff]   ;;  %v2277_v8 = vld [vmem:[%s2940_s8 + $0x60] sm:$0xff]  }
 0x298   : > { %v1328_v19 = vmul.f32 %v1306_v10, %v610_v58  ;;  %v1339_v21 = vsel %vm525_vm4, %v1320_v5, 0.0  ;;  %v1332_v25 = vsel %vm525_vm4, %v1316_v4, 0.0  ;;  %v1345_v32 = vsel %vm525_vm4, %v1323_v62, 0.0  ;;  %v2270_v4 = vld [vmem:[%s2936_s4] sm:$0xff]   ;;  %v2271_v5 = vld [vmem:[%s2940_s8 + $0x78] sm:$0xff]   ;;  %v2281_v10 = vld [vmem:[%s2940_s8 + $0x50] sm:$0xff]  }
 0x299   : > { %v1317_v28 = vmul.f32 %v1262_v54, %v684_v13  ;;  %v1325_v29 = vmul.f32 %v1294_v60, %v684_v13  ;;  %v1321_v31 = vmul.f32 %v1278_v63, %v684_v13  ;;  %v779_v33 = vsel %vm525_vm4, %v684_v13, 0.0  ;;  %2106 = vmatpush3.bf16.msra.mxu1 %v2270_v4 }
 0x29a   : > { %v1340_v34 = vadd.f32 %v1339_v21, %v1338_v20  ;;  %v1333_v16 = vadd.f32 %v1332_v25, %v1331_v7  ;;  %v1346_v35 = vsel %vm525_vm4, %v1324_v9, 0.0  ;;  %v2318_v36 = vpop.eup %2317  ;;  %v1329_v37 = vmul.f32 %v1310_v11, %v684_v13  ;;  %2131 = vmatprep.subr.bf16.mxu1 %v2381_v0  ;;  %v2275_v7 = vld [vmem:[%s2940_s8 + $0x68] sm:$0xff]   ;;  %v2279_v9 = vld [vmem:[%s2940_s8 + $0x58] sm:$0xff]   ;;  %v2278_v25 = vld [vmem:[%s2940_s8 + $0x20] sm:$0xff]  }
 0x29b   : > { %v1341_v38 = vsel %vm525_vm4, %v1321_v31, 0.0  ;;  %v1334_v39 = vsel %vm525_vm4, %v1317_v28, 0.0  ;;  %v1347_v40 = vadd.f32 %v1346_v35, %v1345_v32  ;;  %v758_v41 = vmul.f32 %v2318_v36, %v2584_v18  ;;  %v2283_v11 = vld [vmem:[%s2940_s8 + $0x48] sm:$0xff]   ;;  %v2272_v13 = vld [vmem:[%s2940_s8 + $0x38] sm:$0xff]   ;;  %v2285_v32 = vld [vmem:[%s2940_s8 + $0x40] sm:$0xff]  }
 0x29c   : > { %v1342_v42 = vadd.f32 %v1341_v38, %v1340_v34  ;;  %v1335_v43 = vadd.f32 %v1334_v39, %v1333_v16  ;;  %v1348_v44 = vsel %vm525_vm4, %v1325_v29, 0.0  ;;  %v780_v45 = vadd.f32 %v779_v33, %v778_v17  ;;  %v2276_v21 = vld [vmem:[%s2940_s8 + $0x28] sm:$0xff]   ;;  %v2280_v28 = vld [vmem:[%s2940_s8 + $0x18] sm:$0xff]   ;;  %v2282_v29 = vld [vmem:[%s2940_s8 + $0x10] sm:$0xff]  }
 0x29d   : > { %v1349_v46 = vadd.f32 %v1348_v44, %v1347_v40  ;;  %v1352_v47 = vsel %vm525_vm4, %v1327_v15, 0.0  ;;  %v1353_v48 = vsel %vm525_vm4, %v1328_v19, 0.0  ;;  %v781_v49 = vsel %vm525_vm4, %v758_v41, 0.0  ;;  %v2274_v19 = vld [vmem:[%s2940_s8 + $0x30] sm:$0xff]   ;;  %v2284_v31 = vld [vmem:[%s2940_s8 + $0x8] sm:$0xff]   ;;  %v2286_v33 = vld [vmem:[%s2940_s8] sm:$0xff]  }
 0x29e   : > { %v1322_v50 = vmul.f32 %v1282_v1, %v758_v41  ;;  %v1318_v51 = vmul.f32 %v1266_v59, %v758_v41  ;;  %v1326_v52 = vmul.f32 %v1298_v61, %v758_v41  ;;  %v782_v53 = vadd.f32 %v781_v49, %v780_v45  ;;  %v1958_v34 = vld.sshfl [vmem:[%s2943_s11] sm:$0x33 pattern:$0x75316420] }
 0x29f   : > { %v1330_v54 = vmul.f32 %v1314_v14, %v758_v41  ;;  %v1354_v55 = vadd.f32 %v1353_v48, %v1352_v47  ;;  %v1355_v18 = vsel %vm525_vm4, %v1329_v37, 0.0  ;;  %v2387_v16 = vmov 1966171168   ;;  %v1181_v48 = vld [vmem:[%s2939_s7] sm:$0x3] }
 0x2a0   : > { %v1343_v56 = vsel %vm525_vm4, %v1322_v50, 0.0  ;;  %v1336_v57 = vsel %vm525_vm4, %v1318_v51, 0.0  ;;  %v1350_v58 = vsel %vm525_vm4, %v1326_v52, 0.0  ;;  %v784_v60 = vmul.f32 0.25, %v782_v53 }
 0x2a1   : > { %v2686_v62 = vadd.f32 %v1343_v56, %v1342_v42  ;;  %v2688_v63 = vadd.f32 %v1336_v57, %v1335_v43  ;;  %v2690_v2 = vadd.f32 %v1350_v58, %v1349_v46  ;;  %v1356_v59 = vadd.f32 %v1355_v18, %v1354_v55 }
 0x2a2   : > { %v1357_v61 = vsel %vm525_vm4, %v1330_v54, 0.0  ;;  %v785_v1 = vpack.c.bf16 %v784_v60, %v784_v60  ;;  %v1361_v35 = vunpack.c.l.s4 %v2387_v16  ;;  %v1449_v37 = vcombine.high %v1958_v34, %v1958_v34 }
 0x2a3   : > { %v2693_v3 = vadd.f32 %v1357_v61, %v1356_v59 }
 0x2a4   : > { %2088 = vmatmul.mubr.msk.bf16.vlgmr.msra.gmra.mxu0 %vm525_vm4, %v785_v1  ;;  %v1362_v36 = vunpack.c.0.s8 %v1361_v35 }
 0x2a5   : > { %2127 = vmatprep.mubr.msk.bf16.mxu0 %vm2382_vm0, %v2381_v0  ;;  %2112 = vmatpush3.bf16.msra.mxu0 %v2271_v5 }
 0x2a6   : > { %2113 = vmatprep.subr.bf16.mxu0 %v2381_v0  ;;  %v1365_v38 = vsub.s32 %v1362_v36, %v2540_v22  ;;  %v1140_v22 = vld [vmem:[%s2938_s6] sm:$0x3] }
 0x2a8   : > { %v1463_v39 = vrot.slane %v1449_v37, %v1365_v38  ;;  %v1456_v50 = vrot.slane %v1958_v34, %v1365_v38 }
 0x2a9   : > { %2114 = vmatpush3.bf16.msra.mxu0 %v2273_v6 }
 0x2aa   : > { %2115 = vmatprep.subr.bf16.mxu0 %v2381_v0  ;;  %v1473_v40 = vrot.slane %v1463_v39, %v2543_v23  ;;  %v1469_v51 = vrot.slane %v1456_v50, %v2543_v23  ;;  %v1464_v52 = vcombine.high %v1456_v50, %v1456_v50  ;;  %v1465_v55 = vcombine.high %v1463_v39, %v1463_v39 }
 0x2ac   : > { %1487 = vperm.xlu1 %2256, %v1473_v40   ;;  %1483 = vperm.xlu0 %2255, %v1469_v51   ;;  %v1477_v54 = vrot.slane %v1464_v52, %v2543_v23  ;;  %v1481_v56 = vrot.slane %v1465_v55, %v2543_v23  ;;  %v2287_v52 = vld [vmem:[%s2936_s4 + $0x38] sm:$0xff]   ;;  %v2288_v55 = vld [vmem:[%s2936_s4 + $0x30] sm:$0xff]  }
 0x2ad   : > { %2116 = vmatpush3.bf16.msra.mxu0 %v2275_v7 }
 0x2ae   : > { %2117 = vmatprep.subr.bf16.mxu0 %v2381_v0 }
 0x2b0   : > { %1491 = vperm.xlu1 %2256, %v1477_v54   ;;  %1495 = vperm.xlu0 %2255, %v1481_v56   ;;  %v2290_v56 = vld [vmem:[%s2936_s4 + $0x20] sm:$0xff]  }
 0x2b1   : > { %2118 = vmatpush3.bf16.msra.mxu0 %v2277_v8 }
 0x2b2   : > { %2119 = vmatprep.subr.bf16.mxu0 %v2381_v0 }
 0x2b5   : > { %2120 = vmatpush3.bf16.msra.mxu0 %v2279_v9 }
 0x2b6   : > { %2121 = vmatprep.subr.bf16.mxu0 %v2381_v0 }
 0x2b9   : > { %2122 = vmatpush3.bf16.msra.mxu0 %v2281_v10 }
 0x2ba   : > { %2123 = vmatprep.subr.bf16.mxu0 %v2381_v0 }
 0x2bd   : > { %2124 = vmatpush3.bf16.msra.mxu0 %v2283_v11 }
 0x2be   : > { %2125 = vmatprep.subr.bf16.mxu0 %v2381_v0 }
 0x2c1   : > { %2126 = vmatpush3.bf16.msra.mxu0 %v2285_v32 }
 0x2c2   : > { %2151 = vmatprep.subr.bf16.mxu0 %v2381_v0 }
 0x327   : > { %v1484_v36 = vpop.permute.xlu0 %1483 }
 0x364   : > { %v827_v12 = vpop.f32.mrf.mxu0 }
 0x365   : > { %v833_v14 = vpack.c.bf16 %v827_v12, %v827_v12 }
 0x366   : > { %v2089_v15 = vpop.f32.mrf.mxu0 }
 0x367   : > { %2108 = vmatmul.mubr.bf16.vlgmr.msra.gmra.mxu1 %v833_v14 }
 0x368   : > { %v830_v17 = vpop.f32.mrf.mxu0  ;;  %2132 = vmatpush3.bf16.msra.mxu1 %v2272_v13  ;;  %2147 = vmatprep.mubr.msk.bf16.mxu1 %vm2382_vm0, %v2381_v0 }
 0x369   : > { %2133 = vmatprep.subr.bf16.mxu1 %v2381_v0 }
 0x36a   : > { %v2090_v20 = vpop.f32.mrf.mxu0 }
 0x36c   : > { %2134 = vmatpush3.bf16.msra.mxu1 %v2274_v19 }
 0x36d   : > { %2135 = vmatprep.subr.bf16.mxu1 %v2381_v0 }
 0x370   : > { %2136 = vmatpush3.bf16.msra.mxu1 %v2276_v21 }
 0x371   : > { %2137 = vmatprep.subr.bf16.mxu1 %v2381_v0 }
 0x374   : > { %2138 = vmatpush3.bf16.msra.mxu1 %v2278_v25 }
 0x375   : > { %2139 = vmatprep.subr.bf16.mxu1 %v2381_v0 }
 0x378   : > { %2140 = vmatpush3.bf16.msra.mxu1 %v2280_v28 }
 0x379   : > { %2141 = vmatprep.subr.bf16.mxu1 %v2381_v0 }
 0x37c   : > { %2142 = vmatpush3.bf16.msra.mxu1 %v2282_v29 }
 0x37d   : > { %2143 = vmatprep.subr.bf16.mxu1 %v2381_v0 }
 0x380   : > { %2144 = vmatpush3.bf16.msra.mxu1 %v2284_v31 }
 0x381   : > { %2145 = vmatprep.subr.bf16.mxu1 %v2381_v0 }
 0x384   : > { %2146 = vmatpush3.bf16.msra.mxu1 %v2286_v33 }
 0x385   : > { %2189 = vmatprep.subr.bf16.mxu1 %v2381_v0 }
 0x387   : > { %2148 = vmatmul.mubr.bf16.vlgmr.msra.gmra.mxu1 %v2608_v30  ;;  %v2779_v30 = vld [vmem:[%s2937_s5] ss:$0 sm:$0xff] }
 0x388   : > { %2205 = vmatprep.mubr.msk.bf16.mxu1 %vm2382_vm0, %v2381_v0 }
 0x427   : > { %v939_v41 = vpop.f32.mrf.mxu1 }
 0x428   : > { %v940_v42 = vadd.f32 %v2779_v30, %v939_v41 }
 0x429   : > { %v2109_v43 = vpop.f32.mrf.mxu1 }
 0x42a   : > { %v945_v44 = vmax.f32 %v940_v42, 0.0 }
 0x42b   : > { %v942_v45 = vpop.f32.mrf.mxu1 }
 0x42c   : > { %v946_v46 = vpack.c.bf16 %v945_v44, %v945_v44 }
 0x42d   : > { %v2110_v47 = vpop.f32.mrf.mxu1 }
 0x42e   : > { %2128 = vmatmul.mubr.bf16.vlgmr.msra.gmra.mxu0 %v946_v46  ;;  %v1515_v49 = vsel %vm789_vm5, %v946_v46, 0 }
 0x42f   : > { %2152 = vmatpush3.bf16.xpose.msra.mxu0 %v946_v46  ;;  %2153 = vmatprep.mubr.msk.bf16.mxu0 %vm2382_vm0, %v2381_v0 }
 0x430   : > { %2157 = vmatprep.subr.bf16.mxu0 %v2381_v0 }
 0x436   : > { %2154 = vmatmul.mubr.bf16.vlgmr.msra.gmra.mxu0 %v1140_v22 }
 0x437   : > { %2158 = vmatpush3.bf16.xpose.msra.mxu0 %v946_v46  ;;  %2159 = vmatprep.mubr.msk.bf16.mxu0 %vm2382_vm0, %v2381_v0 }
 0x438   : > { %2163 = vmatprep.subr.bf16.mxu0 %v2381_v0 }
 0x43e   : > { %2160 = vmatmul.mubr.bf16.vlgmr.msra.gmra.mxu0 %v1181_v48 }
 0x43f   : > { %2164 = vmatpush3.bf16.msra.mxu0 %v1515_v49  ;;  %2165 = vmatprep.mubr.msk.bf16.mxu0 %vm2382_vm0, %v2381_v0 }
 0x440   : > { %2169 = vmatprep.subr.bf16.mxu0 %v2381_v0 }
 0x447   : > { %v2799_v53 = vpop.f32.mrf.mxu1 }
 0x449   : > { %v2149_v18 = vpop.f32.mrf.mxu1 }
 0x44a   : > { %v2289_v18 = vld [vmem:[%s2936_s4 + $0x28] sm:$0xff]  }
 0x44b   : > { %v1137_v57 = vpop.f32.mrf.mxu1 }
 0x44c   : > { %v2291_v57 = vld [vmem:[%s2936_s4 + $0x18] sm:$0xff]  }
 0x44d   : > { %v2150_v58 = vpop.f32.mrf.mxu1 }
 0x44e   : > { %v2292_v58 = vld [vmem:[%s2936_s4 + $0x10] sm:$0xff]  }
 0x4ee   : > { %v2803_v60 = vpop.f32.mrf.mxu0 }
 0x4f0   : > { %v2129_v59 = vpop.f32.mrf.mxu0 }
 0x4f1   : > { %v2293_v59 = vld [vmem:[%s2936_s4 + $0x8] sm:$0xff]  }
 0x4f2   : > { %v1049_v61 = vpop.f32.mrf.mxu0 }
 0x4f3   : > { %v2294_v61 = vld [vmem:[%s2936_s4] sm:$0xff]  }
 0x4f4   : > { %v2130_v1 = vpop.f32.mrf.mxu0 }
 0x4f5   : > { %v2295_v1 = vld [vmem:[%s2940_s8 + $0xb8] sm:$0xff]  }
 0x4f6   : > { %v1175_v4 = vpop.f32.mrf.mxu0  ;;  %2190 = vmatpush3.bf16.msra.mxu1 %v2295_v1 }
 0x4f7   : > { %v1366_v5 = vrot.slane %v1175_v4, %v1365_v38  ;;  %v2296_v4 = vld [vmem:[%s2940_s8 + $0xb0] sm:$0xff]   ;;  %2191 = vmatprep.subr.bf16.mxu1 %v2381_v0 }
 0x4f8   : > { %v2155_v6 = vpop.f32.mrf.mxu0 }
 0x4f9   : > { %v1367_v7 = vcombine.high %v1366_v5, %v1366_v5  ;;  %v1374_v8 = vrot.slane %v1366_v5, %v1365_v38  ;;  %v2297_v5 = vld [vmem:[%s2940_s8 + $0xa8] sm:$0xff]   ;;  %v2298_v6 = vld [vmem:[%s2940_s8 + $0xa0] sm:$0xff]  }
 0x4fa   : > { %v1178_v9 = vpop.f32.mrf.mxu0  ;;  %2192 = vmatpush3.bf16.msra.mxu1 %v2296_v4 }
 0x4fb   : > { %v1381_v10 = vrot.slane %v1367_v7, %v1365_v38  ;;  %v1382_v11 = vcombine.high %v1374_v8, %v1374_v8  ;;  %v1387_v12 = vrot.slane %v1374_v8, %v2543_v23  ;;  %2193 = vmatprep.subr.bf16.mxu1 %v2381_v0  ;;  %v2299_v7 = vld [vmem:[%s2940_s8 + $0x98] sm:$0xff]   ;;  %v2300_v8 = vld [vmem:[%s2940_s8 + $0x90] sm:$0xff]  }
 0x4fc   : > { %v2156_v13 = vpop.f32.mrf.mxu0 }
 0x4fd   : > { %v1391_v14 = vrot.slane %v1381_v10, %v2543_v23  ;;  %v1404_v15 = vadd.f32 %v1387_v12, %v2688_v63  ;;  %v1395_v17 = vrot.slane %v1382_v11, %v2543_v23  ;;  %v1383_v19 = vcombine.high %v1381_v10, %v1381_v10 }
 0x4fe   : > { %v1216_v20 = vpop.f32.mrf.mxu0  ;;  %2194 = vmatpush3.bf16.msra.mxu1 %v2297_v5 }
 0x4ff   : > { %v1418_v21 = vrot.slane %v1216_v20, %v2600_v27  ;;  %v1411_v25 = vrot.slane %v1216_v20, %v2543_v23  ;;  %v1405_v29 = vadd.f32 %v1391_v14, %v2686_v62  ;;  %v1406_v31 = vadd.f32 %v1395_v17, %v2690_v2  ;;  %v1488_v27 = vpop.permute.xlu1 %1487  ;;  %v1496_v62 = vpop.permute.xlu0 %1495  ;;  %2195 = vmatprep.subr.bf16.mxu1 %v2381_v0  ;;  %v2301_v14 = vld [vmem:[%s2940_s8 + $0x88] sm:$0xff]  }
 0x500   : > { %v2161_v28 = vpop.f32.mrf.mxu0  ;;  %v1399_v32 = vrot.slane %v1383_v19, %v2543_v23  ;;  %v1425_v34 = vrot.slane %v1216_v20, %v2593_v24  ;;  %v1432_v16 = vrot.slane %v1216_v20, %v2597_v26 }
 0x501   : > { %1420 = vbcast.lane.b32.xlu1 %v1418_v21, 256  ;;  %1413 = vbcast.lane.b32.xlu0 %v1411_v25, 256 }
 0x502   : > { %v1219_v33 = vpop.f32.mrf.mxu0  ;;  %v1407_v63 = vadd.f32 %v1399_v32, %v2693_v3  ;;  %2196 = vmatpush3.bf16.msra.mxu1 %v2298_v6 }
 0x503   : > { %v1492_v37 = vpop.permute.xlu1 %1491  ;;  %2197 = vmatprep.subr.bf16.mxu1 %v2381_v0 }
 0x504   : > { %v2162_v35 = vpop.f32.mrf.mxu0 }
 0x505   : > { %1427 = vbcast.lane.b32.xlu1 %v1425_v34, 256  ;;  %1434 = vbcast.lane.b32.xlu0 %v1432_v16, 256 }
 0x506   : > { %2198 = vmatpush3.bf16.msra.mxu1 %v2299_v7 }
 0x507   : > { %2199 = vmatprep.subr.bf16.mxu1 %v2381_v0 }
 0x50a   : > { %2200 = vmatpush3.bf16.msra.mxu1 %v2300_v8 }
 0x50b   : > { %2201 = vmatprep.subr.bf16.mxu1 %v2381_v0 }
 0x50e   : > { %2202 = vmatpush3.bf16.msra.mxu1 %v2301_v14 }
 0x50f   : > { %2203 = vmatprep.subr.bf16.mxu1 %v2381_v0 }
 0x573   : > { %v1421_v38 = vpop.permute.xlu1 %1420  ;;  %v1414_v2 = vpop.permute.xlu0 %1413 }
 0x574   : > { %v1437_v39 = vadd.f32 %v1421_v38, %v1405_v29  ;;  %v1436_v23 = vadd.f32 %v1414_v2, %v1404_v15  ;;  %v2302_v15 = vld [vmem:[%s2940_s8 + $0x80] sm:$0xff]  }
 0x575   : > { %2204 = vmatpush3.bf16.msra.mxu1 %v2302_v15 }
 0x576   : > { %v1499_v40 = vadd.f32 %v1488_v27, %v1437_v39  ;;  %v1498_v41 = vadd.f32 %v1484_v36, %v1436_v23 }
 0x577   : > { %v1428_v42 = vpop.permute.xlu1 %1427  ;;  %v1435_v43 = vpop.permute.xlu0 %1434 }
 0x578   : > { %v1503_v3 = vsel %vm525_vm4, %v1499_v40, 0.0  ;;  %v1502_v24 = vsel %vm525_vm4, %v1498_v41, 0.0  ;;  %v1438_v26 = vadd.f32 %v1428_v42, %v1406_v31  ;;  %v1439_v44 = vadd.f32 %v1435_v43, %v1407_v63 }
 0x579   : > { %v1504_v45 = vadd.f32 %v1503_v3, %v1502_v24  ;;  %v1135_v31 = vadd.f32 %v2799_v53, %v2803_v60 }
 0x57a   : > { %v1500_v46 = vadd.f32 %v1492_v37, %v1438_v26  ;;  %v1501_v47 = vadd.f32 %v1496_v62, %v1439_v44 }
 0x57c   : > { %v1505_v22 = vsel %vm525_vm4, %v1500_v46, 0.0  ;;  %v1507_v49 = vsel %vm525_vm4, %v1501_v47, 0.0 }
 0x57d   : > { %v1506_v48 = vadd.f32 %v1505_v22, %v1504_v45 }
 0x57f   : > { %v1508_v50 = vadd.f32 %v1507_v49, %v1506_v48 }
 0x581   : > { %v1509_v51 = vmul.f32 0.25, %v1508_v50 }
 0x583   : > { %v1510_v54 = vpack.c.bf16 %v1509_v51, %v1509_v51 }
 0x585   : > { %2166 = vmatmul.mubr.msk.bf16.vlgmr.msra.gmra.mxu0 %vm525_vm4, %v1510_v54 }
 0x586   : > { %2170 = vmatpush3.bf16.msra.mxu0 %v2287_v52  ;;  %2185 = vmatprep.mubr.msk.bf16.mxu0 %vm2382_vm0, %v2381_v0 }
 0x587   : > { %2171 = vmatprep.subr.bf16.mxu0 %v2381_v0 }
 0x58a   : > { %2172 = vmatpush3.bf16.msra.mxu0 %v2288_v55 }
 0x58b   : > { %2173 = vmatprep.subr.bf16.mxu0 %v2381_v0 }
 0x58e   : > { %2174 = vmatpush3.bf16.msra.mxu0 %v2289_v18 }
 0x58f   : > { %2175 = vmatprep.subr.bf16.mxu0 %v2381_v0 }
 0x592   : > { %2176 = vmatpush3.bf16.msra.mxu0 %v2290_v56 }
 0x593   : > { %2177 = vmatprep.subr.bf16.mxu0 %v2381_v0 }
 0x596   : > { %2178 = vmatpush3.bf16.msra.mxu0 %v2291_v57 }
 0x597   : > { %2179 = vmatprep.subr.bf16.mxu0 %v2381_v0 }
 0x59a   : > { %2180 = vmatpush3.bf16.msra.mxu0 %v2292_v58 }
 0x59b   : > { %2181 = vmatprep.subr.bf16.mxu0 %v2381_v0 }
 0x59e   : > { %2182 = vmatpush3.bf16.msra.mxu0 %v2293_v59 }
 0x59f   : > { %2183 = vmatprep.subr.bf16.mxu0 %v2381_v0  ;;  %v1993_v0 = vld [vmem:[%s2941_s9] ss:$0 sm:$0xff] }
 0x5a2   : > { %2184 = vmatpush3.bf16.msra.mxu0 %v2294_v61 }
 0x645   : > { %v1551_v9 = vpop.f32.mrf.mxu0 }
 0x646   : > { %v1557_v10 = vpack.c.bf16 %v1551_v9, %v1551_v9 }
 0x647   : > { %v2167_v11 = vpop.f32.mrf.mxu0 }
 0x648   : > { %2186 = vmatmul.mubr.bf16.vlgmr.msra.gmra.mxu0 %v1557_v10 }
 0x649   : > { %v1554_v12 = vpop.f32.mrf.mxu0 }
 0x64b   : > { %v2168_v13 = vpop.f32.mrf.mxu0 }
 0x708   : > { %v1663_v17 = vpop.f32.mrf.mxu0 }
 0x709   : > { %v1664_v19 = vadd.f32 %v2779_v30, %v1663_v17 }
 0x70a   : > { %v2187_v20 = vpop.f32.mrf.mxu0 }
 0x70b   : > { %v1669_v21 = vmax.f32 %v1664_v19, 0.0 }
 0x70c   : > { %v1666_v25 = vpop.f32.mrf.mxu0 }
 0x70d   : > { %v1670_v28 = vpack.c.bf16 %v1669_v21, %v1669_v21 }
 0x70e   : > { %v2188_v29 = vpop.f32.mrf.mxu0 }
 0x70f   : > { %2206 = vmatmul.mubr.bf16.vlgmr.msra.gmra.mxu1 %v1670_v28 }
 0x7cf   : > { %v1770_v32 = vpop.f32.mrf.mxu1 }
 0x7d0   : > { %v1776_v33 = vadd.f32 %v1770_v32, %v1135_v31 }
 0x7d1   : > { %v2207_v63 = vpop.f32.mrf.mxu1 }
 0x7d2   : > { %v1784_v30 = vadd.f32 %v1993_v0, %v1776_v33 }
 0x7d3   : > { %v1773_v34 = vpop.f32.mrf.mxu1 }
 0x7d4   : > { %v1785_v16 = vmax.f32 %v1784_v30, 0.0 }
 0x7d5   : > { %v2208_v53 = vpop.f32.mrf.mxu1 }
 0x7d6   : > { %1786 = vst [vmem:[%s445_s15] sm:$0xff] %v1785_v16 }
 0x7d7   : > { %2332 = shalt.err (!%p2329_p3)
}
 0x7d8   : > { %s2333_s28 = scalar_lea.hbm %s2897_s0, 128  ;;  %s2337_s16 = scalar_lea.hbm %s2944_s12, 256 }
 0x7d9   : > { %p2334_p4 = scmp.ne.s32.totalorder %s2897_s0, %s2333_s28  ;;  %p2338_p9 = scmp.lt.s32.totalorder %s2897_s0, %s2944_s12 }
 0x7da   : > { %p2339_p10 = scmp.lt.s32.totalorder %s2337_s16, %s2333_s28 }
 0x7db   : > { %p2335_p7 = pnand %p2334_p4, %p2492_p5 }
 0x7dc   : > { %p2340_p11 = por %p2339_p10, %p2338_p9 }
 0x7dd   : > { %p2336_p8 = pneg %p2335_p7 }
 0x7df   : > { %p2341_p12 = pnand %p2340_p11, %p2336_p8 }
 0x7e1   : > { %2344 = shalt.err (!%p2341_p12)
}
 0x7e2   : > { %2209 = dma.vmem_to_hbm [thread:$0]  (%p2492_p5), %s1802_s29, 128, %s2897_s0, %s1788_s1  }
 0x7e3 PF: > { %p2215_p13 = scmp.ge.s32.totalorder %s2379_s24, 2  ;;  %s1813_s20 = sand.u32 1, %s2367_s21  }
 0x7e4   : > { %s1814_s19 = scalar_lea.sflag [#allocation3], %s1813_s20 }
 0x7e5   : > { %p2212_p0 = pnand %p2215_p13, %p2496_p6 }
 0x7e7   : > { %p2213_p1 = pneg %p2212_p0 }
 0x7e9   : > { %2362 = dma.done.wait (%p2213_p1), %s1814_s19, 128  }
 0x7ea   : > { %2364 = vsyncadd (%p2213_p1), %s1814_s19, 4294967168  ;;  %p22_p2 = scmp.ge.s32.totalorder %s2479_s27, 4   ;;  %s2953_s21 = smov %s2371_s22 }
 0x7eb   : > { %s2954_s22 = smov %s2375_s23  ;;  %s2955_s23 = smov %s2490_s30 }
 0x7ec   : > { %s2956_s24 = smov %s2479_s27  ;;  %24 = sbr.rel (!%p22_p2) target bundleno = 6 (0x6), region = 117 }
 0x7f1   :  { %1819 = vsyncpa [#allocation3], 1 }
 0x7f2   :  { %1821 = vsyncpa [#allocation3 + $0x1], 1 }

</bundles_post_ra>
